<compile_context>
chip_gen: v6e
topology: v6e:2x2x1
jax: 0.10.0
libtpu: 0.0.40
codegen_flags: <defaults>
</compile_context>

<pallas_src>
import functools

import jax
import jax.numpy as jnp
import numpy as np
from jax.experimental import pallas as pl
from jax.experimental.pallas import tpu as pltpu  # noqa: F401  (kept for TPU-specific tuning hooks)

_EPS = 1e-5
# Tap offsets (dy, dx) of the shared 3x3 im2col used to express a
# ConvTranspose2d(k=4, s=2, p=1) as one matmul; tap index t = (dy+1)*3+(dx+1).
_OFFSETS = tuple((dy, dx) for dy in (-1, 0, 1) for dx in (-1, 0, 1))


# -----------------------------------------------------------------------------
# Kernel A: fc1 -> BN1 -> ReLU -> fc2 -> BN2 -> ReLU (single pallas_call)
# -----------------------------------------------------------------------------
def _fc_fused_kernel(z_ref, w1_ref, b1_ref, g1_ref, be1_ref,
                     w2_ref, b2_ref, g2_ref, be2_ref, o_ref):
    def bn_relu(h, g, be):
        mean = jnp.mean(h, axis=0, keepdims=True)                      # batch stats
        var = jnp.mean(jnp.square(h - mean), axis=0, keepdims=True)    # biased variance
        return jnp.maximum((h - mean) * jax.lax.rsqrt(var + _EPS) * g + be, 0.0)

    h = jnp.dot(z_ref[...], w1_ref[...], preferred_element_type=jnp.float32) + b1_ref[...]
    h = bn_relu(h, g1_ref[...], be1_ref[...])
    h = jnp.dot(h, w2_ref[...], preferred_element_type=jnp.float32) + b2_ref[...]
    o_ref[...] = bn_relu(h, g2_ref[...], be2_ref[...])


def fc_fused(z, p):
    m, k = z.shape
    n1 = p["fc1_w"].shape[1]
    n2 = p["fc2_w"].shape[1]
    cost = pl.CostEstimate(
        flops=2 * m * k * n1 + 2 * m * n1 * n2,
        transcendentals=n1 + n2,
        bytes_accessed=4 * (m * k + k * n1 + n1 * n2 + m * n2 + 3 * n1 + 3 * n2),
    )
    return pl.pallas_call(
        _fc_fused_kernel,
        out_shape=jax.ShapeDtypeStruct((m, n2), jnp.float32),
        cost_estimate=cost,
    )(z, p["fc1_w"], p["fc1_b"], p["bn1_g"], p["bn1_b"],
      p["fc2_w"], p["fc2_b"], p["bn2_g"], p["bn2_b"])


# -----------------------------------------------------------------------------
# Kernel B: deconv1 (one matmul over shared im2col) + bias + BN2d + ReLU
# -----------------------------------------------------------------------------
def _deconv_bn_relu_kernel(p_ref, w_ref, b_ref, g_ref, be_ref, o_ref, *, cout):
    y = jnp.dot(p_ref[...], w_ref[...], preferred_element_type=jnp.float32) + b_ref[...]
    # Columns are grouped as (subpixel g = 2r+s, channel c); BN stats are per
    # channel over all rows AND the 4 subpixel groups (= N*H_out*W_out elems).
    ys = [y[:, i * cout:(i + 1) * cout] for i in range(4)]
    denom = 4.0 * y.shape[0]
    mean = jnp.sum(ys[0] + ys[1] + ys[2] + ys[3], axis=0, keepdims=True) / denom
    var = jnp.sum(sum(jnp.square(yg - mean) for yg in ys), axis=0, keepdims=True) / denom
    scale = g_ref[...] * jax.lax.rsqrt(var + _EPS)       # (1, cout)
    shift = be_ref[...] - mean * scale
    scale4 = jnp.concatenate([scale] * 4, axis=1)        # (1, 4*cout)
    shift4 = jnp.concatenate([shift] * 4, axis=1)
    o_ref[...] = jnp.maximum(y * scale4 + shift4, 0.0)


def deconv1_bn_relu(p1, wbig, bias_t, gamma, beta):
    m, k = p1.shape
    n = wbig.shape[1]
    cout = gamma.shape[1]
    cost = pl.CostEstimate(flops=2 * m * k * n, transcendentals=cout,
                           bytes_accessed=4 * (m * k + k * n + 2 * m * n))
    return pl.pallas_call(
        functools.partial(_deconv_bn_relu_kernel, cout=cout),
        out_shape=jax.ShapeDtypeStruct((m, n), jnp.float32),
        cost_estimate=cost,
    )(p1, wbig, bias_t, gamma, beta)


# -----------------------------------------------------------------------------
# Kernel C: deconv2 (transposed orientation -> lane-dense output) + bias + tanh
# -----------------------------------------------------------------------------
def _deconv_tanh_kernel(w_ref, p_ref, b_ref, o_ref):
    y = jnp.dot(w_ref[...], p_ref[...], preferred_element_type=jnp.float32) + b_ref[...]
    o_ref[...] = jnp.tanh(y)


def deconv2_tanh(wbig_t, p2, bias_t):
    gm, k = wbig_t.shape
    n = p2.shape[1]
    cost = pl.CostEstimate(flops=2 * gm * k * n, transcendentals=gm * n,
                           bytes_accessed=4 * (gm * k + k * n + gm * n))
    return pl.pallas_call(
        _deconv_tanh_kernel,
        out_shape=jax.ShapeDtypeStruct((gm, n), jnp.float32),
        cost_estimate=cost,
    )(wbig_t, p2, bias_t)


# -----------------------------------------------------------------------------
# Parameter preparation (done once, outside the jitted forward)
# -----------------------------------------------------------------------------
def _pack_deconv_weight(w):
    """PyTorch ConvTranspose2d weight (Cin, Cout, 4, 4) -> (9*Cin, 4*Cout).

    Row block t = (dy+1)*3+(dx+1) holds the tap for input shift (dy, dx);
    column block g = 2r+s holds output subpixel (r, s).  A tap contributes to
    subpixel (r, s) iff kh = r+1-2*dy and kw = s+1-2*dx are in [0, 3];
    otherwise the block stays zero (extra zero FLOPs are irrelevant here)."""
    cin, cout = w.shape[0], w.shape[1]
    wb = jnp.zeros((9 * cin, 4 * cout), jnp.float32)
    for t, (dy, dx) in enumerate(_OFFSETS):
        for r in (0, 1):
            kh = r + 1 - 2 * dy
            if not 0 <= kh <= 3:
                continue
            for s in (0, 1):
                kw = s + 1 - 2 * dx
                if not 0 <= kw <= 3:
                    continue
                g = 2 * r + s
                wb = wb.at[t * cin:(t + 1) * cin, g * cout:(g + 1) * cout].set(w[:, :, kh, kw])
    return wb


def prepare_params(params, hidden, input_size):
    s4 = input_size // 4
    # Permute fc2 columns from NCHW-view order (c*s4*s4 + y*s4 + x) to NHWC
    # order ((y*s4 + x)*hidden + c): the fused fc kernel then emits the NHWC
    # feature map directly (no transpose between kernels A and B).
    perm = (np.arange(hidden)[None, :] * (s4 * s4) + np.arange(s4 * s4)[:, None]).reshape(-1)
    return {
        "fc1_w": params["fc1_w"],
        "fc1_b": params["fc1_b"].reshape(1, -1),
        "bn1_g": params["bn1_g"].reshape(1, -1),
        "bn1_b": params["bn1_b"].reshape(1, -1),
        "fc2_w": params["fc2_w"][:, perm],
        "fc2_b": params["fc2_b"][perm].reshape(1, -1),
        "bn2_g": params["bn2_g"][perm].reshape(1, -1),
        "bn2_b": params["bn2_b"][perm].reshape(1, -1),
        "dc1_w": _pack_deconv_weight(params["dc1_w"]),            # (9*hidden, 4*64)
        "dc1_b": jnp.tile(params["dc1_b"], 4).reshape(1, -1),     # (1, 4*64)
        "bn3_g": params["bn3_g"].reshape(1, -1),                  # (1, 64)
        "bn3_b": params["bn3_b"].reshape(1, -1),
        "dc2_w": _pack_deconv_weight(params["dc2_w"]).T,          # (4*out, 9*64)
        "dc2_b": jnp.tile(params["dc2_b"], 4).reshape(-1, 1),     # (4*out, 1)
    }


# -----------------------------------------------------------------------------
# Thin XLA glue: shared 3x3 im2col for the stride-2 k=4 p=1 transposed conv
# -----------------------------------------------------------------------------
def _im2col_nhwc(x):                       # (N, H, W, C) -> (N*H*W, 9*C)
    n, h, w, c = x.shape
    xp = jnp.pad(x, ((0, 0), (1, 1), (1, 1), (0, 0)))
    cols = [xp[:, 1 + dy:1 + dy + h, 1 + dx:1 + dx + w, :] for dy, dx in _OFFSETS]
    return jnp.concatenate(cols, axis=-1).reshape(n * h * w, 9 * c)


def _im2col_cmajor(x):                     # (C, N, H, W) -> (9*C, N*H*W)
    c, n, h, w = x.shape
    xp = jnp.pad(x, ((0, 0), (0, 0), (1, 1), (1, 1)))
    rows = [xp[:, :, 1 + dy:1 + dy + h, 1 + dx:1 + dx + w] for dy, dx in _OFFSETS]
    return jnp.stack(rows, axis=0).reshape(9 * c, n * h * w)


# -----------------------------------------------------------------------------
# Generator forward (Pallas path)
# -----------------------------------------------------------------------------
def generator_forward(z, p, *, hidden, input_size, output_dim):
    b = z.shape[0]
    s4 = input_size // 4
    s2 = input_size // 2
    c1 = p["bn3_g"].shape[1]                                 # 64

    # fc1 -> BN1 -> ReLU -> fc2 -> BN2 -> ReLU, one kernel, NHWC-ordered output
    h = fc_fused(z, p)                                       # (B, s4*s4*hidden)

    # deconv1 + BN3 + ReLU: one lane-dense matmul kernel over a shared im2col
    x0 = h.reshape(b, s4, s4, hidden)                        # NHWC
    p1 = _im2col_nhwc(x0)                                    # (B*s4*s4, 9*hidden)
    y1 = deconv1_bn_relu(p1, p["dc1_w"], p["dc1_b"], p["bn3_g"], p["bn3_b"])  # (B*s4*s4, 4*c1)

    # subpixel interleave -> channel-major feature map, then im2col for deconv2
    x1 = (y1.reshape(b, s4, s4, 2, 2, c1)
            .transpose(5, 0, 1, 3, 2, 4)
            .reshape(c1, b, s2, s2))                         # (C1, N, 2*s4, 2*s4)
    p2 = _im2col_cmajor(x1)                                  # (9*c1, B*s2*s2)

    # deconv2 + tanh, output transposed (rows = subpixel groups, lanes = spatial)
    y2 = deconv2_tanh(p["dc2_w"], p2, p["dc2_b"])            # (4*out, B*s2*s2)

    # final subpixel interleave straight into NCHW
    out = (y2.reshape(2, 2, output_dim, b, s2, s2)
             .transpose(3, 2, 4, 0, 5, 1)
             .reshape(b, output_dim, input_size, input_size))
    return out


# -----------------------------------------------------------------------------
# Pure-JAX reference (numerical verification only)
# -----------------------------------------------------------------------------
def reference_forward(z, params, hidden, input_size):
    eps = 1e-5
    hp = jax.lax.Precision.HIGHEST

    def bn(x, g, b, axes, shape):
        mean = jnp.mean(x, axis=axes, keepdims=True)
        var = jnp.mean(jnp.square(x - mean), axis=axes, keepdims=True)
        return (x - mean) / jnp.sqrt(var + eps) * g.reshape(shape) + b.reshape(shape)

    def convT(x, w, b):  # x NCHW, w (Cin,Cout,4,4)
        w_oihw = jnp.transpose(w[:, :, ::-1, ::-1], (1, 0, 2, 3))
        y = jax.lax.conv_general_dilated(
            x, w_oihw, window_strides=(1, 1), padding=[(2, 2), (2, 2)],
            lhs_dilation=(2, 2), dimension_numbers=("NCHW", "OIHW", "NCHW"),
            precision=hp)
        return y + b.reshape(1, -1, 1, 1)

    h = jnp.dot(z, params["fc1_w"], precision=hp) + params["fc1_b"]
    h = jnp.maximum(bn(h, params["bn1_g"], params["bn1_b"], 0, (1, -1)), 0.0)
    h = jnp.dot(h, params["fc2_w"], precision=hp) + params["fc2_b"]
    h = jnp.maximum(bn(h, params["bn2_g"], params["bn2_b"], 0, (1, -1)), 0.0)
    s4 = input_size // 4
    x = h.reshape(-1, hidden, s4, s4)
    x = convT(x, params["dc1_w"], params["dc1_b"])
    x = jnp.maximum(bn(x, params["bn3_g"], params["bn3_b"], (0, 2, 3), (1, -1, 1, 1)), 0.0)
    x = convT(x, params["dc2_w"], params["dc2_b"])
    return jnp.tanh(x)


# -----------------------------------------------------------------------------
if __name__ == "__main__":
    B, INPUT_DIM, OUTPUT_DIM, INPUT_SIZE, HIDDEN = 4, 16, 1, 16, 32
    s4 = INPUT_SIZE // 4
    fc2_dim = HIDDEN * s4 * s4

    key = jax.random.PRNGKey(0)
    keys = jax.random.split(key, 8)

    def nrm(k, shape, std=0.02):
        return std * jax.random.normal(k, shape, dtype=jnp.float32)

    # Deterministic init mimicking utils.initialize_weights:
    #   conv/linear weight ~ N(0, 0.02), bias = 0; BN gamma ~ N(1, 0.02), beta = 0.
    params = {
        "fc1_w": nrm(keys[0], (INPUT_DIM, 1024)),
        "fc1_b": jnp.zeros((1024,), jnp.float32),
        "bn1_g": 1.0 + nrm(keys[1], (1024,)),
        "bn1_b": jnp.zeros((1024,), jnp.float32),
        "fc2_w": nrm(keys[2], (1024, fc2_dim)),
        "fc2_b": jnp.zeros((fc2_dim,), jnp.float32),
        "bn2_g": 1.0 + nrm(keys[3], (fc2_dim,)),
        "bn2_b": jnp.zeros((fc2_dim,), jnp.float32),
        "dc1_w": nrm(keys[4], (HIDDEN, 64, 4, 4)),
        "dc1_b": jnp.zeros((64,), jnp.float32),
        "bn3_g": 1.0 + nrm(keys[5], (64,)),
        "bn3_b": jnp.zeros((64,), jnp.float32),
        "dc2_w": nrm(keys[6], (64, OUTPUT_DIM, 4, 4)),
        "dc2_b": jnp.zeros((OUTPUT_DIM,), jnp.float32),
    }

    z = jax.random.normal(keys[7], (B, INPUT_DIM), dtype=jnp.float32)

    prep = prepare_params(params, HIDDEN, INPUT_SIZE)
    fwd = jax.jit(functools.partial(generator_forward, hidden=HIDDEN,
                                    input_size=INPUT_SIZE, output_dim=OUTPUT_DIM))
    out = fwd(z, prep)
    out = jax.block_until_ready(out)
    assert out.shape == (B, OUTPUT_DIM, INPUT_SIZE, INPUT_SIZE), out.shape

    ref = reference_forward(z, params, hidden=HIDDEN, input_size=INPUT_SIZE)
    np.testing.assert_allclose(np.asarray(out), np.asarray(ref), rtol=1e-2, atol=1e-2)

    print("KERNEL_OK")
</pallas_src>

<mosaic_0001>
module attributes {stable_mosaic.version = 11 : i64} {
  func.func @_fc_fused_kernel(%arg0: memref<4x16xf32, #tpu.memory_space<vmem>>, %arg1: memref<16x1024xf32, #tpu.memory_space<vmem>>, %arg2: memref<1x1024xf32, #tpu.memory_space<vmem>>, %arg3: memref<1x1024xf32, #tpu.memory_space<vmem>>, %arg4: memref<1x1024xf32, #tpu.memory_space<vmem>>, %arg5: memref<1024x512xf32, #tpu.memory_space<vmem>>, %arg6: memref<1x512xf32, #tpu.memory_space<vmem>>, %arg7: memref<1x512xf32, #tpu.memory_space<vmem>>, %arg8: memref<1x512xf32, #tpu.memory_space<vmem>>, %arg9: memref<4x512xf32, #tpu.memory_space<vmem>>) attributes {dimension_semantics = [], scalar_prefetch = 0 : i64, scratch_operands = 0 : i64, tpu.core_type = #tpu.core_type<tc>} {
    %c0 = arith.constant 0 : index
    %c0_0 = arith.constant 0 : index
    %0 = vector.load %arg0[%c0, %c0_0] : memref<4x16xf32, #tpu.memory_space<vmem>>, vector<4x16xf32>
    %c0_1 = arith.constant 0 : index
    %c0_2 = arith.constant 0 : index
    %1 = vector.load %arg1[%c0_1, %c0_2] : memref<16x1024xf32, #tpu.memory_space<vmem>>, vector<16x1024xf32>
    %cst = arith.constant dense<0.000000e+00> : vector<4x1024xf32>
    %2 = tpu.matmul %0, %1, %cst {dimension_numbers = #tpu.dot_dimension_numbers<[1], [0], [0], [1], [0, 0, 1, 1], [], []>} : vector<4x16xf32>, vector<16x1024xf32>, vector<4x1024xf32> -> vector<4x1024xf32>
    %c0_3 = arith.constant 0 : index
    %c0_4 = arith.constant 0 : index
    %3 = vector.load %arg2[%c0_3, %c0_4] : memref<1x1024xf32, #tpu.memory_space<vmem>>, vector<1x1024xf32>
    %4 = vector.broadcast %3 : vector<1x1024xf32> to vector<4x1024xf32>
    %5 = arith.addf %2, %4 : vector<4x1024xf32>
    %c0_5 = arith.constant 0 : index
    %c0_6 = arith.constant 0 : index
    %6 = vector.load %arg3[%c0_5, %c0_6] : memref<1x1024xf32, #tpu.memory_space<vmem>>, vector<1x1024xf32>
    %c0_7 = arith.constant 0 : index
    %c0_8 = arith.constant 0 : index
    %7 = vector.load %arg4[%c0_7, %c0_8] : memref<1x1024xf32, #tpu.memory_space<vmem>>, vector<1x1024xf32>
    %cst_9 = arith.constant dense<0.000000e+00> : vector<1024xf32>
    %8 = vector.multi_reduction <add>, %5, %cst_9 [0] : vector<4x1024xf32> to vector<1024xf32>
    %9 = vector.shape_cast %8 : vector<1024xf32> to vector<1x1024xf32>
    %cst_10 = arith.constant 4.000000e+00 : f32
    %10 = vector.broadcast %cst_10 : f32 to vector<1x1024xf32>
    %11 = arith.divf %9, %10 : vector<1x1024xf32>
    %12 = vector.broadcast %11 : vector<1x1024xf32> to vector<4x1024xf32>
    %13 = arith.subf %5, %12 : vector<4x1024xf32>
    %14 = arith.mulf %13, %13 : vector<4x1024xf32>
    %cst_11 = arith.constant dense<0.000000e+00> : vector<1024xf32>
    %15 = vector.multi_reduction <add>, %14, %cst_11 [0] : vector<4x1024xf32> to vector<1024xf32>
    %16 = vector.shape_cast %15 : vector<1024xf32> to vector<1x1024xf32>
    %cst_12 = arith.constant 4.000000e+00 : f32
    %17 = vector.broadcast %cst_12 : f32 to vector<1x1024xf32>
    %18 = arith.divf %16, %17 : vector<1x1024xf32>
    %19 = vector.broadcast %11 : vector<1x1024xf32> to vector<4x1024xf32>
    %20 = arith.subf %5, %19 : vector<4x1024xf32>
    %cst_13 = arith.constant 9.99999974E-6 : f32
    %21 = vector.broadcast %cst_13 : f32 to vector<1x1024xf32>
    %22 = arith.addf %18, %21 : vector<1x1024xf32>
    %23 = math.rsqrt %22 : vector<1x1024xf32>
    %24 = vector.broadcast %23 : vector<1x1024xf32> to vector<4x1024xf32>
    %25 = arith.mulf %20, %24 : vector<4x1024xf32>
    %26 = vector.broadcast %6 : vector<1x1024xf32> to vector<4x1024xf32>
    %27 = arith.mulf %25, %26 : vector<4x1024xf32>
    %28 = vector.broadcast %7 : vector<1x1024xf32> to vector<4x1024xf32>
    %29 = arith.addf %27, %28 : vector<4x1024xf32>
    %cst_14 = arith.constant 0.000000e+00 : f32
    %30 = vector.broadcast %cst_14 : f32 to vector<4x1024xf32>
    %31 = arith.maximumf %29, %30 : vector<4x1024xf32>
    %c0_15 = arith.constant 0 : index
    %c0_16 = arith.constant 0 : index
    %32 = vector.load %arg5[%c0_15, %c0_16] : memref<1024x512xf32, #tpu.memory_space<vmem>>, vector<1024x512xf32>
    %cst_17 = arith.constant dense<0.000000e+00> : vector<4x512xf32>
    %33 = tpu.matmul %31, %32, %cst_17 {dimension_numbers = #tpu.dot_dimension_numbers<[1], [0], [0], [1], [0, 0, 1, 1], [], []>} : vector<4x1024xf32>, vector<1024x512xf32>, vector<4x512xf32> -> vector<4x512xf32>
    %c0_18 = arith.constant 0 : index
    %c0_19 = arith.constant 0 : index
    %34 = vector.load %arg6[%c0_18, %c0_19] : memref<1x512xf32, #tpu.memory_space<vmem>>, vector<1x512xf32>
    %35 = vector.broadcast %34 : vector<1x512xf32> to vector<4x512xf32>
    %36 = arith.addf %33, %35 : vector<4x512xf32>
    %c0_20 = arith.constant 0 : index
    %c0_21 = arith.constant 0 : index
    %37 = vector.load %arg7[%c0_20, %c0_21] : memref<1x512xf32, #tpu.memory_space<vmem>>, vector<1x512xf32>
    %c0_22 = arith.constant 0 : index
    %c0_23 = arith.constant 0 : index
    %38 = vector.load %arg8[%c0_22, %c0_23] : memref<1x512xf32, #tpu.memory_space<vmem>>, vector<1x512xf32>
    %cst_24 = arith.constant dense<0.000000e+00> : vector<512xf32>
    %39 = vector.multi_reduction <add>, %36, %cst_24 [0] : vector<4x512xf32> to vector<512xf32>
    %40 = vector.shape_cast %39 : vector<512xf32> to vector<1x512xf32>
    %cst_25 = arith.constant 4.000000e+00 : f32
    %41 = vector.broadcast %cst_25 : f32 to vector<1x512xf32>
    %42 = arith.divf %40, %41 : vector<1x512xf32>
    %43 = vector.broadcast %42 : vector<1x512xf32> to vector<4x512xf32>
    %44 = arith.subf %36, %43 : vector<4x512xf32>
    %45 = arith.mulf %44, %44 : vector<4x512xf32>
    %cst_26 = arith.constant dense<0.000000e+00> : vector<512xf32>
    %46 = vector.multi_reduction <add>, %45, %cst_26 [0] : vector<4x512xf32> to vector<512xf32>
    %47 = vector.shape_cast %46 : vector<512xf32> to vector<1x512xf32>
    %cst_27 = arith.constant 4.000000e+00 : f32
    %48 = vector.broadcast %cst_27 : f32 to vector<1x512xf32>
    %49 = arith.divf %47, %48 : vector<1x512xf32>
    %50 = vector.broadcast %42 : vector<1x512xf32> to vector<4x512xf32>
    %51 = arith.subf %36, %50 : vector<4x512xf32>
    %cst_28 = arith.constant 9.99999974E-6 : f32
    %52 = vector.broadcast %cst_28 : f32 to vector<1x512xf32>
    %53 = arith.addf %49, %52 : vector<1x512xf32>
    %54 = math.rsqrt %53 : vector<1x512xf32>
    %55 = vector.broadcast %54 : vector<1x512xf32> to vector<4x512xf32>
    %56 = arith.mulf %51, %55 : vector<4x512xf32>
    %57 = vector.broadcast %37 : vector<1x512xf32> to vector<4x512xf32>
    %58 = arith.mulf %56, %57 : vector<4x512xf32>
    %59 = vector.broadcast %38 : vector<1x512xf32> to vector<4x512xf32>
    %60 = arith.addf %58, %59 : vector<4x512xf32>
    %cst_29 = arith.constant 0.000000e+00 : f32
    %61 = vector.broadcast %cst_29 : f32 to vector<4x512xf32>
    %62 = arith.maximumf %60, %61 : vector<4x512xf32>
    %c0_30 = arith.constant 0 : index
    %c0_31 = arith.constant 0 : index
    %63 = vector.load %arg9[%c0_30, %c0_31] : memref<4x512xf32, #tpu.memory_space<vmem>>, vector<4x512xf32>
    tpu.vector_store %arg9[%c0_30, %c0_31], %62 {strides = array<i32>} : memref<4x512xf32, #tpu.memory_space<vmem>>, vector<4x512xf32>,
    return
  }
}

module attributes {stable_mosaic.version = 11 : i64} {
  func.func @_deconv_bn_relu_kernel(%arg0: memref<64x288xf32, #tpu.memory_space<vmem>>, %arg1: memref<288x256xf32, #tpu.memory_space<vmem>>, %arg2: memref<1x256xf32, #tpu.memory_space<vmem>>, %arg3: memref<1x64xf32, #tpu.memory_space<vmem>>, %arg4: memref<1x64xf32, #tpu.memory_space<vmem>>, %arg5: memref<64x256xf32, #tpu.memory_space<vmem>>) attributes {dimension_semantics = [], scalar_prefetch = 0 : i64, scratch_operands = 0 : i64, tpu.core_type = #tpu.core_type<tc>} {
    %c0 = arith.constant 0 : index
    %c0_0 = arith.constant 0 : index
    %0 = vector.load %arg0[%c0, %c0_0] : memref<64x288xf32, #tpu.memory_space<vmem>>, vector<64x288xf32>
    %c0_1 = arith.constant 0 : index
    %c0_2 = arith.constant 0 : index
    %1 = vector.load %arg1[%c0_1, %c0_2] : memref<288x256xf32, #tpu.memory_space<vmem>>, vector<288x256xf32>
    %cst = arith.constant dense<0.000000e+00> : vector<64x256xf32>
    %2 = tpu.matmul %0, %1, %cst {dimension_numbers = #tpu.dot_dimension_numbers<[1], [0], [0], [1], [0, 0, 1, 1], [], []>} : vector<64x288xf32>, vector<288x256xf32>, vector<64x256xf32> -> vector<64x256xf32>
    %c0_3 = arith.constant 0 : index
    %c0_4 = arith.constant 0 : index
    %3 = vector.load %arg2[%c0_3, %c0_4] : memref<1x256xf32, #tpu.memory_space<vmem>>, vector<1x256xf32>
    %4 = vector.broadcast %3 : vector<1x256xf32> to vector<64x256xf32>
    %5 = arith.addf %2, %4 : vector<64x256xf32>
    %6 = vector.extract_strided_slice %5 {offsets = [0, 0], sizes = [64, 64], strides = [1, 1]} : vector<64x256xf32> to vector<64x64xf32>
    %7 = vector.extract_strided_slice %5 {offsets = [0, 64], sizes = [64, 64], strides = [1, 1]} : vector<64x256xf32> to vector<64x64xf32>
    %8 = vector.extract_strided_slice %5 {offsets = [0, 128], sizes = [64, 64], strides = [1, 1]} : vector<64x256xf32> to vector<64x64xf32>
    %9 = vector.extract_strided_slice %5 {offsets = [0, 192], sizes = [64, 64], strides = [1, 1]} : vector<64x256xf32> to vector<64x64xf32>
    %10 = arith.addf %6, %7 : vector<64x64xf32>
    %11 = arith.addf %10, %8 : vector<64x64xf32>
    %12 = arith.addf %11, %9 : vector<64x64xf32>
    %cst_5 = arith.constant dense<0.000000e+00> : vector<64xf32>
    %13 = vector.multi_reduction <add>, %12, %cst_5 [0] : vector<64x64xf32> to vector<64xf32>
    %14 = vector.shape_cast %13 : vector<64xf32> to vector<1x64xf32>
    %cst_6 = arith.constant 2.560000e+02 : f32
    %15 = vector.broadcast %cst_6 : f32 to vector<1x64xf32>
    %16 = arith.divf %14, %15 : vector<1x64xf32>
    %17 = vector.broadcast %16 : vector<1x64xf32> to vector<64x64xf32>
    %18 = arith.subf %6, %17 : vector<64x64xf32>
    %19 = arith.mulf %18, %18 : vector<64x64xf32>
    %cst_7 = arith.constant 0.000000e+00 : f32
    %20 = vector.broadcast %cst_7 : f32 to vector<64x64xf32>
    %21 = arith.addf %20, %19 : vector<64x64xf32>
    %22 = vector.broadcast %16 : vector<1x64xf32> to vector<64x64xf32>
    %23 = arith.subf %7, %22 : vector<64x64xf32>
    %24 = arith.mulf %23, %23 : vector<64x64xf32>
    %25 = arith.addf %21, %24 : vector<64x64xf32>
    %26 = vector.broadcast %16 : vector<1x64xf32> to vector<64x64xf32>
    %27 = arith.subf %8, %26 : vector<64x64xf32>
    %28 = arith.mulf %27, %27 : vector<64x64xf32>
    %29 = arith.addf %25, %28 : vector<64x64xf32>
    %30 = vector.broadcast %16 : vector<1x64xf32> to vector<64x64xf32>
    %31 = arith.subf %9, %30 : vector<64x64xf32>
    %32 = arith.mulf %31, %31 : vector<64x64xf32>
    %33 = arith.addf %29, %32 : vector<64x64xf32>
    %cst_8 = arith.constant dense<0.000000e+00> : vector<64xf32>
    %34 = vector.multi_reduction <add>, %33, %cst_8 [0] : vector<64x64xf32> to vector<64xf32>
    %35 = vector.shape_cast %34 : vector<64xf32> to vector<1x64xf32>
    %cst_9 = arith.constant 2.560000e+02 : f32
    %36 = vector.broadcast %cst_9 : f32 to vector<1x64xf32>
    %37 = arith.divf %35, %36 : vector<1x64xf32>
    %c0_10 = arith.constant 0 : index
    %c0_11 = arith.constant 0 : index
    %38 = vector.load %arg3[%c0_10, %c0_11] : memref<1x64xf32, #tpu.memory_space<vmem>>, vector<1x64xf32>
    %cst_12 = arith.constant 9.99999974E-6 : f32
    %39 = vector.broadcast %cst_12 : f32 to vector<1x64xf32>
    %40 = arith.addf %37, %39 : vector<1x64xf32>
    %41 = math.rsqrt %40 : vector<1x64xf32>
    %42 = arith.mulf %38, %41 : vector<1x64xf32>
    %c0_13 = arith.constant 0 : index
    %c0_14 = arith.constant 0 : index
    %43 = vector.load %arg4[%c0_13, %c0_14] : memref<1x64xf32, #tpu.memory_space<vmem>>, vector<1x64xf32>
    %44 = arith.mulf %16, %42 : vector<1x64xf32>
    %45 = arith.subf %43, %44 : vector<1x64xf32>
    %46 = tpu.concatenate %42, %42, %42, %42 in 1 : vector<1x64xf32>, vector<1x64xf32>, vector<1x64xf32>, vector<1x64xf32> -> vector<1x256xf32>
    %47 = tpu.concatenate %45, %45, %45, %45 in 1 : vector<1x64xf32>, vector<1x64xf32>, vector<1x64xf32>, vector<1x64xf32> -> vector<1x256xf32>
    %48 = vector.broadcast %46 : vector<1x256xf32> to vector<64x256xf32>
    %49 = arith.mulf %5, %48 : vector<64x256xf32>
    %50 = vector.broadcast %47 : vector<1x256xf32> to vector<64x256xf32>
    %51 = arith.addf %49, %50 : vector<64x256xf32>
    %cst_15 = arith.constant 0.000000e+00 : f32
    %52 = vector.broadcast %cst_15 : f32 to vector<64x256xf32>
    %53 = arith.maximumf %51, %52 : vector<64x256xf32>
    %c0_16 = arith.constant 0 : index
    %c0_17 = arith.constant 0 : index
    %54 = vector.load %arg5[%c0_16, %c0_17] : memref<64x256xf32, #tpu.memory_space<vmem>>, vector<64x256xf32>
    tpu.vector_store %arg5[%c0_16, %c0_17], %53 {strides = array<i32>} : memref<64x256xf32, #tpu.memory_space<vmem>>, vector<64x256xf32>,
    return
  }
}

module attributes {stable_mosaic.version = 11 : i64} {
  func.func @_deconv_tanh_kernel(%arg0: memref<4x576xf32, #tpu.memory_space<vmem>>, %arg1: memref<576x256xf32, #tpu.memory_space<vmem>>, %arg2: memref<4x1xf32, #tpu.memory_space<vmem>>, %arg3: memref<4x256xf32, #tpu.memory_space<vmem>>) attributes {dimension_semantics = [], scalar_prefetch = 0 : i64, scratch_operands = 0 : i64, tpu.core_type = #tpu.core_type<tc>} {
    %c0 = arith.constant 0 : index
    %c0_0 = arith.constant 0 : index
    %0 = vector.load %arg0[%c0, %c0_0] : memref<4x576xf32, #tpu.memory_space<vmem>>, vector<4x576xf32>
    %c0_1 = arith.constant 0 : index
    %c0_2 = arith.constant 0 : index
    %1 = vector.load %arg1[%c0_1, %c0_2] : memref<576x256xf32, #tpu.memory_space<vmem>>, vector<576x256xf32>
    %cst = arith.constant dense<0.000000e+00> : vector<4x256xf32>
    %2 = tpu.matmul %0, %1, %cst {dimension_numbers = #tpu.dot_dimension_numbers<[1], [0], [0], [1], [0, 0, 1, 1], [], []>} : vector<4x576xf32>, vector<576x256xf32>, vector<4x256xf32> -> vector<4x256xf32>
    %c0_3 = arith.constant 0 : index
    %c0_4 = arith.constant 0 : index
    %3 = vector.load %arg2[%c0_3, %c0_4] : memref<4x1xf32, #tpu.memory_space<vmem>>, vector<4x1xf32>
    %4 = vector.broadcast %3 : vector<4x1xf32> to vector<4x256xf32>
    %5 = arith.addf %2, %4 : vector<4x256xf32>
    %6 = math.tanh %5 : vector<4x256xf32>
    %c0_5 = arith.constant 0 : index
    %c0_6 = arith.constant 0 : index
    %7 = vector.load %arg3[%c0_5, %c0_6] : memref<4x256xf32, #tpu.memory_space<vmem>>, vector<4x256xf32>
    tpu.vector_store %arg3[%c0_5, %c0_6], %6 {strides = array<i32>} : memref<4x256xf32, #tpu.memory_space<vmem>>, vector<4x256xf32>,
    return
  }
}

</mosaic_0001>

<bundles_post_ra>
// kernel: generator_forward.4
= control target key start
LH: loop header
LB: loop body
LE: loop exit
PB: predicated region body
PF: predicated region fallthrough
CT: control target
= control target key end

     0   :  { %v790_v3 = vmov 0.0   ;;  %vm128_vm0 = vcmask 261120   ;;  %vm467_vm1 = vcmask 523264   ;;  %s1385_s1 = inlined_call_operand.vmem [shape: f32[288,256], index: 1, kind: input, shape index: {}]   ;;  %s1386_s0 = inlined_call_operand.vmem [shape: f32[64,288], index: 0, kind: input, shape index: {}]   ;;  %s1387_s2 = inlined_call_operand.vmem [shape: f32[1,256], index: 2, kind: input, shape index: {}]   ;;  %s1388_s3 = inlined_call_operand.vmem [shape: f32[1,64], index: 3, kind: input, shape index: {}]   ;;  %s1389_s4 = inlined_call_operand.vmem [shape: f32[1,64], index: 4, kind: input, shape index: {}]   ;;  %s1390_s5 = inlined_call_operand.vmem [shape: f32[64,256], index: 5, kind: output, shape index: {}]  }
   0x1   :  { %v75_v0 = vld [vmem:[%s1385_s1 + $0xf8] sm:$0xff]  ;;  %v74_v1 = vld [vmem:[%s1385_s1 + $0xf0] sm:$0xff]  ;;  %v73_v2 = vld [vmem:[%s1385_s1 + $0xe8] sm:$0xff]  ;;  %330 = vmatprep.mubr.f32.mxu1 %v790_v3 }
   0x2   :  { %153 = vmatprep.subr.mxu0 %v75_v0  ;;  %v72_v4 = vld [vmem:[%s1385_s1 + $0xe0] sm:$0xff]  ;;  %v71_v5 = vld [vmem:[%s1385_s1 + $0xd8] sm:$0xff]  ;;  %v70_v6 = vld [vmem:[%s1385_s1 + $0xd0] sm:$0xff] }
   0x3   :  { %154 = vmatpush1.msra.mxu0 %v74_v1  ;;  %v69_v7 = vld [vmem:[%s1385_s1 + $0xc8] sm:$0xff]  ;;  %v68_v8 = vld [vmem:[%s1385_s1 + $0xc0] sm:$0xff]  ;;  %v67_v9 = vld [vmem:[%s1385_s1 + $0xb8] sm:$0xff] }
   0x4   :  { %155 = vmatprep.subr.mxu0 %v73_v2  ;;  %v66_v10 = vld [vmem:[%s1385_s1 + $0xb0] sm:$0xff]  ;;  %v65_v11 = vld [vmem:[%s1385_s1 + $0xa8] sm:$0xff]  ;;  %v64_v12 = vld [vmem:[%s1385_s1 + $0xa0] sm:$0xff] }
   0x5   :  { %156 = vmatpush1.msra.mxu0 %v72_v4  ;;  %v63_v13 = vld [vmem:[%s1385_s1 + $0x98] sm:$0xff]  ;;  %v62_v14 = vld [vmem:[%s1385_s1 + $0x90] sm:$0xff]  ;;  %v61_v15 = vld [vmem:[%s1385_s1 + $0x88] sm:$0xff] }
   0x6   :  { %157 = vmatprep.subr.mxu0 %v71_v5  ;;  %v60_v16 = vld [vmem:[%s1385_s1 + $0x80] sm:$0xff]  ;;  %v59_v17 = vld [vmem:[%s1385_s1 + $0x78] sm:$0xff]  ;;  %v58_v18 = vld [vmem:[%s1385_s1 + $0x70] sm:$0xff] }
   0x7   :  { %158 = vmatpush1.msra.mxu0 %v70_v6  ;;  %v57_v19 = vld [vmem:[%s1385_s1 + $0x68] sm:$0xff]  ;;  %v56_v20 = vld [vmem:[%s1385_s1 + $0x60] sm:$0xff]  ;;  %v55_v21 = vld [vmem:[%s1385_s1 + $0x58] sm:$0xff] }
   0x8   :  { %159 = vmatprep.subr.mxu0 %v69_v7  ;;  %v54_v22 = vld [vmem:[%s1385_s1 + $0x50] sm:$0xff]  ;;  %v115_v23 = vld [vmem:[%s1385_s1 + $0x238] sm:$0xff]  ;;  %v53_v25 = vld [vmem:[%s1385_s1 + $0x48] sm:$0xff] }
   0x9   :  { %160 = vmatpush1.msra.mxu0 %v68_v8  ;;  %v114_v24 = vld [vmem:[%s1385_s1 + $0x230] sm:$0xff]  ;;  %290 = vmatprep.subr.mxu1 %v115_v23  ;;  %v113_v26 = vld [vmem:[%s1385_s1 + $0x228] sm:$0xff]  ;;  %v52_v27 = vld [vmem:[%s1385_s1 + $0x40] sm:$0xff] }
   0xa   :  { %161 = vmatprep.subr.mxu0 %v67_v9  ;;  %291 = vmatpush1.msra.mxu1 %v114_v24  ;;  %v112_v28 = vld [vmem:[%s1385_s1 + $0x220] sm:$0xff]  ;;  %v111_v29 = vld [vmem:[%s1385_s1 + $0x218] sm:$0xff]  ;;  %v110_v31 = vld [vmem:[%s1385_s1 + $0x210] sm:$0xff] }
   0xb   :  { %162 = vmatpush1.msra.mxu0 %v66_v10  ;;  %v51_v30 = vld [vmem:[%s1385_s1 + $0x38] sm:$0xff]  ;;  %292 = vmatprep.subr.mxu1 %v113_v26  ;;  %v50_v32 = vld [vmem:[%s1385_s1 + $0x30] sm:$0xff]  ;;  %v109_v33 = vld [vmem:[%s1385_s1 + $0x208] sm:$0xff] }
   0xc   :  { %163 = vmatprep.subr.mxu0 %v65_v11  ;;  %293 = vmatpush1.msra.mxu1 %v112_v28  ;;  %v49_v34 = vld [vmem:[%s1385_s1 + $0x28] sm:$0xff]  ;;  %v48_v36 = vld [vmem:[%s1385_s1 + $0x20] sm:$0xff]  ;;  %v47_v38 = vld [vmem:[%s1385_s1 + $0x18] sm:$0xff] }
   0xd   :  { %164 = vmatpush1.msra.mxu0 %v64_v12  ;;  %294 = vmatprep.subr.mxu1 %v111_v29  ;;  %v21_v35 = vld [vmem:[%s1386_s0 + $0x8] sm:$0xff]  ;;  %v108_v37 = vld [vmem:[%s1385_s1 + $0x200] sm:$0xff]  ;;  %v22_v39 = vld [vmem:[%s1386_s0 + $0x10] sm:$0xff] }
   0xe   :  { %165 = vmatprep.subr.mxu0 %v63_v13  ;;  %295 = vmatpush1.msra.mxu1 %v110_v31  ;;  %v46_v40 = vld [vmem:[%s1385_s1 + $0x10] sm:$0xff]  ;;  %v45_v41 = vld [vmem:[%s1385_s1 + $0x8] sm:$0xff]  ;;  %v44_v42 = vld [vmem:[%s1385_s1] sm:$0xff] }
   0xf   :  { %166 = vmatpush1.msra.mxu0 %v62_v14  ;;  %296 = vmatprep.subr.mxu1 %v109_v33  ;;  %v107_v43 = vld [vmem:[%s1385_s1 + $0x1f8] sm:$0xff]  ;;  %v25_v44 = vld [vmem:[%s1386_s0 + $0x28] sm:$0xff]  ;;  %v106_v45 = vld [vmem:[%s1385_s1 + $0x1f0] sm:$0xff] }
  0x10   :  { %167 = vmatprep.subr.mxu0 %v61_v15  ;;  %217 = vmatprep.mubr.f32.mxu0 %v21_v35  ;;  %v105_v46 = vld [vmem:[%s1385_s1 + $0x1e8] sm:$0xff]  ;;  %v104_v47 = vld [vmem:[%s1385_s1 + $0x1e0] sm:$0xff]  ;;  %v103_v48 = vld [vmem:[%s1385_s1 + $0x1d8] sm:$0xff] }
  0x11   :  { %168 = vmatpush1.msra.mxu0 %v60_v16  ;;  %297 = vmatpush1.msra.mxu1 %v108_v37  ;;  %v28_v49 = vld [vmem:[%s1386_s0 + $0x40] sm:$0xff]  ;;  %v102_v50 = vld [vmem:[%s1385_s1 + $0x1d0] sm:$0xff]  ;;  %v101_v51 = vld [vmem:[%s1385_s1 + $0x1c8] sm:$0xff] }
  0x12   :  { %169 = vmatprep.subr.mxu0 %v59_v17  ;;  %778 = vmatmul.mubr.msk.f32.vlgmr.msra.gmra.mxu1 %vm128_vm0, %v22_v39  ;;  %v100_v52 = vld [vmem:[%s1385_s1 + $0x1c0] sm:$0xff]  ;;  %v99_v53 = vld [vmem:[%s1385_s1 + $0x1b8] sm:$0xff]  ;;  %v98_v55 = vld [vmem:[%s1385_s1 + $0x1b0] sm:$0xff] }
  0x13   :  { %170 = vmatpush1.msra.mxu0 %v58_v18  ;;  %336 = vmatprep.mubr.f32.mxu1 %v790_v3  ;;  %v31_v54 = vld [vmem:[%s1386_s0 + $0x58] sm:$0xff]  ;;  %v97_v56 = vld [vmem:[%s1385_s1 + $0x1a8] sm:$0xff]  ;;  %v96_v57 = vld [vmem:[%s1385_s1 + $0x1a0] sm:$0xff] }
  0x14   :  { %171 = vmatprep.subr.mxu0 %v57_v19  ;;  %v95_v58 = vld [vmem:[%s1385_s1 + $0x198] sm:$0xff]  ;;  %v34_v59 = vld [vmem:[%s1386_s0 + $0x70] sm:$0xff]  ;;  %v93_v61 = vld [vmem:[%s1385_s1 + $0x188] sm:$0xff] }
  0x15   :  { %172 = vmatpush1.msra.mxu0 %v56_v20  ;;  %v94_v60 = vld [vmem:[%s1385_s1 + $0x190] sm:$0xff]  ;;  %v92_v62 = vld [vmem:[%s1385_s1 + $0x180] sm:$0xff]  ;;  %v91_v63 = vld [vmem:[%s1385_s1 + $0x178] sm:$0xff] }
  0x16   :  { %173 = vmatprep.subr.mxu0 %v55_v21  ;;  %779 = vmatmul.mubr.msk.f32.gmra.mxu1 %vm128_vm0, %v25_v44  ;;  %v37_v0 = vld [vmem:[%s1386_s0 + $0x88] sm:$0xff]  ;;  %v90_v1 = vld [vmem:[%s1385_s1 + $0x170] sm:$0xff]  ;;  %v88_v4 = vld [vmem:[%s1385_s1 + $0x160] sm:$0xff] }
  0x17   :  { %174 = vmatpush1.msra.mxu0 %v54_v22  ;;  %342 = vmatprep.mubr.f32.mxu1 %v790_v3  ;;  %v89_v2 = vld [vmem:[%s1385_s1 + $0x168] sm:$0xff]  ;;  %v87_v5 = vld [vmem:[%s1385_s1 + $0x158] sm:$0xff]  ;;  %v40_v6 = vld [vmem:[%s1386_s0 + $0xa0] sm:$0xff] }
  0x18   :  { %175 = vmatprep.subr.mxu0 %v53_v25  ;;  %v86_v7 = vld [vmem:[%s1385_s1 + $0x150] sm:$0xff]  ;;  %v85_v8 = vld [vmem:[%s1385_s1 + $0x148] sm:$0xff]  ;;  %v84_v9 = vld [vmem:[%s1385_s1 + $0x140] sm:$0xff] }
  0x19   :  { %176 = vmatpush1.msra.mxu0 %v52_v27  ;;  %v83_v10 = vld [vmem:[%s1385_s1 + $0x138] sm:$0xff]  ;;  %v82_v12 = vld [vmem:[%s1385_s1 + $0x130] sm:$0xff]  ;;  %v81_v13 = vld [vmem:[%s1385_s1 + $0x128] sm:$0xff] }
  0x1a   :  { %177 = vmatprep.subr.mxu0 %v51_v30  ;;  %780 = vmatmul.mubr.msk.f32.gmra.mxu1 %vm128_vm0, %v28_v49  ;;  %v43_v11 = vld [vmem:[%s1386_s0 + $0xb8] sm:$0xff]  ;;  %v80_v14 = vld [vmem:[%s1385_s1 + $0x120] sm:$0xff]  ;;  %v78_v15 = vld [vmem:[%s1385_s1 + $0x110] sm:$0xff] }
  0x1b   :  { %178 = vmatpush1.msra.mxu0 %v50_v32  ;;  %348 = vmatprep.mubr.f32.mxu1 %v790_v3  ;;  %v77_v16 = vld [vmem:[%s1385_s1 + $0x108] sm:$0xff]  ;;  %v76_v17 = vld [vmem:[%s1385_s1 + $0x100] sm:$0xff]  ;;  %v23_v20 = vld [vmem:[%s1386_s0 + $0x18] sm:$0xff] }
  0x1c   :  { %179 = vmatprep.subr.mxu0 %v49_v34  ;;  %v20_v18 = vld [vmem:[%s1386_s0] sm:$0xff]  ;;  %v27_v21 = vld [vmem:[%s1386_s0 + $0x38] sm:$0xff]  ;;  %v26_v22 = vld [vmem:[%s1386_s0 + $0x30] sm:$0xff] }
  0x1d   :  { %180 = vmatpush1.msra.mxu0 %v48_v36  ;;  %v24_v19 = vld [vmem:[%s1386_s0 + $0x20] sm:$0xff]  ;;  %v30_v23 = vld [vmem:[%s1386_s0 + $0x50] sm:$0xff]  ;;  %v29_v24 = vld [vmem:[%s1386_s0 + $0x48] sm:$0xff]  ;;  %v118_v36 = vlaneseq }
  0x1e   :  { %181 = vmatprep.subr.mxu0 %v47_v38  ;;  %781 = vmatmul.mubr.msk.f32.gmra.mxu1 %vm128_vm0, %v31_v54  ;;  %v33_v25 = vld [vmem:[%s1386_s0 + $0x68] sm:$0xff]  ;;  %v32_v26 = vld [vmem:[%s1386_s0 + $0x60] sm:$0xff]  ;;  %v35_v28 = vld [vmem:[%s1386_s0 + $0x78] sm:$0xff] }
  0x1f   :  { %182 = vmatpush1.msra.mxu0 %v46_v40  ;;  %354 = vmatprep.mubr.f32.mxu1 %v790_v3  ;;  %v36_v27 = vld [vmem:[%s1386_s0 + $0x80] sm:$0xff]  ;;  %v39_v29 = vld [vmem:[%s1386_s0 + $0x98] sm:$0xff]  ;;  %v38_v30 = vld [vmem:[%s1386_s0 + $0x90] sm:$0xff]  ;;  %v119_v38 = vshrl.u32 %v118_v36, 7 }
  0x20   :  { %183 = vmatprep.subr.mxu0 %v45_v41  ;;  %v42_v31 = vld [vmem:[%s1386_s0 + $0xb0] sm:$0xff]  ;;  %v41_v32 = vld [vmem:[%s1386_s0 + $0xa8] sm:$0xff]  ;;  %v116_v41 = vld [vmem:[%s1387_s2] sm:$0x3]  ;;  %s791_s0 = smov 64  }
  0x21   :  { %184 = vmatpush1.msra.mxu0 %v44_v42  ;;  %v1126_v40 = vsub.s32 0, %v119_v38 }
  0x22   :  { %185 = vmatprep.subr.mxu0 %v107_v43  ;;  %782 = vmatmul.mubr.msk.f32.gmra.mxu1 %vm128_vm0, %v34_v59  ;;  %v124_v43 = vsub.s32 1, %v119_v38 }
  0x23   :  { %186 = vmatpush2.msra.mxu0 %v106_v45  ;;  %360 = vmatprep.mubr.f32.mxu1 %v790_v3  ;;  %v121_v44 = vrot.slane %v116_v41, %v1126_v40 }
  0x24   :  { %187 = vmatprep.subr.mxu0 %v105_v46  ;;  %v1132_v46 = vrot.slane %v116_v41, %v124_v43 }
  0x25   :  { %188 = vmatpush2.msra.mxu0 %v104_v47 }
  0x26   :  { %189 = vmatprep.subr.mxu0 %v103_v48  ;;  %783 = vmatmul.mubr.msk.f32.gmra.mxu1 %vm128_vm0, %v37_v0 }
  0x27   :  { %190 = vmatpush2.msra.mxu0 %v102_v50  ;;  %366 = vmatprep.mubr.f32.mxu1 %v790_v3 }
  0x28   :  { %191 = vmatprep.subr.mxu0 %v101_v51 }
  0x29   :  { %192 = vmatpush2.msra.mxu0 %v100_v52 }
  0x2a   :  { %193 = vmatprep.subr.mxu0 %v99_v53  ;;  %784 = vmatmul.mubr.msk.f32.gmra.mxu1 %vm128_vm0, %v40_v6 }
  0x2b   :  { %194 = vmatpush2.msra.mxu0 %v98_v55  ;;  %372 = vmatprep.mubr.f32.mxu1 %v790_v3  ;;  %v79_v3 = vld [vmem:[%s1385_s1 + $0x118] sm:$0xff] }
  0x2c   :  { %195 = vmatprep.subr.mxu0 %v97_v56 }
  0x2d   :  { %196 = vmatpush2.msra.mxu0 %v96_v57 }
  0x2e   :  { %197 = vmatprep.subr.mxu0 %v95_v58  ;;  %785 = vmatmul.mubr.msk.f32.gmra.mxu1 %vm128_vm0, %v43_v11 }
  0x2f   :  { %198 = vmatpush2.msra.mxu0 %v94_v60 }
  0x30   :  { %199 = vmatprep.subr.mxu0 %v93_v61 }
  0x31   :  { %200 = vmatpush2.msra.mxu0 %v92_v62 }
  0x32   :  { %201 = vmatprep.subr.mxu0 %v91_v63 }
  0x33   :  { %202 = vmatpush2.msra.mxu0 %v90_v1 }
  0x34   :  { %203 = vmatprep.subr.mxu0 %v89_v2 }
  0x35   :  { %204 = vmatpush2.msra.mxu0 %v88_v4 }
  0x36   :  { %205 = vmatprep.subr.mxu0 %v87_v5 }
  0x37   :  { %206 = vmatpush2.msra.mxu0 %v86_v7 }
  0x38   :  { %207 = vmatprep.subr.mxu0 %v85_v8 }
  0x39   :  { %208 = vmatpush2.msra.mxu0 %v84_v9 }
  0x3a   :  { %209 = vmatprep.subr.mxu0 %v83_v10 }
  0x3b   :  { %210 = vmatpush2.msra.mxu0 %v82_v12 }
  0x3c   :  { %211 = vmatprep.subr.mxu0 %v81_v13 }
  0x3d   :  { %212 = vmatpush2.msra.mxu0 %v80_v14 }
  0x3e   :  { %213 = vmatprep.subr.mxu0 %v79_v3 }
  0x3f   :  { %214 = vmatpush2.msra.mxu0 %v78_v15 }
  0x40   :  { %215 = vmatprep.subr.mxu0 %v77_v16 }
  0x41   :  { %216 = vmatpush2.msra.mxu0 %v76_v17 }
  0x42   :  { %218 = vmatmul.mubr.f32.vlgmr.msra.gmra.mxu0 %v20_v18 }
  0x43   :  { %223 = vmatprep.mubr.f32.mxu0 %v24_v19 }
  0x46   :  { %224 = vmatmul.mubr.f32.gmra.mxu0 %v23_v20 }
  0x47   :  { %229 = vmatprep.mubr.f32.mxu0 %v27_v21 }
  0x4a   :  { %230 = vmatmul.mubr.f32.gmra.mxu0 %v26_v22 }
  0x4b   :  { %235 = vmatprep.mubr.f32.mxu0 %v30_v23 }
  0x4e   :  { %236 = vmatmul.mubr.f32.gmra.mxu0 %v29_v24 }
  0x4f   :  { %241 = vmatprep.mubr.f32.mxu0 %v33_v25 }
  0x52   :  { %242 = vmatmul.mubr.f32.gmra.mxu0 %v32_v26 }
  0x53   :  { %247 = vmatprep.mubr.f32.mxu0 %v36_v27 }
  0x56   :  { %248 = vmatmul.mubr.f32.gmra.mxu0 %v35_v28 }
  0x57   :  { %253 = vmatprep.mubr.f32.mxu0 %v39_v29 }
  0x5a   :  { %254 = vmatmul.mubr.f32.gmra.mxu0 %v38_v30 }
  0x5b   :  { %259 = vmatprep.mubr.f32.mxu0 %v42_v31 }
  0x5e   :  { %260 = vmatmul.mubr.f32.gmra.mxu0 %v41_v32 }
  0xd2   :  { %v332_v33 = vpop.f32.mrf.mxu1 }
  0xd4   :  { %v334_v34 = vpop.f32.mrf.mxu1 }
  0xd6   :  { %v338_v35 = vpop.f32.mrf.mxu1 }
  0xd8   :  { %v340_v37 = vpop.f32.mrf.mxu1 }
  0xda   :  { %v344_v39 = vpop.f32.mrf.mxu1 }
  0xdc   :  { %v346_v42 = vpop.f32.mrf.mxu1 }
  0xde   :  { %v350_v45 = vpop.f32.mrf.mxu1 }
  0xe0   :  { %v352_v50 = vpop.f32.mrf.mxu1 }
  0xe2   :  { %v356_v55 = vpop.f32.mrf.mxu1 }
  0xe4   :  { %v358_v63 = vpop.f32.mrf.mxu1 }
  0xe6   :  { %v362_v6 = vpop.f32.mrf.mxu1 }
  0xe8   :  { %v364_v12 = vpop.f32.mrf.mxu1 }
  0xea   :  { %v368_v18 = vpop.f32.mrf.mxu1 }
  0xec   :  { %v370_v25 = vpop.f32.mrf.mxu1 }
  0xee   :  { %v374_v31 = vpop.f32.mrf.mxu1 }
  0xf0   :  { %v376_v38 = vpop.f32.mrf.mxu1 }
 0x102   :  { %v219_v47 = vpop.f32.mrf.mxu0 }
 0x103   :  { %v220_v48 = vadd.f32 %v219_v47, %v121_v44 }
 0x104   :  { %v221_v49 = vpop.f32.mrf.mxu0 }
 0x105   :  { %v1134_v51 = vadd.f32 %v332_v33, %v220_v48  ;;  %v222_v52 = vadd.f32 %v221_v49, %v1132_v46 }
 0x106   :  { %v225_v53 = vpop.f32.mrf.mxu0 }
 0x107   :  { %387 = vrot.lane.b32.xlu0 %v1134_v51, %s791_s0  ;;  %v1139_v56 = vadd.f32 %v334_v34, %v222_v52  ;;  %v226_v57 = vadd.f32 %v225_v53, %v121_v44 }
 0x108   :  { %v227_v54 = vpop.f32.mrf.mxu0 }
 0x109   :  { %v228_v58 = vadd.f32 %v227_v54, %v1132_v46  ;;  %v1146_v0 = vadd.f32 %v338_v35, %v226_v57 }
 0x10a   :  { %v231_v59 = vpop.f32.mrf.mxu0 }
 0x10b   :  { %v1142_v60 = vadd.f32 %v340_v37, %v228_v58  ;;  %v232_v61 = vadd.f32 %v231_v59, %v121_v44  ;;  %435 = vrot.lane.b32.xlu0 %v1139_v56, %s791_s0 }
 0x10c   :  { %v233_v62 = vpop.f32.mrf.mxu0 }
 0x10d   :  { %437 = vrot.lane.b32.xlu1 %v1142_v60, %s791_s0  ;;  %v1150_v2 = vadd.f32 %v344_v39, %v232_v61  ;;  %v234_v4 = vadd.f32 %v233_v62, %v1132_v46 }
 0x10e   :  { %v237_v1 = vpop.f32.mrf.mxu0 }
 0x10f   :  { %389 = vrot.lane.b32.xlu0 %v1146_v0, %s791_s0  ;;  %v1157_v8 = vadd.f32 %v346_v42, %v234_v4  ;;  %v238_v9 = vadd.f32 %v237_v1, %v121_v44 }
 0x110   :  { %v239_v5 = vpop.f32.mrf.mxu0 }
 0x111   :  { %391 = vrot.lane.b32.xlu1 %v1150_v2, %s791_s0  ;;  %v1163_v3 = vadd.f32 %v350_v45, %v238_v9  ;;  %v240_v15 = vadd.f32 %v239_v5, %v1132_v46 }
 0x112   :  { %v243_v7 = vpop.f32.mrf.mxu0 }
 0x113   :  { %v244_v10 = vadd.f32 %v243_v7, %v121_v44  ;;  %v1172_v21 = vadd.f32 %v352_v50, %v240_v15 }
 0x114   :  { %v245_v11 = vpop.f32.mrf.mxu0 }
 0x115   :  { %v1159_v13 = vadd.f32 %v356_v55, %v244_v10  ;;  %439 = vrot.lane.b32.xlu1 %v1157_v8, %s791_s0  ;;  %v246_v22 = vadd.f32 %v245_v11, %v1132_v46 }
 0x116   :  { %v249_v14 = vpop.f32.mrf.mxu0 }
 0x117   :  { %v250_v16 = vadd.f32 %v249_v14, %v121_v44  ;;  %395 = vrot.lane.b32.xlu0 %v1159_v13, %s791_s0  ;;  %v1181_v28 = vadd.f32 %v358_v63, %v246_v22 }
 0x118   :  { %v251_v17 = vpop.f32.mrf.mxu0 }
 0x119   :  { %v1168_v19 = vadd.f32 %v362_v6, %v250_v16  ;;  %393 = vrot.lane.b32.xlu1 %v1163_v3, %s791_s0  ;;  %v252_v29 = vadd.f32 %v251_v17, %v1132_v46 }
 0x11a   :  { %v255_v20 = vpop.f32.mrf.mxu0 }
 0x11b   :  { %v256_v23 = vadd.f32 %v255_v20, %v121_v44  ;;  %397 = vrot.lane.b32.xlu0 %v1168_v19, %s791_s0  ;;  %v1191_v35 = vadd.f32 %v364_v12, %v252_v29 }
 0x11c   :  { %v257_v24 = vpop.f32.mrf.mxu0 }
 0x11d   :  { %v1177_v26 = vadd.f32 %v368_v18, %v256_v23  ;;  %441 = vrot.lane.b32.xlu1 %v1172_v21, %s791_s0  ;;  %v258_v33 = vadd.f32 %v257_v24, %v1132_v46 }
 0x11e   :  { %v261_v27 = vpop.f32.mrf.mxu0 }
 0x11f   :  { %v262_v30 = vadd.f32 %v261_v27, %v121_v44  ;;  %399 = vrot.lane.b32.xlu0 %v1177_v26, %s791_s0  ;;  %v1196_v37 = vadd.f32 %v370_v25, %v258_v33 }
 0x120   :  { %v263_v32 = vpop.f32.mrf.mxu0 }
 0x121   :  { %v1187_v34 = vadd.f32 %v374_v31, %v262_v30  ;;  %443 = vrot.lane.b32.xlu1 %v1181_v28, %s791_s0  ;;  %v264_v36 = vadd.f32 %v263_v32, %v1132_v46 }
 0x123   :  { %401 = vrot.lane.b32.xlu0 %v1187_v34, %s791_s0  ;;  %v1200_v39 = vadd.f32 %v376_v38, %v264_v36 }
 0x125   :  { %445 = vrot.lane.b32.xlu1 %v1191_v35, %s791_s0 }
 0x127   :  { %447 = vrot.lane.b32.xlu0 %v1196_v37, %s791_s0 }
 0x129   :  { %449 = vrot.lane.b32.xlu1 %v1200_v39, %s791_s0 }
 0x179   :  { %v388_v41 = vpop.permute.xlu0 %387 }
 0x17a   :  { %v411_v47 = vadd.f32 %v388_v41, %v1134_v51 }
 0x17c   :  { %v419_v52 = vadd.f32 %v411_v47, %v1139_v56 }
 0x17d   :  { %v436_v42 = vpop.permute.xlu0 %435 }
 0x17e   :  { %v459_v58 = vadd.f32 %v436_v42, %v419_v52 }
 0x17f   :  { %v438_v43 = vpop.permute.xlu1 %437 }
 0x180   :  { %v468_v6 = vsel %vm467_vm1, %v459_v58, 0.0 }
 0x181   :  { %v390_v44 = vpop.permute.xlu0 %389 }
 0x182   :  { %v412_v45 = vadd.f32 %v390_v44, %v1146_v0 }
 0x183   :  { %v392_v46 = vpop.permute.xlu1 %391 }
 0x184   :  { %v420_v48 = vadd.f32 %v412_v45, %v1142_v60  ;;  %v413_v49 = vadd.f32 %v392_v46, %v1150_v2 }
 0x186   :  { %v460_v54 = vadd.f32 %v438_v43, %v420_v48  ;;  %v421_v55 = vadd.f32 %v413_v49, %v1157_v8 }
 0x187   :  { %v440_v50 = vpop.permute.xlu1 %439 }
 0x188   :  { %v461_v62 = vadd.f32 %v440_v50, %v421_v55  ;;  %v469_v63 = vsel %vm467_vm1, %v460_v54, 0.0 }
 0x189   :  { %v396_v53 = vpop.permute.xlu0 %395  ;;  %v470_v9 = vadd.f32 %v469_v63, %v468_v6 }
 0x18a   :  { %v415_v1 = vadd.f32 %v396_v53, %v1159_v13  ;;  %v471_v11 = vsel %vm467_vm1, %v461_v62, 0.0 }
 0x18b   :  { %v394_v57 = vpop.permute.xlu1 %393  ;;  %v472_v20 = vadd.f32 %v471_v11, %v470_v9 }
 0x18c   :  { %v414_v59 = vadd.f32 %v394_v57, %v1163_v3  ;;  %v423_v14 = vadd.f32 %v415_v1, %v1181_v28 }
 0x18d   :  { %v398_v61 = vpop.permute.xlu0 %397 }
 0x18e   :  { %v422_v4 = vadd.f32 %v414_v59, %v1172_v21  ;;  %v416_v12 = vadd.f32 %v398_v61, %v1168_v19 }
 0x18f   :  { %v442_v5 = vpop.permute.xlu1 %441 }
 0x190   :  { %v462_v7 = vadd.f32 %v442_v5, %v422_v4  ;;  %v424_v25 = vadd.f32 %v416_v12, %v1191_v35 }
 0x191   :  { %v400_v10 = vpop.permute.xlu0 %399 }
 0x192   :  { %v473_v16 = vsel %vm467_vm1, %v462_v7, 0.0  ;;  %v417_v17 = vadd.f32 %v400_v10, %v1177_v26 }
 0x193   :  { %v444_v15 = vpop.permute.xlu1 %443  ;;  %v474_v27 = vadd.f32 %v473_v16, %v472_v20 }
 0x194   :  { %v463_v18 = vadd.f32 %v444_v15, %v423_v14  ;;  %v425_v31 = vadd.f32 %v417_v17, %v1196_v37 }
 0x195   :  { %v402_v22 = vpop.permute.xlu0 %401 }
 0x196   :  { %v475_v23 = vsel %vm467_vm1, %v463_v18, 0.0  ;;  %v418_v24 = vadd.f32 %v402_v22, %v1187_v34 }
 0x197   :  { %v446_v29 = vpop.permute.xlu1 %445  ;;  %v476_v32 = vadd.f32 %v475_v23, %v474_v27 }
 0x198   :  { %v464_v30 = vadd.f32 %v446_v29, %v424_v25  ;;  %v426_v41 = vadd.f32 %v418_v24, %v1200_v39 }
 0x199   :  { %v448_v33 = vpop.permute.xlu0 %447 }
 0x19a   :  { %v477_v36 = vsel %vm467_vm1, %v464_v30, 0.0  ;;  %v465_v38 = vadd.f32 %v448_v33, %v425_v31 }
 0x19b   :  { %v478_v42 = vadd.f32 %v477_v36, %v476_v32  ;;  %v450_v43 = vpop.permute.xlu1 %449 }
 0x19c   :  { %v479_v44 = vsel %vm467_vm1, %v465_v38, 0.0  ;;  %v466_v45 = vadd.f32 %v450_v43, %v426_v41 }
 0x19d   :  { %v480_v46 = vadd.f32 %v479_v44, %v478_v42 }
 0x19e   :  { %v481_v47 = vsel %vm467_vm1, %v466_v45, 0.0 }
 0x19f   :  { %v482_v48 = vadd.f32 %v481_v47, %v480_v46 }
 0x1a1   :  { %v483_v49 = vrot.slane %v482_v48, 4 }
 0x1a3   :  { %v484_v50 = vadd.f32 %v483_v49, %v482_v48 }
 0x1a5   :  { %v485_v52 = vrot.slane %v484_v50, 2 }
 0x1a7   :  { %v486_v53 = vadd.f32 %v485_v52, %v484_v50 }
 0x1a9   :  { %v487_v54 = vrot.slane %v486_v53, 1 }
 0x1ab   :  { %v488_v55 = vadd.f32 %v487_v54, %v486_v53 }
 0x1ad   :  { %v1230_v57 = vmul.f32 0.00390625, %v488_v55 }
 0x1af   :  { %516 = vrot.lane.b32.xlu0 %v1230_v57, %s791_s0  ;;  %v492_v44 = vsub.f32 %v1146_v0, %v1230_v57  ;;  %v491_v45 = vsub.f32 %v1134_v51, %v1230_v57  ;;  %v493_v48 = vsub.f32 %v1150_v2, %v1230_v57  ;;  %v576_v50 = vsub.f32 %v1142_v60, %v1230_v57 }
 0x1b0   :  { %v494_v53 = vsub.f32 %v1163_v3, %v1230_v57  ;;  %v575_v54 = vsub.f32 %v1139_v56, %v1230_v57 }
 0x1b1   :  { %v500_v49 = vmul.f32 %v492_v44, %v492_v44  ;;  %v499_v52 = vmul.f32 %v491_v45, %v491_v45 }
 0x221   :  { %v517_v58 = vpop.permute.xlu0 %516 }
 0x222   :  { %v520_v59 = vsub.f32 %v1146_v0, %v517_v58  ;;  %v519_v61 = vsub.f32 %v1134_v51, %v517_v58  ;;  %v522_v1 = vsub.f32 %v1163_v3, %v517_v58  ;;  %v521_v4 = vsub.f32 %v1150_v2, %v517_v58 }
 0x223   :  { %v600_v7 = vsub.f32 %v1142_v60, %v517_v58  ;;  %v599_v9 = vsub.f32 %v1139_v56, %v517_v58  ;;  %v601_v12 = vsub.f32 %v1157_v8, %v517_v58  ;;  %v523_v14 = vsub.f32 %v1159_v13, %v517_v58 }
 0x224   :  { %v528_v62 = vmul.f32 %v520_v59, %v520_v59  ;;  %v527_v63 = vmul.f32 %v519_v61, %v519_v61  ;;  %v530_v5 = vmul.f32 %v522_v1, %v522_v1  ;;  %v529_v6 = vmul.f32 %v521_v4, %v521_v4 }
 0x225   :  { %v608_v10 = vmul.f32 %v600_v7, %v600_v7  ;;  %v607_v11 = vmul.f32 %v599_v9, %v599_v9  ;;  %v609_v15 = vmul.f32 %v601_v12, %v601_v12  ;;  %v531_v16 = vmul.f32 %v523_v14, %v523_v14 }
 0x226   :  { %545 = vrot.lane.b32.xlu0 %v528_v62, %s791_s0  ;;  %543 = vrot.lane.b32.xlu1 %v527_v63, %s791_s0  ;;  %v602_v17 = vsub.f32 %v1172_v21, %v517_v58  ;;  %v524_v18 = vsub.f32 %v1168_v19, %v517_v58  ;;  %v603_v23 = vsub.f32 %v1181_v28, %v517_v58 }
 0x227   :  { %v525_v24 = vsub.f32 %v1177_v26, %v517_v58  ;;  %v604_v29 = vsub.f32 %v1191_v35, %v517_v58  ;;  %v526_v30 = vsub.f32 %v1187_v34, %v517_v58  ;;  %v606_v33 = vsub.f32 %v1200_v39, %v517_v58 }
 0x228   :  { %v610_v20 = vmul.f32 %v602_v17, %v602_v17  ;;  %v532_v22 = vmul.f32 %v524_v18, %v524_v18  ;;  %v611_v25 = vmul.f32 %v603_v23, %v603_v23  ;;  %v605_v36 = vsub.f32 %v1196_v37, %v517_v58 }
 0x229   :  { %v533_v27 = vmul.f32 %v525_v24, %v525_v24  ;;  %v612_v31 = vmul.f32 %v604_v29, %v604_v29  ;;  %v534_v32 = vmul.f32 %v526_v30, %v526_v30  ;;  %v614_v38 = vmul.f32 %v606_v33, %v606_v33 }
 0x22a   :  { %549 = vrot.lane.b32.xlu0 %v530_v5, %s791_s0  ;;  %547 = vrot.lane.b32.xlu1 %v529_v6, %s791_s0  ;;  %v613_v41 = vmul.f32 %v605_v36, %v605_v36  ;;  %v577_v61 = vsub.f32 %v1157_v8, %v1230_v57  ;;  %v495_v62 = vsub.f32 %v1159_v13, %v1230_v57 }
 0x22b   :  { %v501_v1 = vmul.f32 %v493_v48, %v493_v48  ;;  %v584_v4 = vmul.f32 %v576_v50, %v576_v50  ;;  %v502_v5 = vmul.f32 %v494_v53, %v494_v53  ;;  %v583_v7 = vmul.f32 %v575_v54, %v575_v54 }
 0x22c   :  { %v578_v9 = vsub.f32 %v1172_v21, %v1230_v57  ;;  %v585_v12 = vmul.f32 %v577_v61, %v577_v61  ;;  %v496_v18 = vsub.f32 %v1168_v19, %v1230_v57  ;;  %v582_v50 = vsub.f32 %v1200_v39, %v1230_v57 }
 0x22e   :  { %625 = vrot.lane.b32.xlu0 %v608_v10, %s791_s0  ;;  %623 = vrot.lane.b32.xlu1 %v607_v11, %s791_s0 }
 0x232   :  { %627 = vrot.lane.b32.xlu0 %v609_v15, %s791_s0  ;;  %551 = vrot.lane.b32.xlu1 %v531_v16, %s791_s0  ;;  %v503_v15 = vmul.f32 %v495_v62, %v495_v62 }
 0x236   :  { %629 = vrot.lane.b32.xlu0 %v610_v20, %s791_s0  ;;  %553 = vrot.lane.b32.xlu1 %v532_v22, %s791_s0  ;;  %v579_v20 = vsub.f32 %v1181_v28, %v1230_v57 }
 0x23a   :  { %631 = vrot.lane.b32.xlu0 %v611_v25, %s791_s0  ;;  %555 = vrot.lane.b32.xlu1 %v533_v27, %s791_s0  ;;  %v586_v27 = vmul.f32 %v578_v9, %v578_v9 }
 0x23e   :  { %633 = vrot.lane.b32.xlu0 %v612_v31, %s791_s0  ;;  %557 = vrot.lane.b32.xlu1 %v534_v32, %s791_s0  ;;  %v497_v31 = vsub.f32 %v1177_v26, %v1230_v57  ;;  %v580_v32 = vsub.f32 %v1191_v35, %v1230_v57 }
 0x242   :  { %637 = vrot.lane.b32.xlu0 %v614_v38, %s791_s0  ;;  %635 = vrot.lane.b32.xlu1 %v613_v41, %s791_s0  ;;  %v504_v38 = vmul.f32 %v496_v18, %v496_v18  ;;  %v587_v41 = vmul.f32 %v579_v20, %v579_v20 }
 0x298   :  { %v546_v42 = vpop.permute.xlu0 %545  ;;  %v544_v43 = vpop.permute.xlu1 %543 }
 0x299   :  { %v568_v55 = vadd.f32 %v546_v42, %v500_v49  ;;  %v567_v63 = vadd.f32 %v544_v43, %v499_v52  ;;  %v498_v43 = vsub.f32 %v1187_v34, %v1230_v57  ;;  %v581_v52 = vsub.f32 %v1196_v37, %v1230_v57 }
 0x29b   :  { %v592_v10 = vadd.f32 %v584_v4, %v568_v55  ;;  %v591_v17 = vadd.f32 %v583_v7, %v567_v63  ;;  %v505_v55 = vmul.f32 %v497_v31, %v497_v31  ;;  %v590_v7 = vmul.f32 %v582_v50, %v582_v50 }
 0x29c   :  { %v550_v46 = vpop.permute.xlu0 %549  ;;  %v548_v47 = vpop.permute.xlu1 %547 }
 0x29d   :  { %v569_v6 = vadd.f32 %v548_v47, %v501_v1  ;;  %v570_v16 = vadd.f32 %v550_v46, %v502_v5  ;;  %v506_v1 = vmul.f32 %v498_v43, %v498_v43 }
 0x29f   :  { %v593_v24 = vadd.f32 %v585_v12, %v569_v6  ;;  %v594_v36 = vadd.f32 %v586_v27, %v570_v16  ;;  %v589_v12 = vmul.f32 %v581_v52, %v581_v52 }
 0x2a0   :  { %v626_v58 = vpop.permute.xlu0 %625  ;;  %v624_v59 = vpop.permute.xlu1 %623 }
 0x2a1   :  { %v648_v22 = vadd.f32 %v626_v58, %v592_v10  ;;  %v647_v23 = vadd.f32 %v624_v59, %v591_v17  ;;  %v588_v58 = vmul.f32 %v580_v32, %v580_v32 }
 0x2a3   :  { %v656_v42 = vsel %vm467_vm1, %v648_v22, 0.0  ;;  %v655_v44 = vsel %vm467_vm1, %v647_v23, 0.0 }
 0x2a4   :  { %v628_v11 = vpop.permute.xlu0 %627  ;;  %v552_v14 = vpop.permute.xlu1 %551  ;;  %v657_v59 = vadd.f32 %v656_v42, %v655_v44 }
 0x2a5   :  { %v571_v25 = vadd.f32 %v552_v14, %v503_v15  ;;  %v649_v33 = vadd.f32 %v628_v11, %v593_v24 }
 0x2a7   :  { %v595_v47 = vadd.f32 %v587_v41, %v571_v25  ;;  %v658_v53 = vsel %vm467_vm1, %v649_v33, 0.0 }
 0x2a8   :  { %v630_v29 = vpop.permute.xlu0 %629  ;;  %v554_v30 = vpop.permute.xlu1 %553  ;;  %v659_v4 = vadd.f32 %v658_v53, %v657_v59 }
 0x2a9   :  { %v650_v45 = vadd.f32 %v630_v29, %v594_v36  ;;  %v572_v46 = vadd.f32 %v554_v30, %v504_v38 }
 0x2ab   :  { %v660_v61 = vsel %vm467_vm1, %v650_v45, 0.0  ;;  %v596_v63 = vadd.f32 %v588_v58, %v572_v46  ;;  %v677_v45 = vld [vmem:[%s1388_s3] sm:$0x1] }
 0x2ac   :  { %v632_v48 = vpop.permute.xlu0 %631  ;;  %v556_v49 = vpop.permute.xlu1 %555  ;;  %v661_v14 = vadd.f32 %v660_v61, %v659_v4 }
 0x2ad   :  { %v651_v54 = vadd.f32 %v632_v48, %v595_v47  ;;  %v573_v62 = vadd.f32 %v556_v49, %v505_v55  ;;  %v681_v48 = vld [vmem:[%s1389_s4] sm:$0x1] }
 0x2af   :  { %v662_v9 = vsel %vm467_vm1, %v651_v54, 0.0  ;;  %v597_v17 = vadd.f32 %v589_v12, %v573_v62 }
 0x2b0   :  { %v634_v5 = vpop.permute.xlu0 %633  ;;  %v558_v6 = vpop.permute.xlu1 %557  ;;  %v663_v18 = vadd.f32 %v662_v9, %v661_v14 }
 0x2b1   :  { %v652_v10 = vadd.f32 %v634_v5, %v596_v63  ;;  %v574_v11 = vadd.f32 %v558_v6, %v506_v1 }
 0x2b3   :  { %v664_v15 = vsel %vm467_vm1, %v652_v10, 0.0  ;;  %v598_v16 = vadd.f32 %v590_v7, %v574_v11 }
 0x2b4   :  { %v638_v20 = vpop.permute.xlu0 %637  ;;  %v636_v22 = vpop.permute.xlu1 %635  ;;  %v665_v25 = vadd.f32 %v664_v15, %v663_v18 }
 0x2b5   :  { %v654_v23 = vadd.f32 %v638_v20, %v598_v16  ;;  %v653_v24 = vadd.f32 %v636_v22, %v597_v17 }
 0x2b7   :  { %v666_v27 = vsel %vm467_vm1, %v653_v24, 0.0  ;;  %v668_v30 = vsel %vm467_vm1, %v654_v23, 0.0 }
 0x2b8   :  { %v667_v29 = vadd.f32 %v666_v27, %v665_v25 }
 0x2ba   :  { %v669_v31 = vadd.f32 %v668_v30, %v667_v29 }
 0x2bc   :  { %v670_v32 = vrot.slane %v669_v31, 4 }
 0x2be   :  { %v671_v33 = vadd.f32 %v670_v32, %v669_v31 }
 0x2c0   :  { %v672_v36 = vrot.slane %v671_v33, 2 }
 0x2c2   :  { %v673_v38 = vadd.f32 %v672_v36, %v671_v33 }
 0x2c4   :  { %v674_v41 = vrot.slane %v673_v38, 1 }
 0x2c6   :  { %v675_v42 = vadd.f32 %v674_v41, %v673_v38 }
 0x2c8   :  { %v676_v43 = vmul.f32 0.00390625, %v675_v42 }
 0x2ca   :  { %v678_v44 = vadd.f32 1e-05, %v676_v43 }
 0x2cc   :  { %788 = vrsqrt.f32 %v678_v44 }
 0x2d9   :  { %v789_v46 = vpop.eup %788 }
 0x2da   :  { %v680_v47 = vmul.f32 %v789_v46, %v677_v45 }
 0x2dc   :  { %v688_v49 = vrot.slane %v680_v47, %v1126_v40  ;;  %v682_v50 = vmul.f32 %v680_v47, %v1230_v57 }
 0x2de   :  { %689 = vrot.lane.b32.xlu1 %v688_v49, %s791_s0  ;;  %v683_v52 = vsub.f32 %v681_v48, %v682_v50 }
 0x2e0   :  { %v697_v53 = vrot.slane %v683_v52, %v1126_v40 }
 0x2e2   :  { %698 = vrot.lane.b32.xlu0 %v697_v53, %s791_s0 }
 0x350   :  { %v690_v54 = vpop.permute.xlu1 %689 }
 0x351   :  { %v692_v55 = vsel %vm467_vm1, %v680_v47, %v690_v54 }
 0x352   :  { %v705_v58 = vrot.slane %v692_v55, %v1126_v40 }
 0x354   :  { %v699_v59 = vpop.permute.xlu0 %698  ;;  %v706_v61 = vmul.f32 %v705_v58, %v1134_v51  ;;  %v707_v62 = vmul.f32 %v705_v58, %v1139_v56  ;;  %v708_v63 = vmul.f32 %v705_v58, %v1146_v0  ;;  %v709_v57 = vmul.f32 %v705_v58, %v1142_v60 }
 0x355   :  { %v710_v1 = vmul.f32 %v705_v58, %v1150_v2  ;;  %v711_v4 = vmul.f32 %v705_v58, %v1157_v8  ;;  %v712_v5 = vmul.f32 %v705_v58, %v1163_v3  ;;  %v713_v6 = vmul.f32 %v705_v58, %v1172_v21 }
 0x356   :  { %v714_v7 = vmul.f32 %v705_v58, %v1159_v13  ;;  %v701_v9 = vsel %vm467_vm1, %v683_v52, %v699_v59  ;;  %v715_v51 = vmul.f32 %v705_v58, %v1181_v28  ;;  %v716_v56 = vmul.f32 %v705_v58, %v1168_v19 }
 0x357   :  { %v717_v0 = vmul.f32 %v705_v58, %v1191_v35  ;;  %v725_v60 = vrot.slane %v701_v9, %v1126_v40  ;;  %v718_v2 = vmul.f32 %v705_v58, %v1177_v26  ;;  %v719_v8 = vmul.f32 %v705_v58, %v1196_v37 }
 0x358   :  { %v720_v3 = vmul.f32 %v705_v58, %v1187_v34  ;;  %v721_v21 = vmul.f32 %v705_v58, %v1200_v39 }
 0x359   :  { %v726_v10 = vadd.f32 %v725_v60, %v706_v61  ;;  %v727_v13 = vadd.f32 %v725_v60, %v707_v62  ;;  %v728_v11 = vadd.f32 %v725_v60, %v708_v63  ;;  %v729_v12 = vadd.f32 %v725_v60, %v709_v57 }
 0x35a   :  { %v730_v14 = vadd.f32 %v725_v60, %v710_v1  ;;  %v731_v28 = vadd.f32 %v725_v60, %v711_v4  ;;  %v732_v15 = vadd.f32 %v725_v60, %v712_v5  ;;  %v733_v19 = vadd.f32 %v725_v60, %v713_v6 }
 0x35b   :  { %v734_v16 = vadd.f32 %v725_v60, %v714_v7  ;;  %v735_v35 = vadd.f32 %v725_v60, %v715_v51  ;;  %v736_v17 = vadd.f32 %v725_v60, %v716_v56  ;;  %v737_v40 = vadd.f32 %v725_v60, %v717_v0 }
 0x35c   :  { %v738_v18 = vadd.f32 %v725_v60, %v718_v2  ;;  %v739_v26 = vadd.f32 %v725_v60, %v719_v8  ;;  %v740_v20 = vadd.f32 %v725_v60, %v720_v3  ;;  %v741_v37 = vadd.f32 %v725_v60, %v721_v21 }
 0x35d   :  { %v742_v22 = vmax.f32 %v726_v10, 0.0  ;;  %v743_v34 = vmax.f32 %v727_v13, 0.0  ;;  %v744_v23 = vmax.f32 %v728_v11, 0.0  ;;  %v745_v39 = vmax.f32 %v729_v12, 0.0 }
 0x35e   :  { %v746_v24 = vmax.f32 %v730_v14, 0.0  ;;  %v747_v25 = vmax.f32 %v731_v28, 0.0  ;;  %v748_v27 = vmax.f32 %v732_v15, 0.0  ;;  %v749_v29 = vmax.f32 %v733_v19, 0.0 }
 0x35f   :  { %v750_v30 = vmax.f32 %v734_v16, 0.0  ;;  %v751_v31 = vmax.f32 %v735_v35, 0.0  ;;  %v752_v32 = vmax.f32 %v736_v17, 0.0  ;;  %v753_v33 = vmax.f32 %v737_v40, 0.0  ;;  %758 = vst [vmem:[%s1390_s5] sm:$0xff] %v742_v22  ;;  %759 = vst [vmem:[%s1390_s5 + $0x8] sm:$0xff] %v743_v34 }
 0x360   :  { %760 = vst [vmem:[%s1390_s5 + $0x10] sm:$0xff] %v744_v23  ;;  %761 = vst [vmem:[%s1390_s5 + $0x18] sm:$0xff] %v745_v39  ;;  %v754_v36 = vmax.f32 %v738_v18, 0.0  ;;  %v755_v38 = vmax.f32 %v739_v26, 0.0  ;;  %v756_v41 = vmax.f32 %v740_v20, 0.0  ;;  %v757_v42 = vmax.f32 %v741_v37, 0.0 }
 0x361   :  { %762 = vst [vmem:[%s1390_s5 + $0x20] sm:$0xff] %v746_v24  ;;  %763 = vst [vmem:[%s1390_s5 + $0x28] sm:$0xff] %v747_v25 }
 0x362   :  { %764 = vst [vmem:[%s1390_s5 + $0x30] sm:$0xff] %v748_v27  ;;  %765 = vst [vmem:[%s1390_s5 + $0x38] sm:$0xff] %v749_v29 }
 0x363   :  { %766 = vst [vmem:[%s1390_s5 + $0x40] sm:$0xff] %v750_v30  ;;  %767 = vst [vmem:[%s1390_s5 + $0x48] sm:$0xff] %v751_v31 }
 0x364   :  { %768 = vst [vmem:[%s1390_s5 + $0x50] sm:$0xff] %v752_v32  ;;  %769 = vst [vmem:[%s1390_s5 + $0x58] sm:$0xff] %v753_v33 }
 0x365   :  { %770 = vst [vmem:[%s1390_s5 + $0x60] sm:$0xff] %v754_v36  ;;  %771 = vst [vmem:[%s1390_s5 + $0x68] sm:$0xff] %v755_v38 }
 0x366   :  { %772 = vst [vmem:[%s1390_s5 + $0x70] sm:$0xff] %v756_v41  ;;  %773 = vst [vmem:[%s1390_s5 + $0x78] sm:$0xff] %v757_v42 }

// kernel: generator_forward.3
= control target key start
LH: loop header
LB: loop body
LE: loop exit
PB: predicated region body
PF: predicated region fallthrough
CT: control target
= control target key end

     0   :  { %14 = vsyncpa [#allocation3], 0  ;;  %s2601_s0 = inlined_call_operand.hbm [shape: f32[4,16], index: 0, kind: input, shape index: {}]   ;;  %s2602_s1 = inlined_call_operand.hbm [shape: f32[16,1024], index: 1, kind: input, shape index: {}]   ;;  %s2603_s2 = inlined_call_operand.hbm [shape: f32[1,1024], index: 2, kind: input, shape index: {}]   ;;  %s2604_s3 = inlined_call_operand.hbm [shape: f32[1,1024], index: 3, kind: input, shape index: {}]   ;;  %s2605_s4 = inlined_call_operand.hbm [shape: f32[1,1024], index: 4, kind: input, shape index: {}]   ;;  %s2606_s5 = inlined_call_operand.hbm [shape: f32[1024,512], index: 5, kind: input, shape index: {}]   ;;  %s2607_s6 = inlined_call_operand.hbm [shape: f32[1,512], index: 6, kind: input, shape index: {}]   ;;  %s2608_s7 = inlined_call_operand.hbm [shape: f32[1,512], index: 7, kind: input, shape index: {}]   ;;  %s2609_s8 = inlined_call_operand.hbm [shape: f32[1,512], index: 8, kind: input, shape index: {}]   ;;  %s2610_s9 = inlined_call_operand.vmem [shape: f32[4,512], index: 9, kind: output, shape index: {}]  }
   0x1   :  { %15 = vsyncpa [#allocation5], 0 }
   0x2   :  { %16 = vsyncpa [#allocation8], 0 }
   0x3   :  { %17 = vsyncpa [#allocation11], 0 }
   0x4   :  { %18 = vsyncpa [#allocation14], 0  ;;  %s2258_s30 = smov [#allocation4]  }
   0x5   :  { %s34_s10 = sshll.u32 %s2258_s30, 4  ;;  %s35_s10 = int_to_ptr.vmem [resolvable:$true] %s34_s10 }
   0x6   :  { %s2076_s11 = scalar_lea.vmem %s35_s10, 2048  ;;  %p2081_p1 = scmp.lt.s32.totalorder %s35_s10, %s35_s10 }
   0x7   :  { %p2077_p0 = scmp.ne.s32.totalorder %s35_s10, %s2076_s11  ;;  %p2082_p2 = scmp.lt.s32.totalorder %s2076_s11, %s2076_s11 }
   0x9   :  { %p2083_p3 = por %p2082_p2, %p2081_p1 }
   0xb   :  { %p2084_p4 = pnand %p2083_p3, %p2077_p0 }
   0xd   :  { %2087 = shalt.err (!%p2084_p4)
}
   0xe   :  { %s2259_s12 = smov 1024   ;;  %s2260_s13 = smov 64  }
   0xf   :  { %40 = dma.hbm_to_vmem [thread:$0]  %s2602_s1, 2048, %s35_s10, [#allocation5], %s2259_s12, %s2259_s12, %s2260_s13  }
  0x10   :  { %s2261_s16 = smov [#allocation7]   ;;  %s2262_s18 = smov [#allocation10]  }
  0x11   :  { %s57_s17 = sshll.u32 %s2261_s16, 4  ;;  %s76_s19 = sshll.u32 %s2262_s18, 4  ;;  %s58_s17 = int_to_ptr.vmem [resolvable:$true] %s57_s17  ;;  %s77_s19 = int_to_ptr.vmem [resolvable:$true] %s76_s19 }
  0x12   :  { %s2096_s20 = scalar_lea.vmem %s58_s17, 128  ;;  %p2101_p6 = scmp.lt.s32.totalorder %s58_s17, %s58_s17 }
  0x13   :  { %p2097_p5 = scmp.ne.s32.totalorder %s58_s17, %s2096_s20  ;;  %p2102_p7 = scmp.lt.s32.totalorder %s2096_s20, %s2096_s20 }
  0x15   :  { %p2103_p8 = por %p2102_p7, %p2101_p6 }
  0x17   :  { %p2104_p9 = pnand %p2103_p8, %p2097_p5 }
  0x19   :  { %2107 = shalt.err (!%p2104_p9)
}
  0x1a   :  { %60 = dma.hbm_to_vmem [thread:$0]  %s2604_s3, 128, %s58_s17, [#allocation8]  }
  0x1b   :  { %s2116_s23 = scalar_lea.vmem %s77_s19, 65536  ;;  %p2121_p11 = scmp.lt.s32.totalorder %s77_s19, %s77_s19 }
  0x1c   :  { %p2117_p10 = scmp.ne.s32.totalorder %s77_s19, %s2116_s23  ;;  %p2122_p12 = scmp.lt.s32.totalorder %s2116_s23, %s2116_s23 }
  0x1e   :  { %p2123_p13 = por %p2122_p12, %p2121_p11 }
  0x20   :  { %p2124_p0 = pnand %p2123_p13, %p2117_p10 }
  0x22   :  { %2127 = shalt.err (!%p2124_p0)
}
  0x23   :  { %s2263_s1 = smov 512   ;;  %s2264_s24 = smov 32  }
  0x24   :  { %82 = dma.hbm_to_vmem [thread:$0]  %s2606_s5, 65536, %s77_s19, [#allocation11], %s2263_s1, %s2263_s1, %s2264_s24  }
  0x25   :  { %s2265_s27 = smov [#allocation13]   ;;  %s2266_s29 = smov [#allocation2]  }
  0x26   :  { %s99_s28 = sshll.u32 %s2265_s27, 4  ;;  %s25_s30 = sshll.u32 %s2266_s29, 4  ;;  %s100_s28 = int_to_ptr.vmem [resolvable:$true] %s99_s28  ;;  %s26_s30 = int_to_ptr.vmem [resolvable:$true] %s25_s30 }
  0x27   :  { %s2136_s3 = scalar_lea.vmem %s100_s28, 64  ;;  %p2141_p2 = scmp.lt.s32.totalorder %s100_s28, %s100_s28 }
  0x28   :  { %p2137_p1 = scmp.ne.s32.totalorder %s100_s28, %s2136_s3  ;;  %p2142_p3 = scmp.lt.s32.totalorder %s2136_s3, %s2136_s3 }
  0x2a   :  { %p2143_p4 = por %p2142_p3, %p2141_p2 }
  0x2c   :  { %p2144_p5 = pnand %p2143_p4, %p2137_p1 }
  0x2e   :  { %2147 = shalt.err (!%p2144_p5)
}
  0x2f   :  { %102 = dma.hbm_to_vmem [thread:$0]  %s2608_s7, 64, %s100_s28, [#allocation14]  }
  0x30   :  { %s2156_s12 = scalar_lea.vmem %s26_s30, 64  ;;  %p2161_p7 = scmp.lt.s32.totalorder %s26_s30, %s26_s30 }
  0x31   :  { %p2157_p6 = scmp.ne.s32.totalorder %s26_s30, %s2156_s12  ;;  %p2162_p8 = scmp.lt.s32.totalorder %s2156_s12, %s2156_s12 }
  0x33   :  { %p2163_p9 = por %p2162_p8, %p2161_p7 }
  0x35   :  { %p2164_p10 = pnand %p2163_p9, %p2157_p6 }
  0x37   :  { %2167 = shalt.err (!%p2164_p10)
}
  0x38   :  { %28 = dma.hbm_to_vmem [thread:$0]  %s2601_s0, 64, %s26_s30, [#allocation3]  }
  0x39   :  { %s2267_s14 = smov [#allocation6]   ;;  %s2268_s16 = smov [#allocation9]  }
  0x3a   :  { %s47_s15 = sshll.u32 %s2267_s14, 4  ;;  %s67_s17 = sshll.u32 %s2268_s16, 4  ;;  %s48_s15 = int_to_ptr.vmem [resolvable:$true] %s47_s15  ;;  %s68_s17 = int_to_ptr.vmem [resolvable:$true] %s67_s17 }
  0x3b   :  { %s2176_s18 = scalar_lea.vmem %s48_s15, 128  ;;  %p2181_p12 = scmp.lt.s32.totalorder %s48_s15, %s48_s15 }
  0x3c   :  { %p2177_p11 = scmp.ne.s32.totalorder %s48_s15, %s2176_s18  ;;  %p2182_p13 = scmp.lt.s32.totalorder %s2176_s18, %s2176_s18 }
  0x3e   :  { %p2183_p0 = por %p2182_p13, %p2181_p12 }
  0x40   :  { %p2184_p1 = pnand %p2183_p0, %p2177_p11 }
  0x42   :  { %2187 = shalt.err (!%p2184_p1)
}
  0x43   :  { %50 = dma.hbm_to_vmem [thread:$0]  %s2603_s2, 128, %s48_s15, [#allocation5]  }
  0x44   :  { %s2196_s20 = scalar_lea.vmem %s68_s17, 128  ;;  %p2201_p3 = scmp.lt.s32.totalorder %s68_s17, %s68_s17 }
  0x45   :  { %p2197_p2 = scmp.ne.s32.totalorder %s68_s17, %s2196_s20  ;;  %p2202_p4 = scmp.lt.s32.totalorder %s2196_s20, %s2196_s20 }
  0x47   :  { %p2203_p5 = por %p2202_p4, %p2201_p3 }
  0x49   :  { %p2204_p6 = pnand %p2203_p5, %p2197_p2 }
  0x4b   :  { %2207 = shalt.err (!%p2204_p6)
}
  0x4c   :  { %70 = dma.hbm_to_vmem [thread:$0]  %s2605_s4, 128, %s68_s17, [#allocation8]  }
  0x4d   :  { %s2269_s22 = smov [#allocation12]   ;;  %s2270_s1 = smov [#allocation15]  }
  0x4e   :  { %s89_s23 = sshll.u32 %s2269_s22, 4  ;;  %s109_s24 = sshll.u32 %s2270_s1, 4  ;;  %s90_s23 = int_to_ptr.vmem [resolvable:$true] %s89_s23  ;;  %s110_s24 = int_to_ptr.vmem [resolvable:$true] %s109_s24 }
  0x4f   :  { %s2216_s25 = scalar_lea.vmem %s90_s23, 64  ;;  %p2221_p8 = scmp.lt.s32.totalorder %s90_s23, %s90_s23 }
  0x50   :  { %p2217_p7 = scmp.ne.s32.totalorder %s90_s23, %s2216_s25  ;;  %p2222_p9 = scmp.lt.s32.totalorder %s2216_s25, %s2216_s25 }
  0x52   :  { %p2223_p10 = por %p2222_p9, %p2221_p8 }
  0x54   :  { %p2224_p11 = pnand %p2223_p10, %p2217_p7 }
  0x56   :  { %2227 = shalt.err (!%p2224_p11)
}
  0x57   :  { %92 = dma.hbm_to_vmem [thread:$0]  %s2607_s6, 64, %s90_s23, [#allocation11]  }
  0x58   :  { %s2236_s27 = scalar_lea.vmem %s110_s24, 64  ;;  %p2241_p13 = scmp.lt.s32.totalorder %s110_s24, %s110_s24 }
  0x59   :  { %p2237_p12 = scmp.ne.s32.totalorder %s110_s24, %s2236_s27  ;;  %p2242_p0 = scmp.lt.s32.totalorder %s2236_s27, %s2236_s27 }
  0x5b   :  { %p2243_p1 = por %p2242_p0, %p2241_p13 }
  0x5d   :  { %p2244_p2 = pnand %p2243_p1, %p2237_p12 }
  0x5f   :  { %2247 = shalt.err (!%p2244_p2)
}
  0x60   :  { %112 = dma.hbm_to_vmem [thread:$0]  %s2609_s8, 64, %s110_s24, [#allocation14]  }
  0x61   :  { %2248 = dma.done.wait [#allocation3], 64  }
  0x62   :  { %2249 = vsyncadd [#allocation3], 4294967232 }
  0x63   :  { %2250 = dma.done.wait [#allocation5], 2176  }
  0x64   :  { %2251 = vsyncadd [#allocation5], 4294965120 }
  0x65   :  { %2252 = dma.done.wait [#allocation8], 256  }
  0x66   :  { %2253 = vsyncadd [#allocation8], 4294967040 }
  0x67   :  { %2254 = dma.done.wait [#allocation11], 65600  }
  0x68   :  { %2255 = vsyncadd [#allocation11], 4294901696 }
  0x69   :  { %2256 = dma.done.wait [#allocation14], 128  }
  0x6a   :  { %2257 = vsyncadd [#allocation14], 4294967168  ;;  %v2271_v0 = vmov 0.0   ;;  %v150_v1 = vld [vmem:[#allocation4 + $0x48] sm:$0xff]  ;;  %v152_v2 = vld [vmem:[#allocation4 + $0x58] sm:$0xff]  ;;  %vm199_vm0 = vcmask 130048  }
  0x6b   :  { %267 = vmatprep.mubr.f32.mxu0 %v2271_v0  ;;  %338 = vmatprep.mubr.f32.mxu1 %v2271_v0  ;;  %v149_v3 = vld [vmem:[#allocation4 + $0x40] sm:$0xff]  ;;  %v151_v4 = vld [vmem:[#allocation4 + $0x50] sm:$0xff]  ;;  %v142_v5 = vld [vmem:[#allocation4 + $0x8] sm:$0xff]  ;;  %vm489_vm1 = vcmask 1043456  }
  0x6c   :  { %231 = vmatprep.subr.mxu0 %v150_v1  ;;  %302 = vmatprep.subr.mxu1 %v152_v2  ;;  %v144_v6 = vld [vmem:[#allocation4 + $0x18] sm:$0xff]  ;;  %v141_v7 = vld [vmem:[#allocation4] sm:$0xff]  ;;  %v143_v8 = vld [vmem:[#allocation4 + $0x10] sm:$0xff] }
  0x6d   :  { %232 = vmatpush1.msra.mxu0 %v149_v3  ;;  %303 = vmatpush1.msra.mxu1 %v151_v4  ;;  %v140_v9 = vld [vmem:[#allocation2] sm:$0xf]  ;;  %v154_v10 = vld [vmem:[#allocation4 + $0x68] sm:$0xff]  ;;  %v153_v11 = vld [vmem:[#allocation4 + $0x60] sm:$0xff] }
  0x6e   :  { %233 = vmatprep.subr.mxu0 %v142_v5  ;;  %304 = vmatprep.subr.mxu1 %v144_v6  ;;  %v156_v12 = vld [vmem:[#allocation4 + $0x78] sm:$0xff]  ;;  %v146_v13 = vld [vmem:[#allocation4 + $0x28] sm:$0xff]  ;;  %v155_v14 = vld [vmem:[#allocation4 + $0x70] sm:$0xff] }
  0x6f   :  { %234 = vmatpush1.msra.mxu0 %v141_v7  ;;  %305 = vmatpush1.msra.mxu1 %v143_v8  ;;  %v145_v15 = vld [vmem:[#allocation4 + $0x20] sm:$0xff]  ;;  %v148_v16 = vld [vmem:[#allocation4 + $0x38] sm:$0xff]  ;;  %v147_v17 = vld [vmem:[#allocation4 + $0x30] sm:$0xff] }
  0x70   :  { %2026 = vmatmul.mubr.msk.f32.vlgmr.msra.gmra.mxu0 %vm199_vm0, %v140_v9  ;;  %2027 = vmatmul.mubr.msk.f32.vlgmr.msra.gmra.mxu1 %vm199_vm0, %v140_v9  ;;  %v826_v18 = vld [vmem:[#allocation10 + $0x1e8] sm:$0xff]  ;;  %v825_v20 = vld [vmem:[#allocation10 + $0x1e0] sm:$0xff] }
  0x71   :  { %373 = vmatprep.subr.mxu0 %v154_v10  ;;  %444 = vmatprep.subr.mxu1 %v156_v12  ;;  %v954_v19 = vld [vmem:[#allocation10 + $0x5e8] sm:$0xff]  ;;  %v953_v21 = vld [vmem:[#allocation10 + $0x5e0] sm:$0xff] }
  0x72   :  { %374 = vmatpush1.msra.mxu0 %v153_v11  ;;  %409 = vmatprep.mubr.f32.mxu0 %v2271_v0  ;;  %v822_v22 = vld [vmem:[#allocation10 + $0x1c8] sm:$0xff]  ;;  %v821_v24 = vld [vmem:[#allocation10 + $0x1c0] sm:$0xff] }
  0x73   :  { %375 = vmatprep.subr.mxu0 %v146_v13  ;;  %445 = vmatpush1.msra.mxu1 %v155_v14  ;;  %v950_v23 = vld [vmem:[#allocation10 + $0x5c8] sm:$0xff]  ;;  %v949_v25 = vld [vmem:[#allocation10 + $0x5c0] sm:$0xff] }
  0x74   :  { %376 = vmatpush1.msra.mxu0 %v145_v15  ;;  %446 = vmatprep.subr.mxu1 %v148_v16  ;;  %v818_v26 = vld [vmem:[#allocation10 + $0x1a8] sm:$0xff]  ;;  %v817_v28 = vld [vmem:[#allocation10 + $0x1a0] sm:$0xff] }
  0x75   :  { %2028 = vmatmul.mubr.msk.f32.vlgmr.msra.gmra.mxu0 %vm199_vm0, %v140_v9  ;;  %447 = vmatpush1.msra.mxu1 %v147_v17  ;;  %v946_v27 = vld [vmem:[#allocation10 + $0x5a8] sm:$0xff]  ;;  %v945_v29 = vld [vmem:[#allocation10 + $0x5a0] sm:$0xff] }
  0x76   :  { %480 = vmatprep.mubr.f32.mxu1 %v2271_v0  ;;  %1299 = vmatprep.subr.mxu0 %v826_v18  ;;  %v814_v30 = vld [vmem:[#allocation10 + $0x188] sm:$0xff]  ;;  %v813_v32 = vld [vmem:[#allocation10 + $0x180] sm:$0xff] }
  0x77   :  { %2029 = vmatmul.mubr.msk.f32.vlgmr.msra.gmra.mxu1 %vm199_vm0, %v140_v9  ;;  %1370 = vmatprep.subr.mxu1 %v954_v19  ;;  %v942_v31 = vld [vmem:[#allocation10 + $0x588] sm:$0xff]  ;;  %v941_v33 = vld [vmem:[#allocation10 + $0x580] sm:$0xff] }
  0x78   :  { %1300 = vmatpush1.msra.mxu0 %v825_v20  ;;  %1371 = vmatpush1.msra.mxu1 %v953_v21  ;;  %v810_v34 = vld [vmem:[#allocation10 + $0x168] sm:$0xff]  ;;  %v809_v36 = vld [vmem:[#allocation10 + $0x160] sm:$0xff] }
  0x79   :  { %1301 = vmatprep.subr.mxu0 %v822_v22  ;;  %1372 = vmatprep.subr.mxu1 %v950_v23  ;;  %v938_v35 = vld [vmem:[#allocation10 + $0x568] sm:$0xff]  ;;  %v937_v37 = vld [vmem:[#allocation10 + $0x560] sm:$0xff] }
  0x7a   :  { %1302 = vmatpush1.msra.mxu0 %v821_v24  ;;  %1373 = vmatpush1.msra.mxu1 %v949_v25  ;;  %v806_v38 = vld [vmem:[#allocation10 + $0x148] sm:$0xff]  ;;  %v805_v40 = vld [vmem:[#allocation10 + $0x140] sm:$0xff] }
  0x7b   :  { %1303 = vmatprep.subr.mxu0 %v818_v26  ;;  %1374 = vmatprep.subr.mxu1 %v946_v27  ;;  %v934_v39 = vld [vmem:[#allocation10 + $0x548] sm:$0xff]  ;;  %v933_v41 = vld [vmem:[#allocation10 + $0x540] sm:$0xff] }
  0x7c   :  { %1304 = vmatpush1.msra.mxu0 %v817_v28  ;;  %1375 = vmatpush1.msra.mxu1 %v945_v29  ;;  %v802_v42 = vld [vmem:[#allocation10 + $0x128] sm:$0xff]  ;;  %v801_v44 = vld [vmem:[#allocation10 + $0x120] sm:$0xff] }
  0x7d   :  { %1305 = vmatprep.subr.mxu0 %v814_v30  ;;  %1376 = vmatprep.subr.mxu1 %v942_v31  ;;  %v930_v43 = vld [vmem:[#allocation10 + $0x528] sm:$0xff]  ;;  %v929_v45 = vld [vmem:[#allocation10 + $0x520] sm:$0xff] }
  0x7e   :  { %1306 = vmatpush1.msra.mxu0 %v813_v32  ;;  %1377 = vmatpush1.msra.mxu1 %v941_v33  ;;  %v798_v46 = vld [vmem:[#allocation10 + $0x108] sm:$0xff]  ;;  %v797_v48 = vld [vmem:[#allocation10 + $0x100] sm:$0xff] }
  0x7f   :  { %1307 = vmatprep.subr.mxu0 %v810_v34  ;;  %1378 = vmatprep.subr.mxu1 %v938_v35  ;;  %v926_v47 = vld [vmem:[#allocation10 + $0x508] sm:$0xff]  ;;  %v925_v49 = vld [vmem:[#allocation10 + $0x500] sm:$0xff] }
  0x80   :  { %1308 = vmatpush1.msra.mxu0 %v809_v36  ;;  %1379 = vmatpush1.msra.mxu1 %v937_v37  ;;  %v794_v50 = vld [vmem:[#allocation10 + $0xe8] sm:$0xff]  ;;  %v793_v52 = vld [vmem:[#allocation10 + $0xe0] sm:$0xff] }
  0x81   :  { %1309 = vmatprep.subr.mxu0 %v806_v38  ;;  %1380 = vmatprep.subr.mxu1 %v934_v39  ;;  %v922_v51 = vld [vmem:[#allocation10 + $0x4e8] sm:$0xff]  ;;  %v921_v53 = vld [vmem:[#allocation10 + $0x4e0] sm:$0xff] }
  0x82   :  { %1310 = vmatpush1.msra.mxu0 %v805_v40  ;;  %1381 = vmatpush1.msra.mxu1 %v933_v41  ;;  %v790_v54 = vld [vmem:[#allocation10 + $0xc8] sm:$0xff]  ;;  %v789_v56 = vld [vmem:[#allocation10 + $0xc0] sm:$0xff] }
  0x83   :  { %1311 = vmatprep.subr.mxu0 %v802_v42  ;;  %1382 = vmatprep.subr.mxu1 %v930_v43  ;;  %v918_v55 = vld [vmem:[#allocation10 + $0x4c8] sm:$0xff]  ;;  %v917_v57 = vld [vmem:[#allocation10 + $0x4c0] sm:$0xff] }
  0x84   :  { %1312 = vmatpush1.msra.mxu0 %v801_v44  ;;  %1383 = vmatpush1.msra.mxu1 %v929_v45  ;;  %v786_v58 = vld [vmem:[#allocation10 + $0xa8] sm:$0xff]  ;;  %v785_v60 = vld [vmem:[#allocation10 + $0xa0] sm:$0xff] }
  0x85   :  { %1313 = vmatprep.subr.mxu0 %v798_v46  ;;  %1384 = vmatprep.subr.mxu1 %v926_v47  ;;  %v914_v59 = vld [vmem:[#allocation10 + $0x4a8] sm:$0xff]  ;;  %v913_v61 = vld [vmem:[#allocation10 + $0x4a0] sm:$0xff] }
  0x86   :  { %1314 = vmatpush1.msra.mxu0 %v797_v48  ;;  %1385 = vmatpush1.msra.mxu1 %v925_v49  ;;  %v782_v62 = vld [vmem:[#allocation10 + $0x88] sm:$0xff]  ;;  %v781_v0 = vld [vmem:[#allocation10 + $0x80] sm:$0xff] }
  0x87   :  { %1315 = vmatprep.subr.mxu0 %v794_v50  ;;  %1386 = vmatprep.subr.mxu1 %v922_v51  ;;  %v910_v63 = vld [vmem:[#allocation10 + $0x488] sm:$0xff]  ;;  %v909_v1 = vld [vmem:[#allocation10 + $0x480] sm:$0xff] }
  0x88   :  { %1316 = vmatpush1.msra.mxu0 %v793_v52  ;;  %1387 = vmatpush1.msra.mxu1 %v921_v53  ;;  %v778_v2 = vld [vmem:[#allocation10 + $0x68] sm:$0xff]  ;;  %v777_v4 = vld [vmem:[#allocation10 + $0x60] sm:$0xff] }
  0x89   :  { %1317 = vmatprep.subr.mxu0 %v790_v54  ;;  %1388 = vmatprep.subr.mxu1 %v918_v55  ;;  %v906_v3 = vld [vmem:[#allocation10 + $0x468] sm:$0xff]  ;;  %v905_v5 = vld [vmem:[#allocation10 + $0x460] sm:$0xff] }
  0x8a   :  { %1318 = vmatpush1.msra.mxu0 %v789_v56  ;;  %1389 = vmatpush1.msra.mxu1 %v917_v57  ;;  %v774_v6 = vld [vmem:[#allocation10 + $0x48] sm:$0xff]  ;;  %v773_v8 = vld [vmem:[#allocation10 + $0x40] sm:$0xff] }
  0x8b   :  { %1319 = vmatprep.subr.mxu0 %v786_v58  ;;  %1390 = vmatprep.subr.mxu1 %v914_v59  ;;  %v902_v7 = vld [vmem:[#allocation10 + $0x448] sm:$0xff]  ;;  %v901_v9 = vld [vmem:[#allocation10 + $0x440] sm:$0xff] }
  0x8c   :  { %1320 = vmatpush1.msra.mxu0 %v785_v60  ;;  %1391 = vmatpush1.msra.mxu1 %v913_v61  ;;  %v770_v10 = vld [vmem:[#allocation10 + $0x28] sm:$0xff]  ;;  %v769_v12 = vld [vmem:[#allocation10 + $0x20] sm:$0xff] }
  0x8d   :  { %1321 = vmatprep.subr.mxu0 %v782_v62  ;;  %1392 = vmatprep.subr.mxu1 %v910_v63  ;;  %v898_v11 = vld [vmem:[#allocation10 + $0x428] sm:$0xff]  ;;  %v897_v13 = vld [vmem:[#allocation10 + $0x420] sm:$0xff] }
  0x8e   :  { %1322 = vmatpush1.msra.mxu0 %v781_v0  ;;  %1393 = vmatpush1.msra.mxu1 %v909_v1  ;;  %v766_v14 = vld [vmem:[#allocation10 + $0x8] sm:$0xff]  ;;  %v765_v16 = vld [vmem:[#allocation10] sm:$0xff] }
  0x8f   :  { %1323 = vmatprep.subr.mxu0 %v778_v2  ;;  %1394 = vmatprep.subr.mxu1 %v906_v3  ;;  %v894_v15 = vld [vmem:[#allocation10 + $0x408] sm:$0xff]  ;;  %v893_v17 = vld [vmem:[#allocation10 + $0x400] sm:$0xff] }
  0x90   :  { %1324 = vmatpush1.msra.mxu0 %v777_v4  ;;  %1395 = vmatpush1.msra.mxu1 %v905_v5  ;;  %v890_v18 = vld [vmem:[#allocation10 + $0x3e8] sm:$0xff]  ;;  %v889_v20 = vld [vmem:[#allocation10 + $0x3e0] sm:$0xff] }
  0x91   :  { %1325 = vmatprep.subr.mxu0 %v774_v6  ;;  %1396 = vmatprep.subr.mxu1 %v902_v7  ;;  %v1018_v19 = vld [vmem:[#allocation10 + $0x7e8] sm:$0xff]  ;;  %v1017_v21 = vld [vmem:[#allocation10 + $0x7e0] sm:$0xff] }
  0x92   :  { %1326 = vmatpush1.msra.mxu0 %v773_v8  ;;  %1397 = vmatpush1.msra.mxu1 %v901_v9  ;;  %v886_v22 = vld [vmem:[#allocation10 + $0x3c8] sm:$0xff]  ;;  %v885_v24 = vld [vmem:[#allocation10 + $0x3c0] sm:$0xff] }
  0x93   :  { %1327 = vmatprep.subr.mxu0 %v770_v10  ;;  %1398 = vmatprep.subr.mxu1 %v898_v11  ;;  %v1014_v23 = vld [vmem:[#allocation10 + $0x7c8] sm:$0xff]  ;;  %v1013_v25 = vld [vmem:[#allocation10 + $0x7c0] sm:$0xff] }
  0x94   :  { %1328 = vmatpush1.msra.mxu0 %v769_v12  ;;  %1399 = vmatpush1.msra.mxu1 %v897_v13  ;;  %v882_v26 = vld [vmem:[#allocation10 + $0x3a8] sm:$0xff]  ;;  %v881_v28 = vld [vmem:[#allocation10 + $0x3a0] sm:$0xff] }
  0x95   :  { %1329 = vmatprep.subr.mxu0 %v766_v14  ;;  %1400 = vmatprep.subr.mxu1 %v894_v15  ;;  %v1010_v27 = vld [vmem:[#allocation10 + $0x7a8] sm:$0xff]  ;;  %v1009_v29 = vld [vmem:[#allocation10 + $0x7a0] sm:$0xff] }
  0x96   :  { %1330 = vmatpush1.msra.mxu0 %v765_v16  ;;  %1401 = vmatpush1.msra.mxu1 %v893_v17  ;;  %v878_v30 = vld [vmem:[#allocation10 + $0x388] sm:$0xff]  ;;  %v877_v32 = vld [vmem:[#allocation10 + $0x380] sm:$0xff] }
  0x97   :  { %1331 = vmatprep.subr.mxu0 %v890_v18  ;;  %1402 = vmatprep.subr.mxu1 %v1018_v19  ;;  %v1006_v31 = vld [vmem:[#allocation10 + $0x788] sm:$0xff]  ;;  %v1005_v33 = vld [vmem:[#allocation10 + $0x780] sm:$0xff] }
  0x98   :  { %1332 = vmatpush2.msra.mxu0 %v889_v20  ;;  %1403 = vmatpush2.msra.mxu1 %v1017_v21  ;;  %v874_v34 = vld [vmem:[#allocation10 + $0x368] sm:$0xff]  ;;  %v873_v36 = vld [vmem:[#allocation10 + $0x360] sm:$0xff]  ;;  %v159_v20 = vlaneseq }
  0x99   :  { %1333 = vmatprep.subr.mxu0 %v886_v22  ;;  %1404 = vmatprep.subr.mxu1 %v1014_v23  ;;  %v1002_v35 = vld [vmem:[#allocation10 + $0x768] sm:$0xff]  ;;  %v1001_v37 = vld [vmem:[#allocation10 + $0x760] sm:$0xff] }
  0x9a   :  { %1334 = vmatpush2.msra.mxu0 %v885_v24  ;;  %1405 = vmatpush2.msra.mxu1 %v1013_v25  ;;  %v870_v38 = vld [vmem:[#allocation10 + $0x348] sm:$0xff]  ;;  %v869_v40 = vld [vmem:[#allocation10 + $0x340] sm:$0xff]  ;;  %v160_v21 = vshrl.u32 %v159_v20, 7 }
  0x9b   :  { %1335 = vmatprep.subr.mxu0 %v882_v26  ;;  %1406 = vmatprep.subr.mxu1 %v1010_v27  ;;  %v998_v39 = vld [vmem:[#allocation10 + $0x748] sm:$0xff]  ;;  %v997_v41 = vld [vmem:[#allocation10 + $0x740] sm:$0xff] }
  0x9c   :  { %1336 = vmatpush2.msra.mxu0 %v881_v28  ;;  %1407 = vmatpush2.msra.mxu1 %v1009_v29  ;;  %v866_v42 = vld [vmem:[#allocation10 + $0x328] sm:$0xff]  ;;  %v865_v44 = vld [vmem:[#allocation10 + $0x320] sm:$0xff]  ;;  %v2353_v22 = vsub.s32 0, %v160_v21  ;;  %v2355_v23 = vsub.s32 2, %v160_v21  ;;  %v2357_v25 = vsub.s32 1, %v160_v21  ;;  %v2359_v26 = vsub.s32 3, %v160_v21 }
  0x9d   :  { %1337 = vmatprep.subr.mxu0 %v878_v30  ;;  %1408 = vmatprep.subr.mxu1 %v1006_v31  ;;  %v994_v43 = vld [vmem:[#allocation10 + $0x728] sm:$0xff]  ;;  %v993_v45 = vld [vmem:[#allocation10 + $0x720] sm:$0xff]  ;;  %v2363_v29 = vsub.s32 4, %v160_v21 }
  0x9e   :  { %1338 = vmatpush2.msra.mxu0 %v877_v32  ;;  %1409 = vmatpush2.msra.mxu1 %v1005_v33  ;;  %v862_v46 = vld [vmem:[#allocation10 + $0x308] sm:$0xff]  ;;  %v861_v48 = vld [vmem:[#allocation10 + $0x300] sm:$0xff] }
  0x9f   :  { %1339 = vmatprep.subr.mxu0 %v874_v34  ;;  %1410 = vmatprep.subr.mxu1 %v1002_v35  ;;  %v990_v47 = vld [vmem:[#allocation10 + $0x708] sm:$0xff]  ;;  %v989_v49 = vld [vmem:[#allocation10 + $0x700] sm:$0xff] }
  0xa0   :  { %1340 = vmatpush2.msra.mxu0 %v873_v36  ;;  %1411 = vmatpush2.msra.mxu1 %v1001_v37  ;;  %v858_v50 = vld [vmem:[#allocation10 + $0x2e8] sm:$0xff]  ;;  %v857_v52 = vld [vmem:[#allocation10 + $0x2e0] sm:$0xff]  ;;  %v2371_v36 = vsub.s32 5, %v160_v21  ;;  %v2373_v37 = vsub.s32 6, %v160_v21 }
  0xa1   :  { %1341 = vmatprep.subr.mxu0 %v870_v38  ;;  %1412 = vmatprep.subr.mxu1 %v998_v39  ;;  %v986_v51 = vld [vmem:[#allocation10 + $0x6e8] sm:$0xff]  ;;  %v985_v53 = vld [vmem:[#allocation10 + $0x6e0] sm:$0xff] }
  0xa2   :  { %1342 = vmatpush2.msra.mxu0 %v869_v40  ;;  %1413 = vmatpush2.msra.mxu1 %v997_v41  ;;  %v854_v54 = vld [vmem:[#allocation10 + $0x2c8] sm:$0xff]  ;;  %v853_v56 = vld [vmem:[#allocation10 + $0x2c0] sm:$0xff]  ;;  %v2376_v41 = vsub.s32 7, %v160_v21 }
  0xa3   :  { %1343 = vmatprep.subr.mxu0 %v866_v42  ;;  %1414 = vmatprep.subr.mxu1 %v994_v43  ;;  %v982_v55 = vld [vmem:[#allocation10 + $0x6c8] sm:$0xff]  ;;  %v981_v57 = vld [vmem:[#allocation10 + $0x6c0] sm:$0xff] }
  0xa4   :  { %1344 = vmatpush2.msra.mxu0 %v865_v44  ;;  %1415 = vmatpush2.msra.mxu1 %v993_v45  ;;  %v850_v58 = vld [vmem:[#allocation10 + $0x2a8] sm:$0xff]  ;;  %v849_v60 = vld [vmem:[#allocation10 + $0x2a0] sm:$0xff] }
  0xa5   :  { %1345 = vmatprep.subr.mxu0 %v862_v46  ;;  %1416 = vmatprep.subr.mxu1 %v990_v47  ;;  %v978_v59 = vld [vmem:[#allocation10 + $0x6a8] sm:$0xff]  ;;  %v977_v61 = vld [vmem:[#allocation10 + $0x6a0] sm:$0xff] }
  0xa6   :  { %1346 = vmatpush2.msra.mxu0 %v861_v48  ;;  %1417 = vmatpush2.msra.mxu1 %v989_v49  ;;  %v846_v62 = vld [vmem:[#allocation10 + $0x288] sm:$0xff]  ;;  %v845_v0 = vld [vmem:[#allocation10 + $0x280] sm:$0xff] }
  0xa7   :  { %1347 = vmatprep.subr.mxu0 %v858_v50  ;;  %1418 = vmatprep.subr.mxu1 %v986_v51  ;;  %v974_v63 = vld [vmem:[#allocation10 + $0x688] sm:$0xff]  ;;  %v973_v1 = vld [vmem:[#allocation10 + $0x680] sm:$0xff] }
  0xa8   :  { %1348 = vmatpush2.msra.mxu0 %v857_v52  ;;  %1419 = vmatpush2.msra.mxu1 %v985_v53  ;;  %v842_v2 = vld [vmem:[#allocation10 + $0x268] sm:$0xff]  ;;  %v841_v4 = vld [vmem:[#allocation10 + $0x260] sm:$0xff] }
  0xa9   :  { %1349 = vmatprep.subr.mxu0 %v854_v54  ;;  %1420 = vmatprep.subr.mxu1 %v982_v55  ;;  %v970_v3 = vld [vmem:[#allocation10 + $0x668] sm:$0xff]  ;;  %v969_v5 = vld [vmem:[#allocation10 + $0x660] sm:$0xff] }
  0xaa   :  { %1350 = vmatpush2.msra.mxu0 %v853_v56  ;;  %1421 = vmatpush2.msra.mxu1 %v981_v57  ;;  %v838_v6 = vld [vmem:[#allocation10 + $0x248] sm:$0xff]  ;;  %v837_v8 = vld [vmem:[#allocation10 + $0x240] sm:$0xff] }
  0xab   :  { %1351 = vmatprep.subr.mxu0 %v850_v58  ;;  %1422 = vmatprep.subr.mxu1 %v978_v59  ;;  %v966_v7 = vld [vmem:[#allocation10 + $0x648] sm:$0xff]  ;;  %v965_v9 = vld [vmem:[#allocation10 + $0x640] sm:$0xff] }
  0xac   :  { %1352 = vmatpush2.msra.mxu0 %v849_v60  ;;  %1423 = vmatpush2.msra.mxu1 %v977_v61  ;;  %v834_v10 = vld [vmem:[#allocation10 + $0x228] sm:$0xff]  ;;  %v833_v12 = vld [vmem:[#allocation10 + $0x220] sm:$0xff] }
  0xad   :  { %1353 = vmatprep.subr.mxu0 %v846_v62  ;;  %1424 = vmatprep.subr.mxu1 %v974_v63  ;;  %v962_v11 = vld [vmem:[#allocation10 + $0x628] sm:$0xff]  ;;  %v961_v13 = vld [vmem:[#allocation10 + $0x620] sm:$0xff] }
  0xae   :  { %1354 = vmatpush2.msra.mxu0 %v845_v0  ;;  %1425 = vmatpush2.msra.mxu1 %v973_v1  ;;  %v830_v14 = vld [vmem:[#allocation10 + $0x208] sm:$0xff]  ;;  %v829_v16 = vld [vmem:[#allocation10 + $0x200] sm:$0xff] }
  0xaf   :  { %1355 = vmatprep.subr.mxu0 %v842_v2  ;;  %1426 = vmatprep.subr.mxu1 %v970_v3  ;;  %v958_v15 = vld [vmem:[#allocation10 + $0x608] sm:$0xff]  ;;  %v957_v17 = vld [vmem:[#allocation10 + $0x600] sm:$0xff] }
  0xb0   :  { %1356 = vmatpush2.msra.mxu0 %v841_v4  ;;  %1427 = vmatpush2.msra.mxu1 %v969_v5  ;;  %v1082_v18 = vld [vmem:[#allocation10 + $0x9e8] sm:$0xff] }
  0xb1   :  { %1357 = vmatprep.subr.mxu0 %v838_v6  ;;  %1428 = vmatprep.subr.mxu1 %v966_v7  ;;  %v1210_v19 = vld [vmem:[#allocation10 + $0xde8] sm:$0xff] }
  0xb2   :  { %1358 = vmatpush2.msra.mxu0 %v837_v8  ;;  %1429 = vmatpush2.msra.mxu1 %v965_v9  ;;  %v157_v24 = vld [vmem:[#allocation6] sm:$0xff] }
  0xb3   :  { %1359 = vmatprep.subr.mxu0 %v834_v10  ;;  %1430 = vmatprep.subr.mxu1 %v962_v11  ;;  %v162_v27 = vrot.slane %v157_v24, %v2353_v22  ;;  %v170_v28 = vrot.slane %v157_v24, %v2355_v23  ;;  %v166_v30 = vrot.slane %v157_v24, %v2357_v25 }
  0xb4   :  { %1360 = vmatpush2.msra.mxu0 %v833_v12  ;;  %1431 = vmatpush2.msra.mxu1 %v961_v13  ;;  %v174_v31 = vrot.slane %v157_v24, %v2359_v26  ;;  %v178_v40 = vrot.slane %v157_v24, %v2363_v29  ;;  %v182_v51 = vrot.slane %v157_v24, %v2371_v36 }
  0xb5   :  { %1361 = vmatprep.subr.mxu0 %v830_v14  ;;  %1432 = vmatprep.subr.mxu1 %v958_v15  ;;  %v186_v52 = vrot.slane %v157_v24, %v2373_v37  ;;  %v190_v60 = vrot.slane %v157_v24, %v2376_v41 }
  0xb6   :  { %1362 = vmatpush2.msra.mxu0 %v829_v16  ;;  %1433 = vmatpush2.msra.mxu1 %v957_v17 }
  0xb7   :  { %1441 = vmatprep.subr.mxu0 %v1082_v18  ;;  %1512 = vmatprep.subr.mxu1 %v1210_v19 }
 0x130   :  { %v269_v32 = vpop.f32.mrf.mxu0  ;;  %v340_v33 = vpop.f32.mrf.mxu1 }
 0x131   :  { %v2367_v34 = vadd.f32 %v269_v32, %v162_v27  ;;  %v2369_v35 = vadd.f32 %v340_v33, %v170_v28 }
 0x132   :  { %v271_v38 = vpop.f32.mrf.mxu0  ;;  %v342_v39 = vpop.f32.mrf.mxu1 }
 0x133   :  { %v490_v42 = vsel %vm489_vm1, %v2367_v34, 0.0  ;;  %v504_v43 = vsel %vm489_vm1, %v2369_v35, 0.0  ;;  %v2382_v44 = vadd.f32 %v271_v38, %v166_v30  ;;  %v2384_v45 = vadd.f32 %v342_v39, %v174_v31 }
 0x134   :  { %v491_v46 = vrot.slane %v490_v42, 4  ;;  %v505_v47 = vrot.slane %v504_v43, 4 }
 0x135   :  { %v497_v48 = vsel %vm489_vm1, %v2382_v44, 0.0  ;;  %v511_v49 = vsel %vm489_vm1, %v2384_v45, 0.0  ;;  %v411_v50 = vpop.f32.mrf.mxu0 }
 0x136   :  { %v492_v53 = vadd.f32 %v491_v46, %v490_v42  ;;  %v506_v54 = vadd.f32 %v505_v47, %v504_v43  ;;  %v498_v55 = vrot.slane %v497_v48, 4  ;;  %v512_v56 = vrot.slane %v511_v49, 4 }
 0x137   :  { %v2392_v57 = vadd.f32 %v411_v50, %v178_v40  ;;  %v413_v58 = vpop.f32.mrf.mxu0  ;;  %v482_v59 = vpop.f32.mrf.mxu1 }
 0x138   :  { %v493_v61 = vrot.slane %v492_v53, 2  ;;  %v507_v62 = vrot.slane %v506_v54, 2  ;;  %v499_v63 = vadd.f32 %v498_v55, %v497_v48  ;;  %v513_v0 = vadd.f32 %v512_v56, %v511_v49 }
 0x139   :  { %v518_v1 = vsel %vm489_vm1, %v2392_v57, 0.0  ;;  %v2397_v2 = vadd.f32 %v413_v58, %v182_v51  ;;  %v2399_v3 = vadd.f32 %v482_v59, %v186_v52  ;;  %v484_v4 = vpop.f32.mrf.mxu1 }
 0x13a   :  { %v494_v5 = vadd.f32 %v493_v61, %v492_v53  ;;  %v508_v6 = vadd.f32 %v507_v62, %v506_v54  ;;  %v500_v7 = vrot.slane %v499_v63, 2  ;;  %v514_v8 = vrot.slane %v513_v0, 2 }
 0x13b   :  { %v519_v9 = vrot.slane %v518_v1, 4  ;;  %v525_v10 = vsel %vm489_vm1, %v2397_v2, 0.0  ;;  %v532_v11 = vsel %vm489_vm1, %v2399_v3, 0.0  ;;  %v2405_v12 = vadd.f32 %v484_v4, %v190_v60 }
 0x13c   :  { %v495_v13 = vrot.slane %v494_v5, 1  ;;  %v509_v14 = vrot.slane %v508_v6, 1  ;;  %v501_v15 = vadd.f32 %v500_v7, %v499_v63  ;;  %v515_v16 = vadd.f32 %v514_v8, %v513_v0 }
 0x13d   :  { %v520_v17 = vadd.f32 %v519_v9, %v518_v1  ;;  %v526_v18 = vrot.slane %v525_v10, 4  ;;  %v533_v19 = vrot.slane %v532_v11, 4  ;;  %v539_v20 = vsel %vm489_vm1, %v2405_v12, 0.0 }
 0x13e   :  { %v496_v21 = vadd.f32 %v495_v13, %v494_v5  ;;  %v510_v24 = vadd.f32 %v509_v14, %v508_v6  ;;  %v502_v27 = vrot.slane %v501_v15, 1  ;;  %v516_v28 = vrot.slane %v515_v16, 1 }
 0x13f   :  { %v521_v30 = vrot.slane %v520_v17, 2  ;;  %v527_v31 = vadd.f32 %v526_v18, %v525_v10  ;;  %v534_v32 = vadd.f32 %v533_v19, %v532_v11  ;;  %v540_v33 = vrot.slane %v539_v20, 4 }
 0x140   :  { %v547_v38 = vmul.f32 0.25, %v496_v21  ;;  %v549_v39 = vmul.f32 0.25, %v510_v24  ;;  %v503_v40 = vadd.f32 %v502_v27, %v501_v15  ;;  %v517_v42 = vadd.f32 %v516_v28, %v515_v16 }
 0x141   :  { %v522_v43 = vadd.f32 %v521_v30, %v520_v17  ;;  %v528_v46 = vrot.slane %v527_v31, 2  ;;  %v535_v47 = vrot.slane %v534_v32, 2  ;;  %v541_v48 = vadd.f32 %v540_v33, %v539_v20 }
 0x142   :  { %v2410_v49 = vsub.f32 %v2367_v34, %v547_v38  ;;  %v2413_v50 = vsub.f32 %v2369_v35, %v549_v39  ;;  %v548_v51 = vmul.f32 0.25, %v503_v40  ;;  %v550_v52 = vmul.f32 0.25, %v517_v42 }
 0x143   :  { %v523_v53 = vrot.slane %v522_v43, 1  ;;  %v529_v54 = vadd.f32 %v528_v46, %v527_v31  ;;  %v536_v55 = vadd.f32 %v535_v47, %v534_v32  ;;  %v542_v56 = vrot.slane %v541_v48, 2 }
 0x144   :  { %v563_v58 = vmul.f32 %v2410_v49, %v2410_v49  ;;  %v565_v59 = vmul.f32 %v2413_v50, %v2413_v50  ;;  %v2420_v60 = vsub.f32 %v2382_v44, %v548_v51  ;;  %v2423_v34 = vsub.f32 %v2384_v45, %v550_v52 }
 0x145   :  { %v524_v35 = vadd.f32 %v523_v53, %v522_v43  ;;  %v530_v61 = vrot.slane %v529_v54, 1  ;;  %v537_v62 = vrot.slane %v536_v55, 1  ;;  %v543_v63 = vadd.f32 %v542_v56, %v541_v48 }
 0x146   :  { %v571_v0 = vsel %vm489_vm1, %v563_v58, 0.0  ;;  %v585_v1 = vsel %vm489_vm1, %v565_v59, 0.0  ;;  %v564_v4 = vmul.f32 %v2420_v60, %v2420_v60  ;;  %v566_v5 = vmul.f32 %v2423_v34, %v2423_v34 }
 0x147   :  { %v572_v6 = vrot.slane %v571_v0, 4  ;;  %v586_v44 = vrot.slane %v585_v1, 4  ;;  %v551_v7 = vmul.f32 0.25, %v524_v35  ;;  %v531_v8 = vadd.f32 %v530_v61, %v529_v54 }
 0x148   :  { %v578_v45 = vsel %vm489_vm1, %v564_v4, 0.0  ;;  %v592_v9 = vsel %vm489_vm1, %v566_v5, 0.0  ;;  %v538_v10 = vadd.f32 %v537_v62, %v536_v55  ;;  %v544_v11 = vrot.slane %v543_v63, 1 }
 0x149   :  { %v573_v13 = vadd.f32 %v572_v6, %v571_v0  ;;  %v587_v14 = vadd.f32 %v586_v44, %v585_v1  ;;  %v579_v15 = vrot.slane %v578_v45, 4  ;;  %v593_v16 = vrot.slane %v592_v9, 4 }
 0x14a   :  { %v2434_v17 = vsub.f32 %v2392_v57, %v551_v7  ;;  %v552_v18 = vmul.f32 0.25, %v531_v8  ;;  %v553_v19 = vmul.f32 0.25, %v538_v10  ;;  %v545_v20 = vadd.f32 %v544_v11, %v543_v63 }
 0x14b   :  { %v574_v21 = vrot.slane %v573_v13, 2  ;;  %v588_v24 = vrot.slane %v587_v14, 2  ;;  %v580_v27 = vadd.f32 %v579_v15, %v578_v45  ;;  %v594_v28 = vadd.f32 %v593_v16, %v592_v9 }
 0x14c   :  { %v567_v30 = vmul.f32 %v2434_v17, %v2434_v17  ;;  %v2439_v31 = vsub.f32 %v2397_v2, %v552_v18  ;;  %v2442_v32 = vsub.f32 %v2399_v3, %v553_v19  ;;  %v554_v33 = vmul.f32 0.25, %v545_v20 }
 0x14d   :  { %v575_v38 = vadd.f32 %v574_v21, %v573_v13  ;;  %v589_v57 = vadd.f32 %v588_v24, %v587_v14  ;;  %v581_v39 = vrot.slane %v580_v27, 2  ;;  %v595_v40 = vrot.slane %v594_v28, 2 }
 0x14e   :  { %v599_v42 = vsel %vm489_vm1, %v567_v30, 0.0  ;;  %v568_v43 = vmul.f32 %v2439_v31, %v2439_v31  ;;  %v569_v46 = vmul.f32 %v2442_v32, %v2442_v32  ;;  %v2450_v47 = vsub.f32 %v2405_v12, %v554_v33 }
 0x14f   :  { %v576_v2 = vrot.slane %v575_v38, 1  ;;  %v590_v48 = vrot.slane %v589_v57, 1  ;;  %v582_v3 = vadd.f32 %v581_v39, %v580_v27  ;;  %v596_v51 = vadd.f32 %v595_v40, %v594_v28 }
 0x150   :  { %v600_v52 = vrot.slane %v599_v42, 4  ;;  %v606_v53 = vsel %vm489_vm1, %v568_v43, 0.0  ;;  %v613_v54 = vsel %vm489_vm1, %v569_v46, 0.0  ;;  %v570_v55 = vmul.f32 %v2450_v47, %v2450_v47 }
 0x151   :  { %v577_v56 = vadd.f32 %v576_v2, %v575_v38  ;;  %v591_v58 = vadd.f32 %v590_v48, %v589_v57  ;;  %v583_v59 = vrot.slane %v582_v3, 1  ;;  %v597_v35 = vrot.slane %v596_v51, 1 }
 0x152   :  { %v601_v61 = vadd.f32 %v600_v52, %v599_v42  ;;  %v607_v62 = vrot.slane %v606_v53, 4  ;;  %v614_v12 = vrot.slane %v613_v54, 4  ;;  %v620_v63 = vsel %vm489_vm1, %v570_v55, 0.0 }
 0x153   :  { %v627_v0 = vmul.f32 0.25, %v577_v56  ;;  %v629_v1 = vmul.f32 0.25, %v591_v58  ;;  %v584_v4 = vadd.f32 %v583_v59, %v582_v3  ;;  %v598_v5 = vadd.f32 %v597_v35, %v596_v51  ;;  %v2457_v3 = vld [vmem:[#allocation7] sm:$0xff]  ;;  %v2461_v56 = vld [vmem:[#allocation9] sm:$0xff] }
 0x154   :  { %v602_v6 = vrot.slane %v601_v61, 2  ;;  %v608_v44 = vadd.f32 %v607_v62, %v606_v53  ;;  %v615_v7 = vadd.f32 %v614_v12, %v613_v54  ;;  %v621_v8 = vrot.slane %v620_v63, 4 }
 0x155   :  { %v635_v45 = vadd.f32 1e-05, %v627_v0  ;;  %v637_v9 = vadd.f32 1e-05, %v629_v1  ;;  %v628_v10 = vmul.f32 0.25, %v584_v4  ;;  %v630_v11 = vmul.f32 0.25, %v598_v5 }
 0x156   :  { %v603_v13 = vadd.f32 %v602_v6, %v601_v61  ;;  %v609_v14 = vrot.slane %v608_v44, 2  ;;  %v616_v15 = vrot.slane %v615_v7, 2  ;;  %v622_v16 = vadd.f32 %v621_v8, %v620_v63 }
 0x157   :  { %2044 = vrsqrt.f32 %v635_v45  ;;  %v636_v18 = vadd.f32 1e-05, %v628_v10  ;;  %v638_v19 = vadd.f32 1e-05, %v630_v11  ;;  %v663_v54 = vrot.slane %v2457_v3, %v2353_v22 }
 0x158   :  { %2046 = vrsqrt.f32 %v637_v9  ;;  %v604_v20 = vrot.slane %v603_v13, 1  ;;  %v610_v21 = vadd.f32 %v609_v14, %v608_v44  ;;  %v617_v24 = vadd.f32 %v616_v15, %v615_v7 }
 0x159   :  { %2048 = vrsqrt.f32 %v636_v18  ;;  %v623_v27 = vrot.slane %v622_v16, 2  ;;  %v671_v59 = vrot.slane %v2457_v3, %v2355_v23  ;;  %v667_v62 = vrot.slane %v2457_v3, %v2357_v25 }
 0x15a   :  { %2050 = vrsqrt.f32 %v638_v19  ;;  %v605_v28 = vadd.f32 %v604_v20, %v603_v13  ;;  %v611_v30 = vrot.slane %v610_v21, 1  ;;  %v618_v33 = vrot.slane %v617_v24, 1  ;;  %v1081_v20 = vld [vmem:[#allocation10 + $0x9e0] sm:$0xff] }
 0x15b   :  { %v624_v38 = vadd.f32 %v623_v27, %v622_v16  ;;  %v675_v0 = vrot.slane %v2457_v3, %v2359_v26  ;;  %v712_v1 = vrot.slane %v2461_v56, %v2353_v22  ;;  %v720_v44 = vrot.slane %v2461_v56, %v2355_v23 }
 0x15c   :  { %v631_v57 = vmul.f32 0.25, %v605_v28  ;;  %v612_v39 = vadd.f32 %v611_v30, %v610_v21  ;;  %v619_v40 = vadd.f32 %v618_v33, %v617_v24  ;;  %v728_v21 = vrot.slane %v2461_v56, %v2363_v29  ;;  %v1209_v30 = vld [vmem:[#allocation10 + $0xde0] sm:$0xff]  ;;  %v1078_v33 = vld [vmem:[#allocation10 + $0x9c8] sm:$0xff] }
 0x15d   :  { %v625_v42 = vrot.slane %v624_v38, 1  ;;  %v687_v27 = vrot.slane %v2457_v3, %v2373_v37 }
 0x15e   :  { %v639_v43 = vadd.f32 1e-05, %v631_v57  ;;  %v632_v46 = vmul.f32 0.25, %v612_v39  ;;  %v633_v2 = vmul.f32 0.25, %v619_v40  ;;  %v1077_v40 = vld [vmem:[#allocation10 + $0x9c0] sm:$0xff] }
 0x15f   :  { %v626_v48 = vadd.f32 %v625_v42, %v624_v38 }
 0x160   :  { %2052 = vrsqrt.f32 %v639_v43  ;;  %v640_v51 = vadd.f32 1e-05, %v632_v46  ;;  %v641_v52 = vadd.f32 1e-05, %v633_v2  ;;  %v1205_v43 = vld [vmem:[#allocation10 + $0xdc0] sm:$0xff]  ;;  %v1074_v46 = vld [vmem:[#allocation10 + $0x9a8] sm:$0xff]  ;;  %v736_v2 = vrot.slane %v2461_v56, %v2373_v37 }
 0x161   :  { %v634_v53 = vmul.f32 0.25, %v626_v48  ;;  %v1202_v48 = vld [vmem:[#allocation10 + $0xda8] sm:$0xff] }
 0x162   :  { %2054 = vrsqrt.f32 %v640_v51  ;;  %v1073_v51 = vld [vmem:[#allocation10 + $0x9a0] sm:$0xff]  ;;  %v1070_v37 = vld [vmem:[#allocation10 + $0x988] sm:$0xff] }
 0x163   :  { %2056 = vrsqrt.f32 %v641_v52  ;;  %v642_v55 = vadd.f32 1e-05, %v634_v53  ;;  %v732_v52 = vrot.slane %v2461_v56, %v2371_v36 }
 0x164   :  { %v2045_v58 = vpop.eup %2044 }
 0x165   :  { %v2047_v35 = vpop.eup %2046  ;;  %v651_v61 = vmul.f32 %v2045_v58, %v2410_v49  ;;  %2058 = vrsqrt.f32 %v642_v55  ;;  %v716_v49 = vrot.slane %v2461_v56, %v2357_v25  ;;  %v1201_v58 = vld [vmem:[#allocation10 + $0xda0] sm:$0xff] }
 0x166   :  { %v2049_v12 = vpop.eup %2048  ;;  %v653_v63 = vmul.f32 %v2047_v35, %v2413_v50  ;;  %v724_v50 = vrot.slane %v2461_v56, %v2359_v26  ;;  %v1198_v35 = vld [vmem:[#allocation10 + $0xd88] sm:$0xff] }
 0x167   :  { %v2051_v4 = vpop.eup %2050  ;;  %v700_v5 = vmul.f32 %v663_v54, %v651_v61  ;;  %v652_v6 = vmul.f32 %v2049_v12, %v2420_v60  ;;  %v679_v60 = vrot.slane %v2457_v3, %v2363_v29  ;;  %v1206_v29 = vld [vmem:[#allocation10 + $0xdc8] sm:$0xff]  ;;  %v1069_v61 = vld [vmem:[#allocation10 + $0x980] sm:$0xff] }
 0x168   :  { %v702_v7 = vmul.f32 %v671_v59, %v653_v63  ;;  %v654_v8 = vmul.f32 %v2051_v4, %v2423_v34  ;;  %v1065_v63 = vld [vmem:[#allocation10 + $0x960] sm:$0xff]  ;;  %v1062_v4 = vld [vmem:[#allocation10 + $0x948] sm:$0xff] }
 0x169   :  { %v701_v45 = vmul.f32 %v667_v62, %v652_v6  ;;  %v2481_v10 = vadd.f32 %v712_v1, %v700_v5  ;;  %v1066_v62 = vld [vmem:[#allocation10 + $0x968] sm:$0xff]  ;;  %v1193_v1 = vld [vmem:[#allocation10 + $0xd60] sm:$0xff] }
 0x16a   :  { %v703_v9 = vmul.f32 %v675_v0, %v654_v8  ;;  %v2485_v13 = vadd.f32 %v720_v44, %v702_v7  ;;  %v740_v0 = vrot.slane %v2461_v56, %v2376_v41  ;;  %v1190_v6 = vld [vmem:[#allocation10 + $0xd48] sm:$0xff]  ;;  %v1189_v44 = vld [vmem:[#allocation10 + $0xd40] sm:$0xff] }
 0x16b   :  { %v2483_v11 = vadd.f32 %v716_v49, %v701_v45  ;;  %v757_v19 = vmax.f32 %v2481_v10, 0.0  ;;  %v1061_v49 = vld [vmem:[#allocation10 + $0x940] sm:$0xff]  ;;  %v1058_v7 = vld [vmem:[#allocation10 + $0x928] sm:$0xff]  ;;  %v1204_v10 = vld [vmem:[#allocation10 + $0xdb8] sm:$0xff] }
 0x16c   :  { %v2489_v14 = vadd.f32 %v724_v50, %v703_v9  ;;  %v759_v28 = vmax.f32 %v2485_v13, 0.0  ;;  %v1186_v8 = vld [vmem:[#allocation10 + $0xd28] sm:$0xff]  ;;  %v1057_v50 = vld [vmem:[#allocation10 + $0x920] sm:$0xff]  ;;  %v1203_v13 = vld [vmem:[#allocation10 + $0xdb0] sm:$0xff] }
 0x16d   :  { %v2053_v15 = vpop.eup %2052  ;;  %v758_v16 = vmax.f32 %v2483_v11, 0.0  ;;  %v1054_v56 = vld [vmem:[#allocation10 + $0x908] sm:$0xff]  ;;  %v943_v11 = vld [vmem:[#allocation10 + $0x590] sm:$0xff] }
 0x16e   :  { %v655_v34 = vmul.f32 %v2053_v15, %v2434_v17  ;;  %v760_v18 = vmax.f32 %v2489_v14, 0.0  ;;  %v683_v17 = vrot.slane %v2457_v3, %v2371_v36  ;;  %v1197_v36 = vld [vmem:[#allocation10 + $0xd80] sm:$0xff]  ;;  %v811_v14 = vld [vmem:[#allocation10 + $0x170] sm:$0xff] }
 0x16f   :  { %v2055_v24 = vpop.eup %2054  ;;  %1363 = vmatprep.mubr.f32.mxu0 %v758_v16  ;;  %v1053_v15 = vld [vmem:[#allocation10 + $0x900] sm:$0xff] }
 0x170   :  { %v2057_v38 = vpop.eup %2056  ;;  %v704_v57 = vmul.f32 %v679_v60, %v655_v34  ;;  %v656_v39 = vmul.f32 %v2055_v24, %v2439_v31  ;;  %1434 = vmatprep.mubr.f32.mxu1 %v760_v18  ;;  %1364 = vmatmul.mubr.f32.vlgmr.msra.gmra.mxu0 %v757_v19  ;;  %v1182_v60 = vld [vmem:[#allocation10 + $0xd08] sm:$0xff]  ;;  %v1181_v34 = vld [vmem:[#allocation10 + $0xd00] sm:$0xff] }
 0x171   :  { %v657_v42 = vmul.f32 %v2057_v38, %v2442_v32  ;;  %1435 = vmatmul.mubr.f32.vlgmr.msra.gmra.mxu1 %v759_v28  ;;  %1442 = vmatpush1.msra.mxu0 %v1081_v20  ;;  %v691_v32 = vrot.slane %v2457_v3, %v2376_v41  ;;  %v1194_v3 = vld [vmem:[#allocation10 + $0xd68] sm:$0xff]  ;;  %v1185_v41 = vld [vmem:[#allocation10 + $0xd20] sm:$0xff] }
 0x172   :  { %v2059_v31 = vpop.eup %2058  ;;  %1513 = vmatpush1.msra.mxu1 %v1209_v30  ;;  %1443 = vmatprep.subr.mxu0 %v1078_v33  ;;  %v2518_v53 = vadd.f32 %v728_v21, %v704_v57  ;;  %v705_v59 = vmul.f32 %v683_v17, %v656_v39  ;;  %v1050_v20 = vld [vmem:[#allocation10 + $0x8e8] sm:$0xff]  ;;  %v1177_v30 = vld [vmem:[#allocation10 + $0xce0] sm:$0xff] }
 0x173   :  { %v706_v54 = vmul.f32 %v687_v27, %v657_v42  ;;  %v658_v55 = vmul.f32 %v2059_v31, %v2450_v47  ;;  %1514 = vmatprep.subr.mxu1 %v1206_v29  ;;  %1444 = vmatpush1.msra.mxu0 %v1077_v40  ;;  %v1178_v21 = vld [vmem:[#allocation10 + $0xce8] sm:$0xff]  ;;  %v1049_v27 = vld [vmem:[#allocation10 + $0x8e0] sm:$0xff] }
 0x174   :  { %1515 = vmatpush1.msra.mxu1 %v1205_v43  ;;  %1445 = vmatprep.subr.mxu0 %v1074_v46  ;;  %v2525_v5 = vadd.f32 %v732_v52, %v705_v59  ;;  %v1046_v33 = vld [vmem:[#allocation10 + $0x8c8] sm:$0xff]  ;;  %v1045_v38 = vld [vmem:[#allocation10 + $0x8c0] sm:$0xff] }
 0x175   :  { %1516 = vmatprep.subr.mxu1 %v1202_v48  ;;  %1446 = vmatpush1.msra.mxu0 %v1073_v51  ;;  %v2521_v12 = vadd.f32 %v736_v2, %v706_v54  ;;  %v707_v47 = vmul.f32 %v691_v32, %v658_v55  ;;  %v1174_v17 = vld [vmem:[#allocation10 + $0xcc8] sm:$0xff]  ;;  %v1173_v57 = vld [vmem:[#allocation10 + $0xcc0] sm:$0xff] }
 0x176   :  { %1517 = vmatpush1.msra.mxu1 %v1201_v58  ;;  %1447 = vmatprep.subr.mxu0 %v1070_v37  ;;  %v762_v9 = vmax.f32 %v2525_v5, 0.0  ;;  %v1042_v39 = vld [vmem:[#allocation10 + $0x8a8] sm:$0xff]  ;;  %v1041_v40 = vld [vmem:[#allocation10 + $0x8a0] sm:$0xff]  ;;  %v1199_v5 = vld [vmem:[#allocation10 + $0xd90] sm:$0xff] }
 0x177   :  { %1518 = vmatprep.subr.mxu1 %v1198_v35  ;;  %1448 = vmatpush1.msra.mxu0 %v1069_v61  ;;  %v2527_v45 = vadd.f32 %v740_v0, %v707_v47  ;;  %v1170_v29 = vld [vmem:[#allocation10 + $0xca8] sm:$0xff]  ;;  %v1169_v42 = vld [vmem:[#allocation10 + $0xca0] sm:$0xff] }
 0x178   :  { %1519 = vmatpush1.msra.mxu1 %v1197_v36  ;;  %1449 = vmatprep.subr.mxu0 %v1066_v62  ;;  %v1038_v43 = vld [vmem:[#allocation10 + $0x888] sm:$0xff]  ;;  %v1037_v2 = vld [vmem:[#allocation10 + $0x880] sm:$0xff] }
 0x179   :  { %1520 = vmatprep.subr.mxu1 %v1194_v3  ;;  %1450 = vmatpush1.msra.mxu0 %v1065_v63  ;;  %v764_v24 = vmax.f32 %v2527_v45, 0.0  ;;  %v1166_v46 = vld [vmem:[#allocation10 + $0xc88] sm:$0xff]  ;;  %v1165_v31 = vld [vmem:[#allocation10 + $0xc80] sm:$0xff]  ;;  %v1067_v45 = vld [vmem:[#allocation10 + $0x970] sm:$0xff] }
 0x17a   :  { %1521 = vmatpush1.msra.mxu1 %v1193_v1  ;;  %1451 = vmatprep.subr.mxu0 %v1062_v4  ;;  %v1034_v48 = vld [vmem:[#allocation10 + $0x868] sm:$0xff]  ;;  %v1033_v52 = vld [vmem:[#allocation10 + $0x860] sm:$0xff] }
 0x17b   :  { %1522 = vmatprep.subr.mxu1 %v1190_v6  ;;  %1452 = vmatpush1.msra.mxu0 %v1061_v49  ;;  %v1162_v51 = vld [vmem:[#allocation10 + $0xc68] sm:$0xff]  ;;  %v1161_v32 = vld [vmem:[#allocation10 + $0xc60] sm:$0xff] }
 0x17c   :  { %1523 = vmatpush1.msra.mxu1 %v1189_v44  ;;  %1453 = vmatprep.subr.mxu0 %v1058_v7  ;;  %v1030_v54 = vld [vmem:[#allocation10 + $0x848] sm:$0xff]  ;;  %v1029_v58 = vld [vmem:[#allocation10 + $0x840] sm:$0xff] }
 0x17d   :  { %1524 = vmatprep.subr.mxu1 %v1186_v8  ;;  %1454 = vmatpush1.msra.mxu0 %v1057_v50  ;;  %v1158_v55 = vld [vmem:[#allocation10 + $0xc48] sm:$0xff]  ;;  %v1157_v37 = vld [vmem:[#allocation10 + $0xc40] sm:$0xff] }
 0x17e   :  { %1525 = vmatpush1.msra.mxu1 %v1185_v41  ;;  %1455 = vmatprep.subr.mxu0 %v1054_v56  ;;  %v1026_v59 = vld [vmem:[#allocation10 + $0x828] sm:$0xff]  ;;  %v1025_v61 = vld [vmem:[#allocation10 + $0x820] sm:$0xff] }
 0x17f   :  { %1505 = vmatprep.mubr.f32.mxu0 %v762_v9  ;;  %1526 = vmatprep.subr.mxu1 %v1182_v60  ;;  %v1154_v35 = vld [vmem:[#allocation10 + $0xc28] sm:$0xff]  ;;  %v1153_v36 = vld [vmem:[#allocation10 + $0xc20] sm:$0xff] }
 0x180   :  { %1456 = vmatpush1.msra.mxu0 %v1053_v15  ;;  %1527 = vmatpush1.msra.mxu1 %v1181_v34  ;;  %v1022_v62 = vld [vmem:[#allocation10 + $0x808] sm:$0xff]  ;;  %v1021_v63 = vld [vmem:[#allocation10 + $0x800] sm:$0xff] }
 0x181   :  { %1457 = vmatprep.subr.mxu0 %v1050_v20  ;;  %1528 = vmatprep.subr.mxu1 %v1178_v21  ;;  %v1150_v3 = vld [vmem:[#allocation10 + $0xc08] sm:$0xff]  ;;  %v1149_v47 = vld [vmem:[#allocation10 + $0xc00] sm:$0xff] }
 0x182   :  { %1576 = vmatprep.mubr.f32.mxu1 %v764_v24  ;;  %1458 = vmatpush1.msra.mxu0 %v1049_v27  ;;  %v1146_v0 = vld [vmem:[#allocation10 + $0xbe8] sm:$0xff]  ;;  %v1145_v4 = vld [vmem:[#allocation10 + $0xbe0] sm:$0xff] }
 0x183   :  { %1529 = vmatpush1.msra.mxu1 %v1177_v30  ;;  %1459 = vmatprep.subr.mxu0 %v1046_v33  ;;  %v1274_v1 = vld [vmem:[#allocation10 + $0xfe8] sm:$0xff]  ;;  %v1273_v6 = vld [vmem:[#allocation10 + $0xfe0] sm:$0xff] }
 0x184   :  { %1530 = vmatprep.subr.mxu1 %v1174_v17  ;;  %1460 = vmatpush1.msra.mxu0 %v1045_v38  ;;  %v1142_v49 = vld [vmem:[#allocation10 + $0xbc8] sm:$0xff]  ;;  %v1141_v7 = vld [vmem:[#allocation10 + $0xbc0] sm:$0xff] }
 0x185   :  { %1531 = vmatpush1.msra.mxu1 %v1173_v57  ;;  %1461 = vmatprep.subr.mxu0 %v1042_v39  ;;  %v1270_v44 = vld [vmem:[#allocation10 + $0xfc8] sm:$0xff]  ;;  %v1269_v8 = vld [vmem:[#allocation10 + $0xfc0] sm:$0xff] }
 0x186   :  { %1532 = vmatprep.subr.mxu1 %v1170_v29  ;;  %1462 = vmatpush1.msra.mxu0 %v1041_v40  ;;  %v1138_v50 = vld [vmem:[#allocation10 + $0xba8] sm:$0xff]  ;;  %v1137_v56 = vld [vmem:[#allocation10 + $0xba0] sm:$0xff] }
 0x187   :  { %1533 = vmatpush1.msra.mxu1 %v1169_v42  ;;  %1463 = vmatprep.subr.mxu0 %v1038_v43  ;;  %v1266_v41 = vld [vmem:[#allocation10 + $0xfa8] sm:$0xff]  ;;  %v1265_v60 = vld [vmem:[#allocation10 + $0xfa0] sm:$0xff] }
 0x188   :  { %1534 = vmatprep.subr.mxu1 %v1166_v46  ;;  %1464 = vmatpush1.msra.mxu0 %v1037_v2  ;;  %v1134_v15 = vld [vmem:[#allocation10 + $0xb88] sm:$0xff]  ;;  %v1133_v20 = vld [vmem:[#allocation10 + $0xb80] sm:$0xff] }
 0x189   :  { %1535 = vmatpush1.msra.mxu1 %v1165_v31  ;;  %1465 = vmatprep.subr.mxu0 %v1034_v48  ;;  %v1262_v34 = vld [vmem:[#allocation10 + $0xf88] sm:$0xff]  ;;  %v1261_v21 = vld [vmem:[#allocation10 + $0xf80] sm:$0xff] }
 0x18a   :  { %1536 = vmatprep.subr.mxu1 %v1162_v51  ;;  %1466 = vmatpush1.msra.mxu0 %v1033_v52  ;;  %v1130_v27 = vld [vmem:[#allocation10 + $0xb68] sm:$0xff]  ;;  %v1129_v33 = vld [vmem:[#allocation10 + $0xb60] sm:$0xff] }
 0x18b   :  { %1537 = vmatpush1.msra.mxu1 %v1161_v32  ;;  %1467 = vmatprep.subr.mxu0 %v1030_v54  ;;  %v1258_v30 = vld [vmem:[#allocation10 + $0xf68] sm:$0xff]  ;;  %v1257_v17 = vld [vmem:[#allocation10 + $0xf60] sm:$0xff] }
 0x18c   :  { %1538 = vmatprep.subr.mxu1 %v1158_v55  ;;  %1468 = vmatpush1.msra.mxu0 %v1029_v58  ;;  %v1126_v38 = vld [vmem:[#allocation10 + $0xb48] sm:$0xff]  ;;  %v1125_v39 = vld [vmem:[#allocation10 + $0xb40] sm:$0xff] }
 0x18d   :  { %1539 = vmatpush1.msra.mxu1 %v1157_v37  ;;  %1469 = vmatprep.subr.mxu0 %v1026_v59  ;;  %v1254_v57 = vld [vmem:[#allocation10 + $0xf48] sm:$0xff]  ;;  %v1253_v29 = vld [vmem:[#allocation10 + $0xf40] sm:$0xff] }
 0x18e   :  { %1540 = vmatprep.subr.mxu1 %v1154_v35  ;;  %1470 = vmatpush1.msra.mxu0 %v1025_v61  ;;  %v1122_v40 = vld [vmem:[#allocation10 + $0xb28] sm:$0xff]  ;;  %v1121_v43 = vld [vmem:[#allocation10 + $0xb20] sm:$0xff] }
 0x18f   :  { %1541 = vmatpush1.msra.mxu1 %v1153_v36  ;;  %1471 = vmatprep.subr.mxu0 %v1022_v62  ;;  %v1250_v42 = vld [vmem:[#allocation10 + $0xf28] sm:$0xff]  ;;  %v1249_v46 = vld [vmem:[#allocation10 + $0xf20] sm:$0xff] }
 0x190   :  { %1542 = vmatprep.subr.mxu1 %v1150_v3  ;;  %1472 = vmatpush1.msra.mxu0 %v1021_v63  ;;  %v1118_v2 = vld [vmem:[#allocation10 + $0xb08] sm:$0xff]  ;;  %v1117_v48 = vld [vmem:[#allocation10 + $0xb00] sm:$0xff] }
 0x191   :  { %1543 = vmatpush1.msra.mxu1 %v1149_v47  ;;  %1473 = vmatprep.subr.mxu0 %v1146_v0  ;;  %v1246_v31 = vld [vmem:[#allocation10 + $0xf08] sm:$0xff]  ;;  %v1245_v51 = vld [vmem:[#allocation10 + $0xf00] sm:$0xff] }
 0x192   :  { %1544 = vmatprep.subr.mxu1 %v1274_v1  ;;  %1474 = vmatpush2.msra.mxu0 %v1145_v4  ;;  %v1114_v52 = vld [vmem:[#allocation10 + $0xae8] sm:$0xff]  ;;  %v1113_v54 = vld [vmem:[#allocation10 + $0xae0] sm:$0xff] }
 0x193   :  { %1545 = vmatpush2.msra.mxu1 %v1273_v6  ;;  %1475 = vmatprep.subr.mxu0 %v1142_v49  ;;  %v1242_v32 = vld [vmem:[#allocation10 + $0xee8] sm:$0xff]  ;;  %v1241_v55 = vld [vmem:[#allocation10 + $0xee0] sm:$0xff] }
 0x194   :  { %1546 = vmatprep.subr.mxu1 %v1270_v44  ;;  %1476 = vmatpush2.msra.mxu0 %v1141_v7  ;;  %v1110_v58 = vld [vmem:[#allocation10 + $0xac8] sm:$0xff]  ;;  %v1109_v59 = vld [vmem:[#allocation10 + $0xac0] sm:$0xff] }
 0x195   :  { %1547 = vmatpush2.msra.mxu1 %v1269_v8  ;;  %1477 = vmatprep.subr.mxu0 %v1138_v50  ;;  %v1238_v37 = vld [vmem:[#allocation10 + $0xec8] sm:$0xff]  ;;  %v1237_v35 = vld [vmem:[#allocation10 + $0xec0] sm:$0xff] }
 0x196   :  { %1548 = vmatprep.subr.mxu1 %v1266_v41  ;;  %1478 = vmatpush2.msra.mxu0 %v1137_v56  ;;  %v1106_v61 = vld [vmem:[#allocation10 + $0xaa8] sm:$0xff]  ;;  %v1105_v62 = vld [vmem:[#allocation10 + $0xaa0] sm:$0xff] }
 0x197   :  { %1549 = vmatpush2.msra.mxu1 %v1265_v60  ;;  %1479 = vmatprep.subr.mxu0 %v1134_v15  ;;  %v1234_v36 = vld [vmem:[#allocation10 + $0xea8] sm:$0xff]  ;;  %v1233_v3 = vld [vmem:[#allocation10 + $0xea0] sm:$0xff] }
 0x198   :  { %1550 = vmatprep.subr.mxu1 %v1262_v34  ;;  %1480 = vmatpush2.msra.mxu0 %v1133_v20  ;;  %v1102_v63 = vld [vmem:[#allocation10 + $0xa88] sm:$0xff]  ;;  %v1101_v0 = vld [vmem:[#allocation10 + $0xa80] sm:$0xff] }
 0x199   :  { %1551 = vmatpush2.msra.mxu1 %v1261_v21  ;;  %1481 = vmatprep.subr.mxu0 %v1130_v27  ;;  %v1230_v47 = vld [vmem:[#allocation10 + $0xe88] sm:$0xff]  ;;  %v1229_v1 = vld [vmem:[#allocation10 + $0xe80] sm:$0xff] }
 0x19a   :  { %1552 = vmatprep.subr.mxu1 %v1258_v30  ;;  %1482 = vmatpush2.msra.mxu0 %v1129_v33  ;;  %v1098_v4 = vld [vmem:[#allocation10 + $0xa68] sm:$0xff]  ;;  %v1097_v49 = vld [vmem:[#allocation10 + $0xa60] sm:$0xff]  ;;  %v761_v33 = vmax.f32 %v2518_v53, 0.0 }
 0x19b   :  { %1553 = vmatpush2.msra.mxu1 %v1257_v17  ;;  %1483 = vmatprep.subr.mxu0 %v1126_v38  ;;  %v1226_v6 = vld [vmem:[#allocation10 + $0xe68] sm:$0xff]  ;;  %v1225_v44 = vld [vmem:[#allocation10 + $0xe60] sm:$0xff]  ;;  %v828_v17 = vld [vmem:[#allocation10 + $0x1f8] sm:$0xff]  ;;  %v763_v38 = vmax.f32 %v2521_v12, 0.0 }
 0x19c   :  { %1554 = vmatprep.subr.mxu1 %v1254_v57  ;;  %1484 = vmatpush2.msra.mxu0 %v1125_v39  ;;  %v1094_v7 = vld [vmem:[#allocation10 + $0xa48] sm:$0xff]  ;;  %v1093_v50 = vld [vmem:[#allocation10 + $0xa40] sm:$0xff]  ;;  %v956_v57 = vld [vmem:[#allocation10 + $0x5f8] sm:$0xff] }
 0x19d   :  { %1555 = vmatpush2.msra.mxu1 %v1253_v29  ;;  %1485 = vmatprep.subr.mxu0 %v1122_v40  ;;  %v1222_v8 = vld [vmem:[#allocation10 + $0xe48] sm:$0xff]  ;;  %v1221_v41 = vld [vmem:[#allocation10 + $0xe40] sm:$0xff]  ;;  %v827_v39 = vld [vmem:[#allocation10 + $0x1f0] sm:$0xff] }
 0x19e   :  { %1556 = vmatprep.subr.mxu1 %v1250_v42  ;;  %1486 = vmatpush2.msra.mxu0 %v1121_v43  ;;  %v1090_v56 = vld [vmem:[#allocation10 + $0xa28] sm:$0xff]  ;;  %v1089_v15 = vld [vmem:[#allocation10 + $0xa20] sm:$0xff]  ;;  %v955_v29 = vld [vmem:[#allocation10 + $0x5f0] sm:$0xff] }
 0x19f   :  { %1557 = vmatpush2.msra.mxu1 %v1249_v46  ;;  %1487 = vmatprep.subr.mxu0 %v1118_v2  ;;  %v1218_v60 = vld [vmem:[#allocation10 + $0xe28] sm:$0xff]  ;;  %v1217_v34 = vld [vmem:[#allocation10 + $0xe20] sm:$0xff]  ;;  %v824_v40 = vld [vmem:[#allocation10 + $0x1d8] sm:$0xff] }
 0x1a0   :  { %1558 = vmatprep.subr.mxu1 %v1246_v31  ;;  %1488 = vmatpush2.msra.mxu0 %v1117_v48  ;;  %v1086_v20 = vld [vmem:[#allocation10 + $0xa08] sm:$0xff]  ;;  %v1085_v27 = vld [vmem:[#allocation10 + $0xa00] sm:$0xff]  ;;  %v952_v42 = vld [vmem:[#allocation10 + $0x5d8] sm:$0xff] }
 0x1a1   :  { %1559 = vmatpush2.msra.mxu1 %v1245_v51  ;;  %1489 = vmatprep.subr.mxu0 %v1114_v52  ;;  %v1214_v21 = vld [vmem:[#allocation10 + $0xe08] sm:$0xff]  ;;  %v1213_v30 = vld [vmem:[#allocation10 + $0xe00] sm:$0xff]  ;;  %v823_v43 = vld [vmem:[#allocation10 + $0x1d0] sm:$0xff] }
 0x1a2   :  { %1560 = vmatprep.subr.mxu1 %v1242_v32  ;;  %1490 = vmatpush2.msra.mxu0 %v1113_v54  ;;  %v951_v46 = vld [vmem:[#allocation10 + $0x5d0] sm:$0xff]  ;;  %v820_v2 = vld [vmem:[#allocation10 + $0x1b8] sm:$0xff] }
 0x1a3   :  { %1561 = vmatpush2.msra.mxu1 %v1241_v55  ;;  %1491 = vmatprep.subr.mxu0 %v1110_v58  ;;  %v948_v31 = vld [vmem:[#allocation10 + $0x5b8] sm:$0xff]  ;;  %v819_v48 = vld [vmem:[#allocation10 + $0x1b0] sm:$0xff] }
 0x1a4   :  { %1562 = vmatprep.subr.mxu1 %v1238_v37  ;;  %1492 = vmatpush2.msra.mxu0 %v1109_v59  ;;  %v947_v51 = vld [vmem:[#allocation10 + $0x5b0] sm:$0xff]  ;;  %v816_v52 = vld [vmem:[#allocation10 + $0x198] sm:$0xff] }
 0x1a5   :  { %1563 = vmatpush2.msra.mxu1 %v1237_v35  ;;  %1493 = vmatprep.subr.mxu0 %v1106_v61  ;;  %v944_v32 = vld [vmem:[#allocation10 + $0x598] sm:$0xff]  ;;  %v815_v54 = vld [vmem:[#allocation10 + $0x190] sm:$0xff] }
 0x1a6   :  { %1564 = vmatprep.subr.mxu1 %v1234_v36  ;;  %1494 = vmatpush2.msra.mxu0 %v1105_v62  ;;  %v940_v55 = vld [vmem:[#allocation10 + $0x578] sm:$0xff]  ;;  %v807_v59 = vld [vmem:[#allocation10 + $0x150] sm:$0xff] }
 0x1a7   :  { %1565 = vmatpush2.msra.mxu1 %v1233_v3  ;;  %1495 = vmatprep.subr.mxu0 %v1102_v63  ;;  %v808_v58 = vld [vmem:[#allocation10 + $0x158] sm:$0xff]  ;;  %v935_v35 = vld [vmem:[#allocation10 + $0x550] sm:$0xff] }
 0x1a8   :  { %1566 = vmatprep.subr.mxu1 %v1230_v47  ;;  %1496 = vmatpush2.msra.mxu0 %v1101_v0  ;;  %v936_v37 = vld [vmem:[#allocation10 + $0x558] sm:$0xff]  ;;  %v803_v62 = vld [vmem:[#allocation10 + $0x130] sm:$0xff] }
 0x1a9   :  { %1567 = vmatpush2.msra.mxu1 %v1229_v1  ;;  %1497 = vmatprep.subr.mxu0 %v1098_v4  ;;  %v804_v61 = vld [vmem:[#allocation10 + $0x138] sm:$0xff]  ;;  %v931_v3 = vld [vmem:[#allocation10 + $0x530] sm:$0xff] }
 0x1aa   :  { %1568 = vmatprep.subr.mxu1 %v1226_v6  ;;  %1498 = vmatpush2.msra.mxu0 %v1097_v49  ;;  %v932_v36 = vld [vmem:[#allocation10 + $0x538] sm:$0xff]  ;;  %v799_v0 = vld [vmem:[#allocation10 + $0x110] sm:$0xff] }
 0x1ab   :  { %1569 = vmatpush2.msra.mxu1 %v1225_v44  ;;  %1499 = vmatprep.subr.mxu0 %v1094_v7  ;;  %v800_v63 = vld [vmem:[#allocation10 + $0x118] sm:$0xff]  ;;  %v927_v1 = vld [vmem:[#allocation10 + $0x510] sm:$0xff] }
 0x1ac   :  { %1570 = vmatprep.subr.mxu1 %v1222_v8  ;;  %1500 = vmatpush2.msra.mxu0 %v1093_v50  ;;  %v928_v47 = vld [vmem:[#allocation10 + $0x518] sm:$0xff]  ;;  %v795_v49 = vld [vmem:[#allocation10 + $0xf0] sm:$0xff] }
 0x1ad   :  { %1571 = vmatpush2.msra.mxu1 %v1221_v41  ;;  %1501 = vmatprep.subr.mxu0 %v1090_v56  ;;  %v796_v4 = vld [vmem:[#allocation10 + $0xf8] sm:$0xff]  ;;  %v923_v44 = vld [vmem:[#allocation10 + $0x4f0] sm:$0xff] }
 0x1ae   :  { %1572 = vmatprep.subr.mxu1 %v1218_v60  ;;  %1502 = vmatpush2.msra.mxu0 %v1089_v15  ;;  %v924_v6 = vld [vmem:[#allocation10 + $0x4f8] sm:$0xff]  ;;  %v791_v50 = vld [vmem:[#allocation10 + $0xd0] sm:$0xff] }
 0x1af   :  { %1573 = vmatpush2.msra.mxu1 %v1217_v34  ;;  %1503 = vmatprep.subr.mxu0 %v1086_v20  ;;  %v792_v7 = vld [vmem:[#allocation10 + $0xd8] sm:$0xff]  ;;  %v919_v41 = vld [vmem:[#allocation10 + $0x4d0] sm:$0xff] }
 0x1b0   :  { %1574 = vmatprep.subr.mxu1 %v1214_v21  ;;  %1504 = vmatpush2.msra.mxu0 %v1085_v27  ;;  %v920_v8 = vld [vmem:[#allocation10 + $0x4d8] sm:$0xff]  ;;  %v787_v15 = vld [vmem:[#allocation10 + $0xb0] sm:$0xff] }
 0x1b1   :  { %1575 = vmatpush2.msra.mxu1 %v1213_v30  ;;  %1506 = vmatmul.mubr.f32.vlgmr.msra.gmra.mxu0 %v761_v33  ;;  %v788_v56 = vld [vmem:[#allocation10 + $0xb8] sm:$0xff]  ;;  %v915_v34 = vld [vmem:[#allocation10 + $0x4b0] sm:$0xff] }
 0x1b2   :  { %1577 = vmatmul.mubr.f32.vlgmr.msra.gmra.mxu1 %v763_v38  ;;  %1583 = vmatprep.subr.mxu0 %v828_v17  ;;  %v916_v60 = vld [vmem:[#allocation10 + $0x4b8] sm:$0xff]  ;;  %v783_v27 = vld [vmem:[#allocation10 + $0x90] sm:$0xff] }
 0x1b3   :  { %1654 = vmatprep.subr.mxu1 %v956_v57  ;;  %1584 = vmatpush1.msra.mxu0 %v827_v39  ;;  %v784_v20 = vld [vmem:[#allocation10 + $0x98] sm:$0xff]  ;;  %v911_v30 = vld [vmem:[#allocation10 + $0x490] sm:$0xff] }
 0x1b4   :  { %1647 = vmatprep.mubr.f32.mxu0 %v758_v16  ;;  %1655 = vmatpush1.msra.mxu1 %v955_v29  ;;  %v812_v16 = vld [vmem:[#allocation10 + $0x178] sm:$0xff]  ;;  %v779_v39 = vld [vmem:[#allocation10 + $0x70] sm:$0xff] }
 0x1b5   :  { %1718 = vmatprep.mubr.f32.mxu1 %v760_v18  ;;  %1585 = vmatprep.subr.mxu0 %v824_v40  ;;  %v939_v18 = vld [vmem:[#allocation10 + $0x570] sm:$0xff]  ;;  %v912_v21 = vld [vmem:[#allocation10 + $0x498] sm:$0xff] }
 0x1b6   :  { %1656 = vmatprep.subr.mxu1 %v952_v42  ;;  %1586 = vmatpush1.msra.mxu0 %v823_v43  ;;  %v780_v17 = vld [vmem:[#allocation10 + $0x78] sm:$0xff]  ;;  %v907_v29 = vld [vmem:[#allocation10 + $0x470] sm:$0xff] }
 0x1b7   :  { %1657 = vmatpush1.msra.mxu1 %v951_v46  ;;  %1587 = vmatprep.subr.mxu0 %v820_v2  ;;  %v908_v57 = vld [vmem:[#allocation10 + $0x478] sm:$0xff]  ;;  %v775_v43 = vld [vmem:[#allocation10 + $0x50] sm:$0xff] }
 0x1b8   :  { %1658 = vmatprep.subr.mxu1 %v948_v31  ;;  %1588 = vmatpush1.msra.mxu0 %v819_v48  ;;  %v776_v40 = vld [vmem:[#allocation10 + $0x58] sm:$0xff]  ;;  %v903_v46 = vld [vmem:[#allocation10 + $0x450] sm:$0xff] }
 0x1b9   :  { %1659 = vmatpush1.msra.mxu1 %v947_v51  ;;  %1589 = vmatprep.subr.mxu0 %v816_v52  ;;  %v904_v42 = vld [vmem:[#allocation10 + $0x458] sm:$0xff]  ;;  %v771_v48 = vld [vmem:[#allocation10 + $0x30] sm:$0xff] }
 0x1ba   :  { %1660 = vmatprep.subr.mxu1 %v944_v32  ;;  %1590 = vmatpush1.msra.mxu0 %v815_v54  ;;  %v772_v2 = vld [vmem:[#allocation10 + $0x38] sm:$0xff]  ;;  %v899_v51 = vld [vmem:[#allocation10 + $0x430] sm:$0xff] }
 0x1bb   :  { %1661 = vmatpush1.msra.mxu1 %v943_v11  ;;  %1591 = vmatprep.subr.mxu0 %v812_v16  ;;  %v900_v31 = vld [vmem:[#allocation10 + $0x438] sm:$0xff]  ;;  %v767_v54 = vld [vmem:[#allocation10 + $0x10] sm:$0xff] }
 0x1bc   :  { %1662 = vmatprep.subr.mxu1 %v940_v55  ;;  %1592 = vmatpush1.msra.mxu0 %v811_v14  ;;  %v768_v52 = vld [vmem:[#allocation10 + $0x18] sm:$0xff]  ;;  %v895_v11 = vld [vmem:[#allocation10 + $0x410] sm:$0xff] }
 0x1bd   :  { %1663 = vmatpush1.msra.mxu1 %v939_v18  ;;  %1593 = vmatprep.subr.mxu0 %v808_v58  ;;  %v896_v32 = vld [vmem:[#allocation10 + $0x418] sm:$0xff]  ;;  %v891_v14 = vld [vmem:[#allocation10 + $0x3f0] sm:$0xff] }
 0x1be   :  { %1664 = vmatprep.subr.mxu1 %v936_v37  ;;  %1594 = vmatpush1.msra.mxu0 %v807_v59  ;;  %v892_v16 = vld [vmem:[#allocation10 + $0x3f8] sm:$0xff]  ;;  %v1019_v18 = vld [vmem:[#allocation10 + $0x7f0] sm:$0xff] }
 0x1bf   :  { %1665 = vmatpush1.msra.mxu1 %v935_v35  ;;  %1595 = vmatprep.subr.mxu0 %v804_v61  ;;  %v1020_v55 = vld [vmem:[#allocation10 + $0x7f8] sm:$0xff]  ;;  %v887_v59 = vld [vmem:[#allocation10 + $0x3d0] sm:$0xff] }
 0x1c0   :  { %1666 = vmatprep.subr.mxu1 %v932_v36  ;;  %1596 = vmatpush1.msra.mxu0 %v803_v62  ;;  %v888_v58 = vld [vmem:[#allocation10 + $0x3d8] sm:$0xff]  ;;  %v1015_v35 = vld [vmem:[#allocation10 + $0x7d0] sm:$0xff] }
 0x1c1   :  { %1667 = vmatpush1.msra.mxu1 %v931_v3  ;;  %1597 = vmatprep.subr.mxu0 %v800_v63  ;;  %v1016_v37 = vld [vmem:[#allocation10 + $0x7d8] sm:$0xff]  ;;  %v883_v62 = vld [vmem:[#allocation10 + $0x3b0] sm:$0xff] }
 0x1c2   :  { %1668 = vmatprep.subr.mxu1 %v928_v47  ;;  %1598 = vmatpush1.msra.mxu0 %v799_v0  ;;  %v884_v61 = vld [vmem:[#allocation10 + $0x3b8] sm:$0xff]  ;;  %v1011_v3 = vld [vmem:[#allocation10 + $0x7b0] sm:$0xff] }
 0x1c3   :  { %1669 = vmatpush1.msra.mxu1 %v927_v1  ;;  %1599 = vmatprep.subr.mxu0 %v796_v4  ;;  %v1012_v36 = vld [vmem:[#allocation10 + $0x7b8] sm:$0xff]  ;;  %v879_v0 = vld [vmem:[#allocation10 + $0x390] sm:$0xff] }
 0x1c4   :  { %1670 = vmatprep.subr.mxu1 %v924_v6  ;;  %1600 = vmatpush1.msra.mxu0 %v795_v49  ;;  %v880_v63 = vld [vmem:[#allocation10 + $0x398] sm:$0xff]  ;;  %v1007_v1 = vld [vmem:[#allocation10 + $0x790] sm:$0xff] }
 0x1c5   :  { %1671 = vmatpush1.msra.mxu1 %v923_v44  ;;  %1601 = vmatprep.subr.mxu0 %v792_v7  ;;  %v1008_v47 = vld [vmem:[#allocation10 + $0x798] sm:$0xff]  ;;  %v875_v49 = vld [vmem:[#allocation10 + $0x370] sm:$0xff] }
 0x1c6   :  { %1672 = vmatprep.subr.mxu1 %v920_v8  ;;  %1602 = vmatpush1.msra.mxu0 %v791_v50  ;;  %v876_v4 = vld [vmem:[#allocation10 + $0x378] sm:$0xff]  ;;  %v1003_v44 = vld [vmem:[#allocation10 + $0x770] sm:$0xff] }
 0x1c7   :  { %1673 = vmatpush1.msra.mxu1 %v919_v41  ;;  %1603 = vmatprep.subr.mxu0 %v788_v56  ;;  %v1004_v6 = vld [vmem:[#allocation10 + $0x778] sm:$0xff]  ;;  %v871_v50 = vld [vmem:[#allocation10 + $0x350] sm:$0xff] }
 0x1c8   :  { %1674 = vmatprep.subr.mxu1 %v916_v60  ;;  %1604 = vmatpush1.msra.mxu0 %v787_v15  ;;  %v872_v7 = vld [vmem:[#allocation10 + $0x358] sm:$0xff]  ;;  %v999_v41 = vld [vmem:[#allocation10 + $0x750] sm:$0xff] }
 0x1c9   :  { %1675 = vmatpush1.msra.mxu1 %v915_v34  ;;  %1605 = vmatprep.subr.mxu0 %v784_v20  ;;  %v1000_v8 = vld [vmem:[#allocation10 + $0x758] sm:$0xff]  ;;  %v867_v15 = vld [vmem:[#allocation10 + $0x330] sm:$0xff] }
 0x1ca   :  { %1676 = vmatprep.subr.mxu1 %v912_v21  ;;  %1606 = vmatpush1.msra.mxu0 %v783_v27  ;;  %v868_v56 = vld [vmem:[#allocation10 + $0x338] sm:$0xff]  ;;  %v995_v34 = vld [vmem:[#allocation10 + $0x730] sm:$0xff] }
 0x1cb   :  { %1677 = vmatpush1.msra.mxu1 %v911_v30  ;;  %1607 = vmatprep.subr.mxu0 %v780_v17  ;;  %v996_v60 = vld [vmem:[#allocation10 + $0x738] sm:$0xff]  ;;  %v863_v27 = vld [vmem:[#allocation10 + $0x310] sm:$0xff] }
 0x1cc   :  { %1678 = vmatprep.subr.mxu1 %v908_v57  ;;  %1608 = vmatpush1.msra.mxu0 %v779_v39  ;;  %v864_v20 = vld [vmem:[#allocation10 + $0x318] sm:$0xff]  ;;  %v991_v30 = vld [vmem:[#allocation10 + $0x710] sm:$0xff] }
 0x1cd   :  { %1679 = vmatpush1.msra.mxu1 %v907_v29  ;;  %1609 = vmatprep.subr.mxu0 %v776_v40  ;;  %v992_v21 = vld [vmem:[#allocation10 + $0x718] sm:$0xff]  ;;  %v859_v39 = vld [vmem:[#allocation10 + $0x2f0] sm:$0xff] }
 0x1ce   :  { %1680 = vmatprep.subr.mxu1 %v904_v42  ;;  %1610 = vmatpush1.msra.mxu0 %v775_v43  ;;  %v860_v17 = vld [vmem:[#allocation10 + $0x2f8] sm:$0xff]  ;;  %v987_v29 = vld [vmem:[#allocation10 + $0x6f0] sm:$0xff] }
 0x1cf   :  { %1681 = vmatpush1.msra.mxu1 %v903_v46  ;;  %1611 = vmatprep.subr.mxu0 %v772_v2  ;;  %v988_v57 = vld [vmem:[#allocation10 + $0x6f8] sm:$0xff]  ;;  %v855_v43 = vld [vmem:[#allocation10 + $0x2d0] sm:$0xff] }
 0x1d0   :  { %1682 = vmatprep.subr.mxu1 %v900_v31  ;;  %1612 = vmatpush1.msra.mxu0 %v771_v48  ;;  %v856_v40 = vld [vmem:[#allocation10 + $0x2d8] sm:$0xff]  ;;  %v983_v46 = vld [vmem:[#allocation10 + $0x6d0] sm:$0xff] }
 0x1d1   :  { %1683 = vmatpush1.msra.mxu1 %v899_v51  ;;  %1613 = vmatprep.subr.mxu0 %v768_v52  ;;  %v984_v42 = vld [vmem:[#allocation10 + $0x6d8] sm:$0xff]  ;;  %v851_v48 = vld [vmem:[#allocation10 + $0x2b0] sm:$0xff] }
 0x1d2   :  { %1684 = vmatprep.subr.mxu1 %v896_v32  ;;  %1614 = vmatpush1.msra.mxu0 %v767_v54  ;;  %v852_v2 = vld [vmem:[#allocation10 + $0x2b8] sm:$0xff]  ;;  %v979_v51 = vld [vmem:[#allocation10 + $0x6b0] sm:$0xff] }
 0x1d3   :  { %1685 = vmatpush1.msra.mxu1 %v895_v11  ;;  %1615 = vmatprep.subr.mxu0 %v892_v16  ;;  %v980_v31 = vld [vmem:[#allocation10 + $0x6b8] sm:$0xff]  ;;  %v847_v54 = vld [vmem:[#allocation10 + $0x290] sm:$0xff] }
 0x1d4   :  { %1686 = vmatprep.subr.mxu1 %v1020_v55  ;;  %1616 = vmatpush2.msra.mxu0 %v891_v14  ;;  %v848_v52 = vld [vmem:[#allocation10 + $0x298] sm:$0xff]  ;;  %v975_v11 = vld [vmem:[#allocation10 + $0x690] sm:$0xff] }
 0x1d5   :  { %1687 = vmatpush2.msra.mxu1 %v1019_v18  ;;  %1617 = vmatprep.subr.mxu0 %v888_v58  ;;  %v976_v32 = vld [vmem:[#allocation10 + $0x698] sm:$0xff]  ;;  %v843_v14 = vld [vmem:[#allocation10 + $0x270] sm:$0xff] }
 0x1d6   :  { %1688 = vmatprep.subr.mxu1 %v1016_v37  ;;  %1618 = vmatpush2.msra.mxu0 %v887_v59  ;;  %v844_v16 = vld [vmem:[#allocation10 + $0x278] sm:$0xff]  ;;  %v971_v18 = vld [vmem:[#allocation10 + $0x670] sm:$0xff] }
 0x1d7   :  { %1689 = vmatpush2.msra.mxu1 %v1015_v35  ;;  %1619 = vmatprep.subr.mxu0 %v884_v61  ;;  %v972_v55 = vld [vmem:[#allocation10 + $0x678] sm:$0xff]  ;;  %v839_v59 = vld [vmem:[#allocation10 + $0x250] sm:$0xff] }
 0x1d8   :  { %1690 = vmatprep.subr.mxu1 %v1012_v36  ;;  %1620 = vmatpush2.msra.mxu0 %v883_v62  ;;  %v840_v58 = vld [vmem:[#allocation10 + $0x258] sm:$0xff]  ;;  %v967_v35 = vld [vmem:[#allocation10 + $0x650] sm:$0xff] }
 0x1d9   :  { %1691 = vmatpush2.msra.mxu1 %v1011_v3  ;;  %1621 = vmatprep.subr.mxu0 %v880_v63  ;;  %v968_v37 = vld [vmem:[#allocation10 + $0x658] sm:$0xff]  ;;  %v835_v62 = vld [vmem:[#allocation10 + $0x230] sm:$0xff] }
 0x1da   :  { %1692 = vmatprep.subr.mxu1 %v1008_v47  ;;  %1622 = vmatpush2.msra.mxu0 %v879_v0  ;;  %v836_v61 = vld [vmem:[#allocation10 + $0x238] sm:$0xff]  ;;  %v963_v3 = vld [vmem:[#allocation10 + $0x630] sm:$0xff] }
 0x1db   :  { %1693 = vmatpush2.msra.mxu1 %v1007_v1  ;;  %1623 = vmatprep.subr.mxu0 %v876_v4  ;;  %v964_v36 = vld [vmem:[#allocation10 + $0x638] sm:$0xff]  ;;  %v831_v0 = vld [vmem:[#allocation10 + $0x210] sm:$0xff] }
 0x1dc   :  { %1694 = vmatprep.subr.mxu1 %v1004_v6  ;;  %1624 = vmatpush2.msra.mxu0 %v875_v49  ;;  %v832_v63 = vld [vmem:[#allocation10 + $0x218] sm:$0xff]  ;;  %v959_v1 = vld [vmem:[#allocation10 + $0x610] sm:$0xff] }
 0x1dd   :  { %1695 = vmatpush2.msra.mxu1 %v1003_v44  ;;  %1625 = vmatprep.subr.mxu0 %v872_v7  ;;  %v960_v47 = vld [vmem:[#allocation10 + $0x618] sm:$0xff]  ;;  %v1083_v49 = vld [vmem:[#allocation10 + $0x9f0] sm:$0xff] }
 0x1de   :  { %1696 = vmatprep.subr.mxu1 %v1000_v8  ;;  %1626 = vmatpush2.msra.mxu0 %v871_v50  ;;  %v1084_v4 = vld [vmem:[#allocation10 + $0x9f8] sm:$0xff]  ;;  %v1211_v44 = vld [vmem:[#allocation10 + $0xdf0] sm:$0xff] }
 0x1df   :  { %1697 = vmatpush2.msra.mxu1 %v999_v41  ;;  %1627 = vmatprep.subr.mxu0 %v868_v56  ;;  %v1212_v6 = vld [vmem:[#allocation10 + $0xdf8] sm:$0xff]  ;;  %v1079_v50 = vld [vmem:[#allocation10 + $0x9d0] sm:$0xff] }
 0x1e0   :  { %1698 = vmatprep.subr.mxu1 %v996_v60  ;;  %1628 = vmatpush2.msra.mxu0 %v867_v15  ;;  %v1080_v7 = vld [vmem:[#allocation10 + $0x9d8] sm:$0xff]  ;;  %v1207_v41 = vld [vmem:[#allocation10 + $0xdd0] sm:$0xff] }
 0x1e1   :  { %1699 = vmatpush2.msra.mxu1 %v995_v34  ;;  %1629 = vmatprep.subr.mxu0 %v864_v20  ;;  %v1208_v8 = vld [vmem:[#allocation10 + $0xdd8] sm:$0xff]  ;;  %v1071_v15 = vld [vmem:[#allocation10 + $0x990] sm:$0xff] }
 0x1e2   :  { %1700 = vmatprep.subr.mxu1 %v992_v21  ;;  %1630 = vmatpush2.msra.mxu0 %v863_v27  ;;  %v1076_v56 = vld [vmem:[#allocation10 + $0x9b8] sm:$0xff]  ;;  %v1063_v27 = vld [vmem:[#allocation10 + $0x950] sm:$0xff] }
 0x1e3   :  { %1701 = vmatpush2.msra.mxu1 %v991_v30  ;;  %1631 = vmatprep.subr.mxu0 %v860_v17  ;;  %v1200_v60 = vld [vmem:[#allocation10 + $0xd98] sm:$0xff]  ;;  %v1191_v30 = vld [vmem:[#allocation10 + $0xd50] sm:$0xff] }
 0x1e4   :  { %1702 = vmatprep.subr.mxu1 %v988_v57  ;;  %1632 = vmatpush2.msra.mxu0 %v859_v39  ;;  %v1196_v34 = vld [vmem:[#allocation10 + $0xd78] sm:$0xff]  ;;  %v1059_v39 = vld [vmem:[#allocation10 + $0x930] sm:$0xff] }
 0x1e5   :  { %1703 = vmatpush2.msra.mxu1 %v987_v29  ;;  %1633 = vmatprep.subr.mxu0 %v856_v40  ;;  %v1064_v20 = vld [vmem:[#allocation10 + $0x958] sm:$0xff]  ;;  %v1187_v29 = vld [vmem:[#allocation10 + $0xd30] sm:$0xff] }
 0x1e6   :  { %1704 = vmatprep.subr.mxu1 %v984_v42  ;;  %1634 = vmatpush2.msra.mxu0 %v855_v43  ;;  %v1192_v21 = vld [vmem:[#allocation10 + $0xd58] sm:$0xff]  ;;  %v1055_v43 = vld [vmem:[#allocation10 + $0x910] sm:$0xff] }
 0x1e7   :  { %1705 = vmatpush2.msra.mxu1 %v983_v46  ;;  %1635 = vmatprep.subr.mxu0 %v852_v2  ;;  %v1060_v17 = vld [vmem:[#allocation10 + $0x938] sm:$0xff]  ;;  %v1183_v46 = vld [vmem:[#allocation10 + $0xd10] sm:$0xff] }
 0x1e8   :  { %1706 = vmatprep.subr.mxu1 %v980_v31  ;;  %1636 = vmatpush2.msra.mxu0 %v851_v48  ;;  %v1188_v57 = vld [vmem:[#allocation10 + $0xd38] sm:$0xff]  ;;  %v1051_v48 = vld [vmem:[#allocation10 + $0x8f0] sm:$0xff] }
 0x1e9   :  { %1707 = vmatpush2.msra.mxu1 %v979_v51  ;;  %1637 = vmatprep.subr.mxu0 %v848_v52  ;;  %v1056_v40 = vld [vmem:[#allocation10 + $0x918] sm:$0xff]  ;;  %v1179_v51 = vld [vmem:[#allocation10 + $0xcf0] sm:$0xff] }
 0x1ea   :  { %1708 = vmatprep.subr.mxu1 %v976_v32  ;;  %1638 = vmatpush2.msra.mxu0 %v847_v54  ;;  %v1184_v42 = vld [vmem:[#allocation10 + $0xd18] sm:$0xff]  ;;  %v1047_v54 = vld [vmem:[#allocation10 + $0x8d0] sm:$0xff] }
 0x1eb   :  { %1709 = vmatpush2.msra.mxu1 %v975_v11  ;;  %1639 = vmatprep.subr.mxu0 %v844_v16  ;;  %v1052_v2 = vld [vmem:[#allocation10 + $0x8f8] sm:$0xff]  ;;  %v1175_v11 = vld [vmem:[#allocation10 + $0xcd0] sm:$0xff] }
 0x1ec   :  { %1710 = vmatprep.subr.mxu1 %v972_v55  ;;  %1640 = vmatpush2.msra.mxu0 %v843_v14  ;;  %v1180_v31 = vld [vmem:[#allocation10 + $0xcf8] sm:$0xff]  ;;  %v1043_v14 = vld [vmem:[#allocation10 + $0x8b0] sm:$0xff] }
 0x1ed   :  { %1711 = vmatpush2.msra.mxu1 %v971_v18  ;;  %1641 = vmatprep.subr.mxu0 %v840_v58  ;;  %v1048_v52 = vld [vmem:[#allocation10 + $0x8d8] sm:$0xff]  ;;  %v1171_v18 = vld [vmem:[#allocation10 + $0xcb0] sm:$0xff] }
 0x1ee   :  { %1712 = vmatprep.subr.mxu1 %v968_v37  ;;  %1642 = vmatpush2.msra.mxu0 %v839_v59  ;;  %v1176_v32 = vld [vmem:[#allocation10 + $0xcd8] sm:$0xff]  ;;  %v1039_v59 = vld [vmem:[#allocation10 + $0x890] sm:$0xff] }
 0x1ef   :  { %1713 = vmatpush2.msra.mxu1 %v967_v35  ;;  %1643 = vmatprep.subr.mxu0 %v836_v61  ;;  %v1044_v16 = vld [vmem:[#allocation10 + $0x8b8] sm:$0xff]  ;;  %v1167_v35 = vld [vmem:[#allocation10 + $0xc90] sm:$0xff] }
 0x1f0   :  { %1714 = vmatprep.subr.mxu1 %v964_v36  ;;  %1644 = vmatpush2.msra.mxu0 %v835_v62  ;;  %v1172_v55 = vld [vmem:[#allocation10 + $0xcb8] sm:$0xff]  ;;  %v1035_v62 = vld [vmem:[#allocation10 + $0x870] sm:$0xff] }
 0x1f1   :  { %1715 = vmatpush2.msra.mxu1 %v963_v3  ;;  %1645 = vmatprep.subr.mxu0 %v832_v63  ;;  %v1040_v58 = vld [vmem:[#allocation10 + $0x898] sm:$0xff]  ;;  %v1163_v3 = vld [vmem:[#allocation10 + $0xc70] sm:$0xff] }
 0x1f2   :  { %1716 = vmatprep.subr.mxu1 %v960_v47  ;;  %1646 = vmatpush2.msra.mxu0 %v831_v0  ;;  %v1168_v37 = vld [vmem:[#allocation10 + $0xc98] sm:$0xff]  ;;  %v1031_v0 = vld [vmem:[#allocation10 + $0x850] sm:$0xff] }
 0x1f3   :  { %1717 = vmatpush2.msra.mxu1 %v959_v1  ;;  %1648 = vmatmul.mubr.f32.vlgmr.msra.gmra.mxu0 %v757_v19  ;;  %v1075_v19 = vld [vmem:[#allocation10 + $0x9b0] sm:$0xff]  ;;  %v1036_v61 = vld [vmem:[#allocation10 + $0x878] sm:$0xff] }
 0x1f4   :  { %1719 = vmatmul.mubr.f32.vlgmr.msra.gmra.mxu1 %v759_v28  ;;  %1725 = vmatprep.subr.mxu0 %v1084_v4  ;;  %v1072_v28 = vld [vmem:[#allocation10 + $0x998] sm:$0xff]  ;;  %v1159_v1 = vld [vmem:[#allocation10 + $0xc50] sm:$0xff] }
 0x1f5   :  { %1796 = vmatprep.subr.mxu1 %v1212_v6  ;;  %1726 = vmatpush1.msra.mxu0 %v1083_v49  ;;  %v1164_v36 = vld [vmem:[#allocation10 + $0xc78] sm:$0xff]  ;;  %v1027_v49 = vld [vmem:[#allocation10 + $0x830] sm:$0xff] }
 0x1f6   :  { %1789 = vmatprep.mubr.f32.mxu0 %v762_v9  ;;  %1797 = vmatpush1.msra.mxu1 %v1211_v44  ;;  %v1068_v9 = vld [vmem:[#allocation10 + $0x978] sm:$0xff]  ;;  %v1155_v44 = vld [vmem:[#allocation10 + $0xc30] sm:$0xff] }
 0x1f7   :  { %1860 = vmatprep.mubr.f32.mxu1 %v764_v24  ;;  %1727 = vmatprep.subr.mxu0 %v1080_v7  ;;  %v1195_v24 = vld [vmem:[#allocation10 + $0xd70] sm:$0xff]  ;;  %v1032_v63 = vld [vmem:[#allocation10 + $0x858] sm:$0xff] }
 0x1f8   :  { %1798 = vmatprep.subr.mxu1 %v1208_v8  ;;  %1728 = vmatpush1.msra.mxu0 %v1079_v50  ;;  %v1160_v47 = vld [vmem:[#allocation10 + $0xc58] sm:$0xff]  ;;  %v1023_v50 = vld [vmem:[#allocation10 + $0x810] sm:$0xff] }
 0x1f9   :  { %1799 = vmatpush1.msra.mxu1 %v1207_v41  ;;  %1729 = vmatprep.subr.mxu0 %v1076_v56  ;;  %v1028_v4 = vld [vmem:[#allocation10 + $0x838] sm:$0xff]  ;;  %v1151_v41 = vld [vmem:[#allocation10 + $0xc10] sm:$0xff] }
 0x1fa   :  { %1800 = vmatprep.subr.mxu1 %v1204_v10  ;;  %1730 = vmatpush1.msra.mxu0 %v1075_v19  ;;  %v1156_v6 = vld [vmem:[#allocation10 + $0xc38] sm:$0xff]  ;;  %v1147_v19 = vld [vmem:[#allocation10 + $0xbf0] sm:$0xff] }
 0x1fb   :  { %1801 = vmatpush1.msra.mxu1 %v1203_v13  ;;  %1731 = vmatprep.subr.mxu0 %v1072_v28  ;;  %v1024_v7 = vld [vmem:[#allocation10 + $0x818] sm:$0xff]  ;;  %v1275_v13 = vld [vmem:[#allocation10 + $0xff0] sm:$0xff] }
 0x1fc   :  { %1802 = vmatprep.subr.mxu1 %v1200_v60  ;;  %1732 = vmatpush1.msra.mxu0 %v1071_v15  ;;  %v1152_v8 = vld [vmem:[#allocation10 + $0xc18] sm:$0xff]  ;;  %v1143_v15 = vld [vmem:[#allocation10 + $0xbd0] sm:$0xff] }
 0x1fd   :  { %1803 = vmatpush1.msra.mxu1 %v1199_v5  ;;  %1733 = vmatprep.subr.mxu0 %v1068_v9  ;;  %v1148_v56 = vld [vmem:[#allocation10 + $0xbf8] sm:$0xff]  ;;  %v1271_v5 = vld [vmem:[#allocation10 + $0xfd0] sm:$0xff] }
 0x1fe   :  { %1804 = vmatprep.subr.mxu1 %v1196_v34  ;;  %1734 = vmatpush1.msra.mxu0 %v1067_v45  ;;  %v1276_v10 = vld [vmem:[#allocation10 + $0xff8] sm:$0xff]  ;;  %v1139_v45 = vld [vmem:[#allocation10 + $0xbb0] sm:$0xff] }
 0x1ff   :  { %1805 = vmatpush1.msra.mxu1 %v1195_v24  ;;  %1735 = vmatprep.subr.mxu0 %v1064_v20  ;;  %v1144_v28 = vld [vmem:[#allocation10 + $0xbd8] sm:$0xff]  ;;  %v1267_v24 = vld [vmem:[#allocation10 + $0xfb0] sm:$0xff] }
 0x200   :  { %1806 = vmatprep.subr.mxu1 %v1192_v21  ;;  %1736 = vmatpush1.msra.mxu0 %v1063_v27  ;;  %v1272_v60 = vld [vmem:[#allocation10 + $0xfd8] sm:$0xff]  ;;  %v1135_v27 = vld [vmem:[#allocation10 + $0xb90] sm:$0xff] }
 0x201   :  { %1807 = vmatpush1.msra.mxu1 %v1191_v30  ;;  %1737 = vmatprep.subr.mxu0 %v1060_v17  ;;  %v1140_v9 = vld [vmem:[#allocation10 + $0xbb8] sm:$0xff]  ;;  %v1263_v30 = vld [vmem:[#allocation10 + $0xf90] sm:$0xff] }
 0x202   :  { %1808 = vmatprep.subr.mxu1 %v1188_v57  ;;  %1738 = vmatpush1.msra.mxu0 %v1059_v39  ;;  %v1268_v34 = vld [vmem:[#allocation10 + $0xfb8] sm:$0xff]  ;;  %v1131_v39 = vld [vmem:[#allocation10 + $0xb70] sm:$0xff] }
 0x203   :  { %1809 = vmatpush1.msra.mxu1 %v1187_v29  ;;  %1739 = vmatprep.subr.mxu0 %v1056_v40  ;;  %v1136_v20 = vld [vmem:[#allocation10 + $0xb98] sm:$0xff]  ;;  %v1259_v29 = vld [vmem:[#allocation10 + $0xf70] sm:$0xff] }
 0x204   :  { %1810 = vmatprep.subr.mxu1 %v1184_v42  ;;  %1740 = vmatpush1.msra.mxu0 %v1055_v43  ;;  %v1264_v21 = vld [vmem:[#allocation10 + $0xf98] sm:$0xff]  ;;  %v1127_v43 = vld [vmem:[#allocation10 + $0xb50] sm:$0xff] }
 0x205   :  { %1811 = vmatpush1.msra.mxu1 %v1183_v46  ;;  %1741 = vmatprep.subr.mxu0 %v1052_v2  ;;  %v1132_v17 = vld [vmem:[#allocation10 + $0xb78] sm:$0xff]  ;;  %v1255_v46 = vld [vmem:[#allocation10 + $0xf50] sm:$0xff] }
 0x206   :  { %1812 = vmatprep.subr.mxu1 %v1180_v31  ;;  %1742 = vmatpush1.msra.mxu0 %v1051_v48  ;;  %v1260_v57 = vld [vmem:[#allocation10 + $0xf78] sm:$0xff]  ;;  %v1123_v48 = vld [vmem:[#allocation10 + $0xb30] sm:$0xff] }
 0x207   :  { %1813 = vmatpush1.msra.mxu1 %v1179_v51  ;;  %1743 = vmatprep.subr.mxu0 %v1048_v52  ;;  %v1128_v40 = vld [vmem:[#allocation10 + $0xb58] sm:$0xff]  ;;  %v1251_v51 = vld [vmem:[#allocation10 + $0xf30] sm:$0xff] }
 0x208   :  { %1814 = vmatprep.subr.mxu1 %v1176_v32  ;;  %1744 = vmatpush1.msra.mxu0 %v1047_v54  ;;  %v1256_v42 = vld [vmem:[#allocation10 + $0xf58] sm:$0xff]  ;;  %v1119_v54 = vld [vmem:[#allocation10 + $0xb10] sm:$0xff] }
 0x209   :  { %1815 = vmatpush1.msra.mxu1 %v1175_v11  ;;  %1745 = vmatprep.subr.mxu0 %v1044_v16  ;;  %v1124_v2 = vld [vmem:[#allocation10 + $0xb38] sm:$0xff]  ;;  %v1247_v11 = vld [vmem:[#allocation10 + $0xf10] sm:$0xff] }
 0x20a   :  { %1816 = vmatprep.subr.mxu1 %v1172_v55  ;;  %1746 = vmatpush1.msra.mxu0 %v1043_v14  ;;  %v1252_v31 = vld [vmem:[#allocation10 + $0xf38] sm:$0xff]  ;;  %v1115_v14 = vld [vmem:[#allocation10 + $0xaf0] sm:$0xff] }
 0x20b   :  { %1817 = vmatpush1.msra.mxu1 %v1171_v18  ;;  %1747 = vmatprep.subr.mxu0 %v1040_v58  ;;  %v1120_v52 = vld [vmem:[#allocation10 + $0xb18] sm:$0xff]  ;;  %v1243_v18 = vld [vmem:[#allocation10 + $0xef0] sm:$0xff] }
 0x20c   :  { %1818 = vmatprep.subr.mxu1 %v1168_v37  ;;  %1748 = vmatpush1.msra.mxu0 %v1039_v59  ;;  %v1248_v32 = vld [vmem:[#allocation10 + $0xf18] sm:$0xff]  ;;  %v1111_v59 = vld [vmem:[#allocation10 + $0xad0] sm:$0xff] }
 0x20d   :  { %1819 = vmatpush1.msra.mxu1 %v1167_v35  ;;  %1749 = vmatprep.subr.mxu0 %v1036_v61  ;;  %v1116_v16 = vld [vmem:[#allocation10 + $0xaf8] sm:$0xff]  ;;  %v1239_v35 = vld [vmem:[#allocation10 + $0xed0] sm:$0xff] }
 0x20e   :  { %1820 = vmatprep.subr.mxu1 %v1164_v36  ;;  %1750 = vmatpush1.msra.mxu0 %v1035_v62  ;;  %v1244_v55 = vld [vmem:[#allocation10 + $0xef8] sm:$0xff]  ;;  %v1107_v62 = vld [vmem:[#allocation10 + $0xab0] sm:$0xff] }
 0x20f   :  { %1821 = vmatpush1.msra.mxu1 %v1163_v3  ;;  %1751 = vmatprep.subr.mxu0 %v1032_v63  ;;  %v1112_v58 = vld [vmem:[#allocation10 + $0xad8] sm:$0xff]  ;;  %v1235_v3 = vld [vmem:[#allocation10 + $0xeb0] sm:$0xff] }
 0x210   :  { %1822 = vmatprep.subr.mxu1 %v1160_v47  ;;  %1752 = vmatpush1.msra.mxu0 %v1031_v0  ;;  %v1240_v37 = vld [vmem:[#allocation10 + $0xed8] sm:$0xff]  ;;  %v1103_v0 = vld [vmem:[#allocation10 + $0xa90] sm:$0xff] }
 0x211   :  { %1823 = vmatpush1.msra.mxu1 %v1159_v1  ;;  %1753 = vmatprep.subr.mxu0 %v1028_v4  ;;  %v1108_v61 = vld [vmem:[#allocation10 + $0xab8] sm:$0xff]  ;;  %v1231_v1 = vld [vmem:[#allocation10 + $0xe90] sm:$0xff] }
 0x212   :  { %1824 = vmatprep.subr.mxu1 %v1156_v6  ;;  %1754 = vmatpush1.msra.mxu0 %v1027_v49  ;;  %v1236_v36 = vld [vmem:[#allocation10 + $0xeb8] sm:$0xff]  ;;  %v1099_v49 = vld [vmem:[#allocation10 + $0xa70] sm:$0xff] }
 0x213   :  { %1825 = vmatpush1.msra.mxu1 %v1155_v44  ;;  %1755 = vmatprep.subr.mxu0 %v1024_v7  ;;  %v1104_v63 = vld [vmem:[#allocation10 + $0xa98] sm:$0xff]  ;;  %v1227_v44 = vld [vmem:[#allocation10 + $0xe70] sm:$0xff] }
 0x214   :  { %1826 = vmatprep.subr.mxu1 %v1152_v8  ;;  %1756 = vmatpush1.msra.mxu0 %v1023_v50  ;;  %v1232_v47 = vld [vmem:[#allocation10 + $0xe98] sm:$0xff]  ;;  %v1095_v50 = vld [vmem:[#allocation10 + $0xa50] sm:$0xff] }
 0x215   :  { %1827 = vmatpush1.msra.mxu1 %v1151_v41  ;;  %1757 = vmatprep.subr.mxu0 %v1148_v56  ;;  %v1100_v4 = vld [vmem:[#allocation10 + $0xa78] sm:$0xff]  ;;  %v1223_v41 = vld [vmem:[#allocation10 + $0xe50] sm:$0xff] }
 0x216   :  { %1828 = vmatprep.subr.mxu1 %v1276_v10  ;;  %1758 = vmatpush2.msra.mxu0 %v1147_v19  ;;  %v1228_v6 = vld [vmem:[#allocation10 + $0xe78] sm:$0xff]  ;;  %v1091_v19 = vld [vmem:[#allocation10 + $0xa30] sm:$0xff] }
 0x217   :  { %1829 = vmatpush2.msra.mxu1 %v1275_v13  ;;  %1759 = vmatprep.subr.mxu0 %v1144_v28  ;;  %v1096_v7 = vld [vmem:[#allocation10 + $0xa58] sm:$0xff]  ;;  %v1219_v13 = vld [vmem:[#allocation10 + $0xe30] sm:$0xff] }
 0x218   :  { %1830 = vmatprep.subr.mxu1 %v1272_v60  ;;  %1760 = vmatpush2.msra.mxu0 %v1143_v15  ;;  %v1224_v8 = vld [vmem:[#allocation10 + $0xe58] sm:$0xff]  ;;  %v1087_v15 = vld [vmem:[#allocation10 + $0xa10] sm:$0xff] }
 0x219   :  { %1831 = vmatpush2.msra.mxu1 %v1271_v5  ;;  %1761 = vmatprep.subr.mxu0 %v1140_v9  ;;  %v1092_v56 = vld [vmem:[#allocation10 + $0xa38] sm:$0xff]  ;;  %v1215_v5 = vld [vmem:[#allocation10 + $0xe10] sm:$0xff]  ;;  %v2557_v9 = vld [vmem:[#allocation12] sm:$0xf] }
 0x21a   :  { %1832 = vmatprep.subr.mxu1 %v1268_v34  ;;  %1762 = vmatpush2.msra.mxu0 %v1139_v45  ;;  %v1220_v10 = vld [vmem:[#allocation10 + $0xe38] sm:$0xff]  ;;  %v1282_v45 = vrot.slane %v2557_v9, %v2353_v22 }
 0x21b   :  { %1833 = vmatpush2.msra.mxu1 %v1267_v24  ;;  %1763 = vmatprep.subr.mxu0 %v1136_v20  ;;  %v1088_v28 = vld [vmem:[#allocation10 + $0xa18] sm:$0xff]  ;;  %v1286_v24 = vrot.slane %v2557_v9, %v2357_v25 }
 0x21c   :  { %1834 = vmatprep.subr.mxu1 %v1264_v21  ;;  %1764 = vmatpush2.msra.mxu0 %v1135_v27  ;;  %v1216_v60 = vld [vmem:[#allocation10 + $0xe18] sm:$0xff] }
 0x21d   :  { %1835 = vmatpush2.msra.mxu1 %v1263_v30  ;;  %1765 = vmatprep.subr.mxu0 %v1132_v17 }
 0x21e   :  { %1836 = vmatprep.subr.mxu1 %v1260_v57  ;;  %1766 = vmatpush2.msra.mxu0 %v1131_v39 }
 0x21f   :  { %1837 = vmatpush2.msra.mxu1 %v1259_v29  ;;  %1767 = vmatprep.subr.mxu0 %v1128_v40 }
 0x220   :  { %1838 = vmatprep.subr.mxu1 %v1256_v42  ;;  %1768 = vmatpush2.msra.mxu0 %v1127_v43 }
 0x221   :  { %1839 = vmatpush2.msra.mxu1 %v1255_v46  ;;  %1769 = vmatprep.subr.mxu0 %v1124_v2 }
 0x222   :  { %1840 = vmatprep.subr.mxu1 %v1252_v31  ;;  %1770 = vmatpush2.msra.mxu0 %v1123_v48 }
 0x223   :  { %1841 = vmatpush2.msra.mxu1 %v1251_v51  ;;  %1771 = vmatprep.subr.mxu0 %v1120_v52 }
 0x224   :  { %1842 = vmatprep.subr.mxu1 %v1248_v32  ;;  %1772 = vmatpush2.msra.mxu0 %v1119_v54 }
 0x225   :  { %1843 = vmatpush2.msra.mxu1 %v1247_v11  ;;  %1773 = vmatprep.subr.mxu0 %v1116_v16 }
 0x226   :  { %1844 = vmatprep.subr.mxu1 %v1244_v55  ;;  %1774 = vmatpush2.msra.mxu0 %v1115_v14 }
 0x227   :  { %1845 = vmatpush2.msra.mxu1 %v1243_v18  ;;  %1775 = vmatprep.subr.mxu0 %v1112_v58 }
 0x228   :  { %1846 = vmatprep.subr.mxu1 %v1240_v37  ;;  %1776 = vmatpush2.msra.mxu0 %v1111_v59 }
 0x229   :  { %1847 = vmatpush2.msra.mxu1 %v1239_v35  ;;  %1777 = vmatprep.subr.mxu0 %v1108_v61 }
 0x22a   :  { %1848 = vmatprep.subr.mxu1 %v1236_v36  ;;  %1778 = vmatpush2.msra.mxu0 %v1107_v62 }
 0x22b   :  { %1849 = vmatpush2.msra.mxu1 %v1235_v3  ;;  %1779 = vmatprep.subr.mxu0 %v1104_v63 }
 0x22c   :  { %1850 = vmatprep.subr.mxu1 %v1232_v47  ;;  %1780 = vmatpush2.msra.mxu0 %v1103_v0 }
 0x22d   :  { %1851 = vmatpush2.msra.mxu1 %v1231_v1  ;;  %1781 = vmatprep.subr.mxu0 %v1100_v4 }
 0x22e   :  { %1852 = vmatprep.subr.mxu1 %v1228_v6  ;;  %1782 = vmatpush2.msra.mxu0 %v1099_v49 }
 0x22f   :  { %1853 = vmatpush2.msra.mxu1 %v1227_v44  ;;  %1783 = vmatprep.subr.mxu0 %v1096_v7 }
 0x230   :  { %1854 = vmatprep.subr.mxu1 %v1224_v8  ;;  %1784 = vmatpush2.msra.mxu0 %v1095_v50  ;;  %v1365_v34 = vpop.f32.mrf.mxu0 }
 0x231   :  { %1855 = vmatpush2.msra.mxu1 %v1223_v41  ;;  %1785 = vmatprep.subr.mxu0 %v1092_v56  ;;  %v1366_v21 = vadd.f32 %v1365_v34, %v1282_v45  ;;  %v1436_v27 = vpop.f32.mrf.mxu1 }
 0x232   :  { %1856 = vmatprep.subr.mxu1 %v1220_v10  ;;  %1786 = vmatpush2.msra.mxu0 %v1091_v19  ;;  %v1367_v20 = vpop.f32.mrf.mxu0 }
 0x233   :  { %1857 = vmatpush2.msra.mxu1 %v1219_v13  ;;  %1787 = vmatprep.subr.mxu0 %v1088_v28  ;;  %v1368_v30 = vadd.f32 %v1367_v20, %v1286_v24  ;;  %v1437_v17 = vadd.f32 %v1436_v27, %v1366_v21  ;;  %v1438_v57 = vpop.f32.mrf.mxu1 }
 0x234   :  { %1858 = vmatprep.subr.mxu1 %v1216_v60  ;;  %1788 = vmatpush2.msra.mxu0 %v1087_v15  ;;  %v2567_v60 = vld [vmem:[#allocation13] sm:$0xf]  ;;  %v2569_v15 = vld [vmem:[#allocation15] sm:$0xf] }
 0x235   :  { %1859 = vmatpush2.msra.mxu1 %v1215_v5  ;;  %1790 = vmatmul.mubr.f32.vlgmr.msra.gmra.mxu0 %v761_v33  ;;  %v1439_v33 = vadd.f32 %v1438_v57, %v1368_v30  ;;  %v1957_v5 = vrot.slane %v2567_v60, %v2353_v22  ;;  %v1982_v24 = vrot.slane %v2569_v15, %v2353_v22 }
 0x236   :  { %1861 = vmatmul.mubr.f32.vlgmr.msra.gmra.mxu1 %v763_v38  ;;  %v1961_v20 = vrot.slane %v2567_v60, %v2357_v25 }
 0x271   :  { %v1507_v53 = vpop.f32.mrf.mxu0 }
 0x272   :  { %v1508_v39 = vadd.f32 %v1507_v53, %v1437_v17  ;;  %v1578_v12 = vpop.f32.mrf.mxu1  ;;  %v1986_v17 = vrot.slane %v2569_v15, %v2357_v25 }
 0x273   :  { %v1509_v38 = vpop.f32.mrf.mxu0 }
 0x274   :  { %v1579_v29 = vadd.f32 %v1578_v12, %v1508_v39  ;;  %v1510_v40 = vadd.f32 %v1509_v38, %v1439_v33  ;;  %v1580_v42 = vpop.f32.mrf.mxu1 }
 0x276   :  { %v1869_v43 = vsel %vm489_vm1, %v1579_v29, 0.0  ;;  %v1581_v46 = vadd.f32 %v1580_v42, %v1510_v40  ;;  %v1294_v40 = vrot.slane %v2557_v9, %v2359_v26 }
 0x277   :  { %v1870_v2 = vrot.slane %v1869_v43, 4 }
 0x278   :  { %v1876_v31 = vsel %vm489_vm1, %v1581_v46, 0.0 }
 0x279   :  { %v1871_v48 = vadd.f32 %v1870_v2, %v1869_v43  ;;  %v1877_v51 = vrot.slane %v1876_v31, 4 }
 0x27b   :  { %v1872_v52 = vrot.slane %v1871_v48, 2  ;;  %v1878_v32 = vadd.f32 %v1877_v51, %v1876_v31 }
 0x27d   :  { %v1873_v54 = vadd.f32 %v1872_v52, %v1871_v48  ;;  %v1879_v11 = vrot.slane %v1878_v32, 2 }
 0x27f   :  { %v1874_v16 = vrot.slane %v1873_v54, 1  ;;  %v1880_v55 = vadd.f32 %v1879_v11, %v1878_v32 }
 0x281   :  { %v1875_v14 = vadd.f32 %v1874_v16, %v1873_v54  ;;  %v1881_v18 = vrot.slane %v1880_v55, 1 }
 0x283   :  { %v1897_v58 = vmul.f32 0.25, %v1875_v14  ;;  %v1882_v37 = vadd.f32 %v1881_v18, %v1880_v55 }
 0x285   :  { %v1901_v59 = vsub.f32 %v1579_v29, %v1897_v58  ;;  %v1898_v35 = vmul.f32 0.25, %v1882_v37  ;;  %v1290_v29 = vrot.slane %v2557_v9, %v2355_v23 }
 0x287   :  { %v1905_v61 = vmul.f32 %v1901_v59, %v1901_v59  ;;  %v1902_v36 = vsub.f32 %v1581_v46, %v1898_v35 }
 0x289   :  { %v1909_v62 = vsel %vm489_vm1, %v1905_v61, 0.0  ;;  %v1906_v3 = vmul.f32 %v1902_v36, %v1902_v36 }
 0x28a   :  { %v1910_v63 = vrot.slane %v1909_v62, 4 }
 0x28b   :  { %v1916_v47 = vsel %vm489_vm1, %v1906_v3, 0.0 }
 0x28c   :  { %v1911_v0 = vadd.f32 %v1910_v63, %v1909_v62  ;;  %v1917_v1 = vrot.slane %v1916_v47, 4 }
 0x28e   :  { %v1912_v4 = vrot.slane %v1911_v0, 2  ;;  %v1918_v6 = vadd.f32 %v1917_v1, %v1916_v47 }
 0x290   :  { %v1913_v49 = vadd.f32 %v1912_v4, %v1911_v0  ;;  %v1919_v44 = vrot.slane %v1918_v6, 2 }
 0x292   :  { %v1914_v7 = vrot.slane %v1913_v49, 1  ;;  %v1920_v8 = vadd.f32 %v1919_v44, %v1918_v6 }
 0x294   :  { %v1915_v50 = vadd.f32 %v1914_v7, %v1913_v49  ;;  %v1921_v41 = vrot.slane %v1920_v8, 1 }
 0x296   :  { %v1937_v56 = vmul.f32 0.25, %v1915_v50  ;;  %v1922_v10 = vadd.f32 %v1921_v41, %v1920_v8 }
 0x298   :  { %v1941_v19 = vadd.f32 1e-05, %v1937_v56  ;;  %v1938_v13 = vmul.f32 0.25, %v1922_v10 }
 0x29a   :  { %2060 = vrsqrt.f32 %v1941_v19  ;;  %v1942_v28 = vadd.f32 1e-05, %v1938_v13 }
 0x29c   :  { %2062 = vrsqrt.f32 %v1942_v28 }
 0x2a7   :  { %v2061_v34 = vpop.eup %2060 }
 0x2a8   :  { %v1949_v45 = vmul.f32 %v2061_v34, %v1901_v59 }
 0x2a9   :  { %v2063_v21 = vpop.eup %2062 }
 0x2aa   :  { %v1974_v27 = vmul.f32 %v1957_v5, %v1949_v45  ;;  %v1950_v30 = vmul.f32 %v2063_v21, %v1902_v36 }
 0x2ac   :  { %v1999_v57 = vadd.f32 %v1982_v24, %v1974_v27  ;;  %v1975_v53 = vmul.f32 %v1961_v20, %v1950_v30 }
 0x2ae   :  { %v2000_v33 = vadd.f32 %v1986_v17, %v1975_v53  ;;  %v2003_v39 = vmax.f32 %v1999_v57, 0.0 }
 0x2b0   :  { %v2004_v12 = vmax.f32 %v2000_v33, 0.0  ;;  %v1965_v33 = vrot.slane %v2567_v60, %v2355_v23 }
 0x2b2   :  { %v2011_v38 = vcombine.low %v2003_v39, %v2004_v12 }
 0x2b3   :  { %v1649_v22 = vpop.f32.mrf.mxu0 }
 0x2b4   :  { %2015 = vst [vmem:[%s2610_s9] sm:$0xff] %v2011_v38  ;;  %v1650_v43 = vadd.f32 %v1649_v22, %v1290_v29  ;;  %v1720_v25 = vpop.f32.mrf.mxu1  ;;  %v1990_v38 = vrot.slane %v2569_v15, %v2355_v23  ;;  %v1969_v22 = vrot.slane %v2567_v60, %v2359_v26 }
 0x2b5   :  { %v1651_v42 = vpop.f32.mrf.mxu0 }
 0x2b6   :  { %v1652_v46 = vadd.f32 %v1651_v42, %v1294_v40  ;;  %v1721_v2 = vadd.f32 %v1720_v25, %v1650_v43  ;;  %v1722_v31 = vpop.f32.mrf.mxu1  ;;  %v1994_v43 = vrot.slane %v2569_v15, %v2359_v26 }
 0x2b8   :  { %v1723_v51 = vadd.f32 %v1722_v31, %v1652_v46 }
 0x2f5   :  { %v1791_v48 = vpop.f32.mrf.mxu0 }
 0x2f6   :  { %v1792_v52 = vadd.f32 %v1791_v48, %v1721_v2  ;;  %v1862_v32 = vpop.f32.mrf.mxu1 }
 0x2f7   :  { %v1793_v54 = vpop.f32.mrf.mxu0 }
 0x2f8   :  { %v1863_v11 = vadd.f32 %v1862_v32, %v1792_v52  ;;  %v1794_v16 = vadd.f32 %v1793_v54, %v1723_v51  ;;  %v1864_v55 = vpop.f32.mrf.mxu1 }
 0x2fa   :  { %v1883_v14 = vsel %vm489_vm1, %v1863_v11, 0.0  ;;  %v1865_v18 = vadd.f32 %v1864_v55, %v1794_v16 }
 0x2fb   :  { %v1884_v58 = vrot.slane %v1883_v14, 4 }
 0x2fc   :  { %v1890_v9 = vsel %vm489_vm1, %v1865_v18, 0.0 }
 0x2fd   :  { %v1885_v37 = vadd.f32 %v1884_v58, %v1883_v14  ;;  %v1891_v59 = vrot.slane %v1890_v9, 4 }
 0x2ff   :  { %v1886_v35 = vrot.slane %v1885_v37, 2  ;;  %v1892_v61 = vadd.f32 %v1891_v59, %v1890_v9 }
 0x301   :  { %v1887_v36 = vadd.f32 %v1886_v35, %v1885_v37  ;;  %v1893_v62 = vrot.slane %v1892_v61, 2 }
 0x303   :  { %v1888_v3 = vrot.slane %v1887_v36, 1  ;;  %v1894_v63 = vadd.f32 %v1893_v62, %v1892_v61 }
 0x305   :  { %v1889_v47 = vadd.f32 %v1888_v3, %v1887_v36  ;;  %v1895_v0 = vrot.slane %v1894_v63, 1 }
 0x307   :  { %v1899_v1 = vmul.f32 0.25, %v1889_v47  ;;  %v1896_v4 = vadd.f32 %v1895_v0, %v1894_v63 }
 0x309   :  { %v1903_v6 = vsub.f32 %v1863_v11, %v1899_v1  ;;  %v1900_v49 = vmul.f32 0.25, %v1896_v4 }
 0x30b   :  { %v1907_v44 = vmul.f32 %v1903_v6, %v1903_v6  ;;  %v1904_v7 = vsub.f32 %v1865_v18, %v1900_v49 }
 0x30d   :  { %v1923_v8 = vsel %vm489_vm1, %v1907_v44, 0.0  ;;  %v1908_v50 = vmul.f32 %v1904_v7, %v1904_v7 }
 0x30e   :  { %v1924_v41 = vrot.slane %v1923_v8, 4 }
 0x30f   :  { %v1930_v56 = vsel %vm489_vm1, %v1908_v50, 0.0 }
 0x310   :  { %v1925_v10 = vadd.f32 %v1924_v41, %v1923_v8  ;;  %v1931_v19 = vrot.slane %v1930_v56, 4 }
 0x312   :  { %v1926_v13 = vrot.slane %v1925_v10, 2  ;;  %v1932_v28 = vadd.f32 %v1931_v19, %v1930_v56 }
 0x314   :  { %v1927_v5 = vadd.f32 %v1926_v13, %v1925_v10  ;;  %v1933_v34 = vrot.slane %v1932_v28, 2 }
 0x316   :  { %v1928_v45 = vrot.slane %v1927_v5, 1  ;;  %v1934_v24 = vadd.f32 %v1933_v34, %v1932_v28 }
 0x318   :  { %v1929_v20 = vadd.f32 %v1928_v45, %v1927_v5  ;;  %v1935_v21 = vrot.slane %v1934_v24, 1 }
 0x31a   :  { %v1939_v27 = vmul.f32 0.25, %v1929_v20  ;;  %v1936_v30 = vadd.f32 %v1935_v21, %v1934_v24 }
 0x31c   :  { %v1943_v17 = vadd.f32 1e-05, %v1939_v27  ;;  %v1940_v57 = vmul.f32 0.25, %v1936_v30 }
 0x31e   :  { %2064 = vrsqrt.f32 %v1943_v17  ;;  %v1944_v53 = vadd.f32 1e-05, %v1940_v57 }
 0x320   :  { %2066 = vrsqrt.f32 %v1944_v53 }
 0x32b   :  { %v2065_v39 = vpop.eup %2064 }
 0x32c   :  { %v1951_v12 = vmul.f32 %v2065_v39, %v1903_v6 }
 0x32d   :  { %v2067_v29 = vpop.eup %2066 }
 0x32e   :  { %v1976_v40 = vmul.f32 %v1965_v33, %v1951_v12  ;;  %v1952_v42 = vmul.f32 %v2067_v29, %v1904_v7 }
 0x330   :  { %v2001_v25 = vadd.f32 %v1990_v38, %v1976_v40  ;;  %v1977_v46 = vmul.f32 %v1969_v22, %v1952_v42 }
 0x332   :  { %v2002_v2 = vadd.f32 %v1994_v43, %v1977_v46  ;;  %v2005_v31 = vmax.f32 %v2001_v25, 0.0 }
 0x334   :  { %v2006_v48 = vmax.f32 %v2002_v2, 0.0 }
 0x336   :  { %v2012_v51 = vcombine.low %v2005_v31, %v2006_v48 }
 0x338   :  { %2016 = vst [vmem:[%s2610_s9 + $0x8] sm:$0xff] %v2012_v51 }
 0x339   :  { %2021 = vsyncpa [#allocation3], 1 }
 0x33a   :  { %2022 = vsyncpa [#allocation5], 1 }
 0x33b   :  { %2023 = vsyncpa [#allocation8], 1 }
 0x33c   :  { %2024 = vsyncpa [#allocation11], 1 }
 0x33d   :  { %2025 = vsyncpa [#allocation14], 1 }

// kernel: generator_forward.5
= control target key start
LH: loop header
LB: loop body
LE: loop exit
PB: predicated region body
PF: predicated region fallthrough
CT: control target
= control target key end

     0   :  { %v411_v3 = vmov 0   ;;  %vm174_vm0 = vcmask 523264   ;;  %s880_s1 = inlined_call_operand.vmem [shape: f32[576,256], index: 1, kind: input, shape index: {}]   ;;  %s881_s0 = inlined_call_operand.vmem [shape: f32[4,576], index: 0, kind: input, shape index: {}]   ;;  %s882_s2 = inlined_call_operand.vmem [shape: f32[4,1], index: 2, kind: input, shape index: {}]   ;;  %s883_s3 = inlined_call_operand.vmem [shape: f32[4,256], index: 3, kind: output, shape index: {}]  }
   0x1   :  { %v48_v0 = vld [vmem:[%s880_s1 + $0xf8] sm:$0xff]  ;;  %v47_v1 = vld [vmem:[%s880_s1 + $0xf0] sm:$0xff]  ;;  %v46_v2 = vld [vmem:[%s880_s1 + $0xe8] sm:$0xff]  ;;  %404 = vset.pattern.permute.xlu0 %v411_v3 }
   0x2   :  { %177 = vmatprep.subr.mxu0 %v48_v0  ;;  %v112_v4 = vld [vmem:[%s880_s1 + $0x2f8] sm:$0xff]  ;;  %v45_v5 = vld [vmem:[%s880_s1 + $0xe0] sm:$0xff]  ;;  %v111_v6 = vld [vmem:[%s880_s1 + $0x2f0] sm:$0xff] }
   0x3   :  { %178 = vmatpush1.msra.mxu0 %v47_v1  ;;  %248 = vmatprep.subr.mxu1 %v112_v4  ;;  %v44_v7 = vld [vmem:[%s880_s1 + $0xd8] sm:$0xff]  ;;  %v110_v8 = vld [vmem:[%s880_s1 + $0x2e8] sm:$0xff]  ;;  %v43_v9 = vld [vmem:[%s880_s1 + $0xd0] sm:$0xff] }
   0x4   :  { %179 = vmatprep.subr.mxu0 %v46_v2  ;;  %249 = vmatpush1.msra.mxu1 %v111_v6  ;;  %v109_v10 = vld [vmem:[%s880_s1 + $0x2e0] sm:$0xff]  ;;  %v108_v11 = vld [vmem:[%s880_s1 + $0x2d8] sm:$0xff]  ;;  %v42_v12 = vld [vmem:[%s880_s1 + $0xc8] sm:$0xff] }
   0x5   :  { %180 = vmatpush1.msra.mxu0 %v45_v5  ;;  %250 = vmatprep.subr.mxu1 %v110_v8  ;;  %v107_v13 = vld [vmem:[%s880_s1 + $0x2d0] sm:$0xff]  ;;  %v41_v14 = vld [vmem:[%s880_s1 + $0xc0] sm:$0xff]  ;;  %v106_v15 = vld [vmem:[%s880_s1 + $0x2c8] sm:$0xff] }
   0x6   :  { %181 = vmatprep.subr.mxu0 %v44_v7  ;;  %251 = vmatpush1.msra.mxu1 %v109_v10  ;;  %v40_v16 = vld [vmem:[%s880_s1 + $0xb8] sm:$0xff]  ;;  %v105_v17 = vld [vmem:[%s880_s1 + $0x2c0] sm:$0xff]  ;;  %v39_v18 = vld [vmem:[%s880_s1 + $0xb0] sm:$0xff] }
   0x7   :  { %182 = vmatpush1.msra.mxu0 %v43_v9  ;;  %252 = vmatprep.subr.mxu1 %v108_v11  ;;  %v104_v19 = vld [vmem:[%s880_s1 + $0x2b8] sm:$0xff]  ;;  %v38_v20 = vld [vmem:[%s880_s1 + $0xa8] sm:$0xff]  ;;  %v103_v21 = vld [vmem:[%s880_s1 + $0x2b0] sm:$0xff] }
   0x8   :  { %183 = vmatprep.subr.mxu0 %v42_v12  ;;  %253 = vmatpush1.msra.mxu1 %v107_v13  ;;  %v37_v22 = vld [vmem:[%s880_s1 + $0xa0] sm:$0xff]  ;;  %v102_v23 = vld [vmem:[%s880_s1 + $0x2a8] sm:$0xff]  ;;  %v36_v24 = vld [vmem:[%s880_s1 + $0x98] sm:$0xff] }
   0x9   :  { %184 = vmatpush1.msra.mxu0 %v41_v14  ;;  %254 = vmatprep.subr.mxu1 %v106_v15  ;;  %v101_v25 = vld [vmem:[%s880_s1 + $0x2a0] sm:$0xff]  ;;  %v35_v26 = vld [vmem:[%s880_s1 + $0x90] sm:$0xff]  ;;  %v100_v27 = vld [vmem:[%s880_s1 + $0x298] sm:$0xff] }
   0xa   :  { %185 = vmatprep.subr.mxu0 %v40_v16  ;;  %255 = vmatpush1.msra.mxu1 %v105_v17  ;;  %v34_v28 = vld [vmem:[%s880_s1 + $0x88] sm:$0xff]  ;;  %v99_v29 = vld [vmem:[%s880_s1 + $0x290] sm:$0xff]  ;;  %v33_v30 = vld [vmem:[%s880_s1 + $0x80] sm:$0xff] }
   0xb   :  { %186 = vmatpush1.msra.mxu0 %v39_v18  ;;  %256 = vmatprep.subr.mxu1 %v104_v19  ;;  %v98_v31 = vld [vmem:[%s880_s1 + $0x288] sm:$0xff]  ;;  %v32_v32 = vld [vmem:[%s880_s1 + $0x78] sm:$0xff]  ;;  %v97_v33 = vld [vmem:[%s880_s1 + $0x280] sm:$0xff] }
   0xc   :  { %187 = vmatprep.subr.mxu0 %v38_v20  ;;  %257 = vmatpush1.msra.mxu1 %v103_v21  ;;  %v31_v34 = vld [vmem:[%s880_s1 + $0x70] sm:$0xff]  ;;  %v96_v35 = vld [vmem:[%s880_s1 + $0x278] sm:$0xff]  ;;  %v30_v36 = vld [vmem:[%s880_s1 + $0x68] sm:$0xff] }
   0xd   :  { %188 = vmatpush1.msra.mxu0 %v37_v22  ;;  %258 = vmatprep.subr.mxu1 %v102_v23  ;;  %v95_v37 = vld [vmem:[%s880_s1 + $0x270] sm:$0xff]  ;;  %v29_v38 = vld [vmem:[%s880_s1 + $0x60] sm:$0xff]  ;;  %v94_v39 = vld [vmem:[%s880_s1 + $0x268] sm:$0xff] }
   0xe   :  { %189 = vmatprep.subr.mxu0 %v36_v24  ;;  %259 = vmatpush1.msra.mxu1 %v101_v25  ;;  %v28_v40 = vld [vmem:[%s880_s1 + $0x58] sm:$0xff]  ;;  %v93_v41 = vld [vmem:[%s880_s1 + $0x260] sm:$0xff]  ;;  %v27_v42 = vld [vmem:[%s880_s1 + $0x50] sm:$0xff] }
   0xf   :  { %190 = vmatpush1.msra.mxu0 %v35_v26  ;;  %260 = vmatprep.subr.mxu1 %v100_v27  ;;  %v92_v43 = vld [vmem:[%s880_s1 + $0x258] sm:$0xff]  ;;  %v26_v44 = vld [vmem:[%s880_s1 + $0x48] sm:$0xff]  ;;  %v91_v45 = vld [vmem:[%s880_s1 + $0x250] sm:$0xff] }
  0x10   :  { %191 = vmatprep.subr.mxu0 %v34_v28  ;;  %261 = vmatpush1.msra.mxu1 %v99_v29  ;;  %v25_v46 = vld [vmem:[%s880_s1 + $0x40] sm:$0xff]  ;;  %v90_v47 = vld [vmem:[%s880_s1 + $0x248] sm:$0xff]  ;;  %v24_v48 = vld [vmem:[%s880_s1 + $0x38] sm:$0xff] }
  0x11   :  { %192 = vmatpush1.msra.mxu0 %v33_v30  ;;  %262 = vmatprep.subr.mxu1 %v98_v31  ;;  %v89_v49 = vld [vmem:[%s880_s1 + $0x240] sm:$0xff]  ;;  %v23_v50 = vld [vmem:[%s880_s1 + $0x30] sm:$0xff]  ;;  %v88_v51 = vld [vmem:[%s880_s1 + $0x238] sm:$0xff] }
  0x12   :  { %193 = vmatprep.subr.mxu0 %v32_v32  ;;  %263 = vmatpush1.msra.mxu1 %v97_v33  ;;  %v22_v52 = vld [vmem:[%s880_s1 + $0x28] sm:$0xff]  ;;  %v87_v53 = vld [vmem:[%s880_s1 + $0x230] sm:$0xff]  ;;  %v21_v54 = vld [vmem:[%s880_s1 + $0x20] sm:$0xff] }
  0x13   :  { %194 = vmatpush1.msra.mxu0 %v31_v34  ;;  %264 = vmatprep.subr.mxu1 %v96_v35  ;;  %v86_v55 = vld [vmem:[%s880_s1 + $0x228] sm:$0xff]  ;;  %v20_v56 = vld [vmem:[%s880_s1 + $0x18] sm:$0xff]  ;;  %v85_v57 = vld [vmem:[%s880_s1 + $0x220] sm:$0xff] }
  0x14   :  { %195 = vmatprep.subr.mxu0 %v30_v36  ;;  %265 = vmatpush1.msra.mxu1 %v95_v37  ;;  %v19_v58 = vld [vmem:[%s880_s1 + $0x10] sm:$0xff]  ;;  %v84_v59 = vld [vmem:[%s880_s1 + $0x218] sm:$0xff]  ;;  %v18_v60 = vld [vmem:[%s880_s1 + $0x8] sm:$0xff] }
  0x15   :  { %196 = vmatpush1.msra.mxu0 %v29_v38  ;;  %266 = vmatprep.subr.mxu1 %v94_v39  ;;  %v83_v61 = vld [vmem:[%s880_s1 + $0x210] sm:$0xff]  ;;  %v17_v62 = vld [vmem:[%s880_s1] sm:$0xff]  ;;  %v82_v63 = vld [vmem:[%s880_s1 + $0x208] sm:$0xff] }
  0x16   :  { %197 = vmatprep.subr.mxu0 %v28_v40  ;;  %267 = vmatpush1.msra.mxu1 %v93_v41  ;;  %v80_v0 = vld [vmem:[%s880_s1 + $0x1f8] sm:$0xff]  ;;  %v81_v1 = vld [vmem:[%s880_s1 + $0x200] sm:$0xff]  ;;  %v79_v2 = vld [vmem:[%s880_s1 + $0x1f0] sm:$0xff] }
  0x17   :  { %198 = vmatpush1.msra.mxu0 %v27_v42  ;;  %268 = vmatprep.subr.mxu1 %v92_v43  ;;  %v144_v3 = vld [vmem:[%s880_s1 + $0x3f8] sm:$0xff]  ;;  %v78_v4 = vld [vmem:[%s880_s1 + $0x1e8] sm:$0xff]  ;;  %v143_v5 = vld [vmem:[%s880_s1 + $0x3f0] sm:$0xff] }
  0x18   :  { %199 = vmatprep.subr.mxu0 %v26_v44  ;;  %269 = vmatpush1.msra.mxu1 %v91_v45  ;;  %v77_v6 = vld [vmem:[%s880_s1 + $0x1e0] sm:$0xff]  ;;  %v142_v7 = vld [vmem:[%s880_s1 + $0x3e8] sm:$0xff]  ;;  %v76_v8 = vld [vmem:[%s880_s1 + $0x1d8] sm:$0xff] }
  0x19   :  { %200 = vmatpush1.msra.mxu0 %v25_v46  ;;  %270 = vmatprep.subr.mxu1 %v90_v47  ;;  %v141_v9 = vld [vmem:[%s880_s1 + $0x3e0] sm:$0xff]  ;;  %v75_v10 = vld [vmem:[%s880_s1 + $0x1d0] sm:$0xff]  ;;  %v140_v11 = vld [vmem:[%s880_s1 + $0x3d8] sm:$0xff] }
  0x1a   :  { %201 = vmatprep.subr.mxu0 %v24_v48  ;;  %271 = vmatpush1.msra.mxu1 %v89_v49  ;;  %v74_v12 = vld [vmem:[%s880_s1 + $0x1c8] sm:$0xff]  ;;  %v139_v13 = vld [vmem:[%s880_s1 + $0x3d0] sm:$0xff]  ;;  %v73_v14 = vld [vmem:[%s880_s1 + $0x1c0] sm:$0xff] }
  0x1b   :  { %202 = vmatpush1.msra.mxu0 %v23_v50  ;;  %272 = vmatprep.subr.mxu1 %v88_v51  ;;  %v138_v15 = vld [vmem:[%s880_s1 + $0x3c8] sm:$0xff]  ;;  %v72_v16 = vld [vmem:[%s880_s1 + $0x1b8] sm:$0xff]  ;;  %v137_v17 = vld [vmem:[%s880_s1 + $0x3c0] sm:$0xff] }
  0x1c   :  { %203 = vmatprep.subr.mxu0 %v22_v52  ;;  %273 = vmatpush1.msra.mxu1 %v87_v53  ;;  %v71_v18 = vld [vmem:[%s880_s1 + $0x1b0] sm:$0xff]  ;;  %v136_v19 = vld [vmem:[%s880_s1 + $0x3b8] sm:$0xff]  ;;  %v70_v20 = vld [vmem:[%s880_s1 + $0x1a8] sm:$0xff] }
  0x1d   :  { %204 = vmatpush1.msra.mxu0 %v21_v54  ;;  %274 = vmatprep.subr.mxu1 %v86_v55  ;;  %v135_v21 = vld [vmem:[%s880_s1 + $0x3b0] sm:$0xff]  ;;  %v69_v22 = vld [vmem:[%s880_s1 + $0x1a0] sm:$0xff]  ;;  %v134_v23 = vld [vmem:[%s880_s1 + $0x3a8] sm:$0xff] }
  0x1e   :  { %205 = vmatprep.subr.mxu0 %v20_v56  ;;  %275 = vmatpush1.msra.mxu1 %v85_v57  ;;  %v68_v24 = vld [vmem:[%s880_s1 + $0x198] sm:$0xff]  ;;  %v133_v25 = vld [vmem:[%s880_s1 + $0x3a0] sm:$0xff]  ;;  %v67_v26 = vld [vmem:[%s880_s1 + $0x190] sm:$0xff] }
  0x1f   :  { %206 = vmatpush1.msra.mxu0 %v19_v58  ;;  %276 = vmatprep.subr.mxu1 %v84_v59  ;;  %v132_v27 = vld [vmem:[%s880_s1 + $0x398] sm:$0xff]  ;;  %v66_v28 = vld [vmem:[%s880_s1 + $0x188] sm:$0xff]  ;;  %v131_v29 = vld [vmem:[%s880_s1 + $0x390] sm:$0xff] }
  0x20   :  { %207 = vmatprep.subr.mxu0 %v18_v60  ;;  %277 = vmatpush1.msra.mxu1 %v83_v61  ;;  %v65_v30 = vld [vmem:[%s880_s1 + $0x180] sm:$0xff]  ;;  %v130_v31 = vld [vmem:[%s880_s1 + $0x388] sm:$0xff]  ;;  %v64_v32 = vld [vmem:[%s880_s1 + $0x178] sm:$0xff] }
  0x21   :  { %208 = vmatpush1.msra.mxu0 %v17_v62  ;;  %278 = vmatprep.subr.mxu1 %v82_v63  ;;  %v129_v33 = vld [vmem:[%s880_s1 + $0x380] sm:$0xff]  ;;  %v63_v34 = vld [vmem:[%s880_s1 + $0x170] sm:$0xff]  ;;  %v128_v35 = vld [vmem:[%s880_s1 + $0x378] sm:$0xff] }
  0x22   :  { %209 = vmatprep.subr.mxu0 %v80_v0  ;;  %279 = vmatpush1.msra.mxu1 %v81_v1  ;;  %v62_v36 = vld [vmem:[%s880_s1 + $0x168] sm:$0xff]  ;;  %v127_v37 = vld [vmem:[%s880_s1 + $0x370] sm:$0xff]  ;;  %v61_v38 = vld [vmem:[%s880_s1 + $0x160] sm:$0xff] }
  0x23   :  { %210 = vmatpush2.msra.mxu0 %v79_v2  ;;  %280 = vmatprep.subr.mxu1 %v144_v3  ;;  %v126_v39 = vld [vmem:[%s880_s1 + $0x368] sm:$0xff]  ;;  %v60_v40 = vld [vmem:[%s880_s1 + $0x158] sm:$0xff]  ;;  %v125_v41 = vld [vmem:[%s880_s1 + $0x360] sm:$0xff] }
  0x24   :  { %211 = vmatprep.subr.mxu0 %v78_v4  ;;  %281 = vmatpush2.msra.mxu1 %v143_v5  ;;  %v59_v42 = vld [vmem:[%s880_s1 + $0x150] sm:$0xff]  ;;  %v124_v43 = vld [vmem:[%s880_s1 + $0x358] sm:$0xff]  ;;  %v58_v44 = vld [vmem:[%s880_s1 + $0x148] sm:$0xff] }
  0x25   :  { %212 = vmatpush2.msra.mxu0 %v77_v6  ;;  %282 = vmatprep.subr.mxu1 %v142_v7  ;;  %v123_v45 = vld [vmem:[%s880_s1 + $0x350] sm:$0xff]  ;;  %v57_v46 = vld [vmem:[%s880_s1 + $0x140] sm:$0xff]  ;;  %v122_v47 = vld [vmem:[%s880_s1 + $0x348] sm:$0xff] }
  0x26   :  { %213 = vmatprep.subr.mxu0 %v76_v8  ;;  %283 = vmatpush2.msra.mxu1 %v141_v9  ;;  %v56_v48 = vld [vmem:[%s880_s1 + $0x138] sm:$0xff]  ;;  %v121_v49 = vld [vmem:[%s880_s1 + $0x340] sm:$0xff]  ;;  %v55_v50 = vld [vmem:[%s880_s1 + $0x130] sm:$0xff] }
  0x27   :  { %214 = vmatpush2.msra.mxu0 %v75_v10  ;;  %284 = vmatprep.subr.mxu1 %v140_v11  ;;  %v120_v51 = vld [vmem:[%s880_s1 + $0x338] sm:$0xff]  ;;  %v54_v52 = vld [vmem:[%s880_s1 + $0x128] sm:$0xff]  ;;  %v119_v53 = vld [vmem:[%s880_s1 + $0x330] sm:$0xff] }
  0x28   :  { %215 = vmatprep.subr.mxu0 %v74_v12  ;;  %285 = vmatpush2.msra.mxu1 %v139_v13  ;;  %v14_v54 = vld [vmem:[%s881_s0] sm:$0xff]  ;;  %v118_v56 = vld [vmem:[%s880_s1 + $0x328] sm:$0xff]  ;;  %v52_v57 = vld [vmem:[%s880_s1 + $0x118] sm:$0xff]  ;;  %v412_v13 = vmov 0.0  }
  0x29   :  { %216 = vmatpush2.msra.mxu0 %v73_v14  ;;  %286 = vmatprep.subr.mxu1 %v138_v15  ;;  %v53_v55 = vld [vmem:[%s880_s1 + $0x120] sm:$0xff]  ;;  %v51_v59 = vld [vmem:[%s880_s1 + $0x110] sm:$0xff]  ;;  %v116_v60 = vld [vmem:[%s880_s1 + $0x318] sm:$0xff]  ;;  %v170_v61 = vcombine.high %v14_v54, %v14_v54 }
  0x2a   :  { %217 = vmatprep.subr.mxu0 %v72_v16  ;;  %287 = vmatpush2.msra.mxu1 %v137_v17  ;;  %v117_v58 = vld [vmem:[%s880_s1 + $0x320] sm:$0xff]  ;;  %v50_v62 = vld [vmem:[%s880_s1 + $0x108] sm:$0xff]  ;;  %v115_v1 = vld [vmem:[%s880_s1 + $0x310] sm:$0xff] }
  0x2b   :  { %218 = vmatpush2.msra.mxu0 %v71_v18  ;;  %288 = vmatprep.subr.mxu1 %v136_v19  ;;  %v15_v63 = vld [vmem:[%s881_s0 + $0x8] sm:$0xff]  ;;  %v49_v0 = vld [vmem:[%s880_s1 + $0x100] sm:$0xff]  ;;  %v160_v3 = vld [vmem:[%s880_s1 + $0x478] sm:$0xff] }
  0x2c   :  { %219 = vmatprep.subr.mxu0 %v70_v20  ;;  %289 = vmatpush2.msra.mxu1 %v135_v21  ;;  %v114_v2 = vld [vmem:[%s880_s1 + $0x308] sm:$0xff]  ;;  %v113_v4 = vld [vmem:[%s880_s1 + $0x300] sm:$0xff]  ;;  %v171_v5 = vcombine.high %v15_v63, %v15_v63  ;;  %v159_v6 = vld [vmem:[%s880_s1 + $0x470] sm:$0xff] }
  0x2d   :  { %220 = vmatpush2.msra.mxu0 %v69_v22  ;;  %290 = vmatprep.subr.mxu1 %v134_v23  ;;  %v158_v7 = vld [vmem:[%s880_s1 + $0x468] sm:$0xff]  ;;  %v157_v8 = vld [vmem:[%s880_s1 + $0x460] sm:$0xff]  ;;  %v156_v9 = vld [vmem:[%s880_s1 + $0x458] sm:$0xff] }
  0x2e   :  { %221 = vmatprep.subr.mxu0 %v68_v24  ;;  %291 = vmatpush2.msra.mxu1 %v133_v25  ;;  %v161_v10 = vld [vmem:[%s882_s2] sm:$0xf]  ;;  %v155_v11 = vld [vmem:[%s880_s1 + $0x450] sm:$0xff]  ;;  %v154_v12 = vld [vmem:[%s880_s1 + $0x448] sm:$0xff] }
  0x2f   :  { %222 = vmatpush2.msra.mxu0 %v67_v26  ;;  %292 = vmatprep.subr.mxu1 %v132_v27  ;;  %v153_v14 = vld [vmem:[%s880_s1 + $0x440] sm:$0xff]  ;;  %v152_v15 = vld [vmem:[%s880_s1 + $0x438] sm:$0xff]  ;;  %v151_v16 = vld [vmem:[%s880_s1 + $0x430] sm:$0xff] }
  0x30   :  { %223 = vmatprep.subr.mxu0 %v66_v28  ;;  %293 = vmatpush2.msra.mxu1 %v131_v29  ;;  %v150_v17 = vld [vmem:[%s880_s1 + $0x428] sm:$0xff]  ;;  %v149_v18 = vld [vmem:[%s880_s1 + $0x420] sm:$0xff]  ;;  %v148_v19 = vld [vmem:[%s880_s1 + $0x418] sm:$0xff] }
  0x31   :  { %224 = vmatpush2.msra.mxu0 %v65_v30  ;;  %294 = vmatprep.subr.mxu1 %v130_v31  ;;  %v147_v20 = vld [vmem:[%s880_s1 + $0x410] sm:$0xff]  ;;  %v146_v21 = vld [vmem:[%s880_s1 + $0x408] sm:$0xff]  ;;  %v145_v22 = vld [vmem:[%s880_s1 + $0x400] sm:$0xff] }
  0x32   :  { %225 = vmatprep.subr.mxu0 %v64_v32  ;;  %295 = vmatpush2.msra.mxu1 %v129_v33  ;;  %v16_v23 = vld [vmem:[%s881_s0 + $0x10] sm:$0xf] }
  0x33   :  { %226 = vmatpush2.msra.mxu0 %v63_v34  ;;  %296 = vmatprep.subr.mxu1 %v128_v35 }
  0x34   :  { %227 = vmatprep.subr.mxu0 %v62_v36  ;;  %297 = vmatpush2.msra.mxu1 %v127_v37 }
  0x35   :  { %228 = vmatpush2.msra.mxu0 %v61_v38  ;;  %298 = vmatprep.subr.mxu1 %v126_v39 }
  0x36   :  { %229 = vmatprep.subr.mxu0 %v60_v40  ;;  %299 = vmatpush2.msra.mxu1 %v125_v41 }
  0x37   :  { %230 = vmatpush2.msra.mxu0 %v59_v42  ;;  %300 = vmatprep.subr.mxu1 %v124_v43 }
  0x38   :  { %231 = vmatprep.subr.mxu0 %v58_v44  ;;  %301 = vmatpush2.msra.mxu1 %v123_v45 }
  0x39   :  { %232 = vmatpush2.msra.mxu0 %v57_v46  ;;  %302 = vmatprep.subr.mxu1 %v122_v47 }
  0x3a   :  { %233 = vmatprep.subr.mxu0 %v56_v48  ;;  %303 = vmatpush2.msra.mxu1 %v121_v49 }
  0x3b   :  { %234 = vmatpush2.msra.mxu0 %v55_v50  ;;  %304 = vmatprep.subr.mxu1 %v120_v51 }
  0x3c   :  { %235 = vmatprep.subr.mxu0 %v54_v52  ;;  %305 = vmatpush2.msra.mxu1 %v119_v53 }
  0x3d   :  { %236 = vmatpush2.msra.mxu0 %v53_v55  ;;  %306 = vmatprep.subr.mxu1 %v118_v56 }
  0x3e   :  { %237 = vmatprep.subr.mxu0 %v52_v57  ;;  %307 = vmatpush2.msra.mxu1 %v117_v58 }
  0x3f   :  { %238 = vmatpush2.msra.mxu0 %v51_v59  ;;  %308 = vmatprep.subr.mxu1 %v116_v60 }
  0x40   :  { %239 = vmatprep.subr.mxu0 %v50_v62  ;;  %241 = vmatprep.mubr.f32.mxu0 %v170_v61 }
  0x41   :  { %240 = vmatpush2.msra.mxu0 %v49_v0  ;;  %309 = vmatpush2.msra.mxu1 %v115_v1 }
  0x42   :  { %242 = vmatmul.mubr.f32.vlgmr.msra.gmra.mxu0 %v14_v54  ;;  %310 = vmatprep.subr.mxu1 %v114_v2 }
  0x43   :  { %335 = vmatprep.subr.mxu0 %v160_v3  ;;  %311 = vmatpush2.msra.mxu1 %v113_v4 }
  0x44   :  { %312 = vmatprep.mubr.f32.mxu1 %v171_v5  ;;  %336 = vmatpush1.msra.mxu0 %v159_v6 }
  0x45   :  { %313 = vmatmul.mubr.f32.vlgmr.msra.gmra.mxu1 %v15_v63  ;;  %337 = vmatprep.subr.mxu0 %v158_v7 }
  0x46   :  { %338 = vmatpush1.msra.mxu0 %v157_v8  ;;  %383 = vmatprep.mubr.f32.mxu0 %v412_v13 }
  0x47   :  { %339 = vmatprep.subr.mxu0 %v156_v9  ;;  %164 = vperm.xlu0 %404, %v161_v10  }
  0x48   :  { %340 = vmatpush1.msra.mxu0 %v155_v11 }
  0x49   :  { %341 = vmatprep.subr.mxu0 %v154_v12 }
  0x4a   :  { %342 = vmatpush1.msra.mxu0 %v153_v14 }
  0x4b   :  { %343 = vmatprep.subr.mxu0 %v152_v15 }
  0x4c   :  { %344 = vmatpush1.msra.mxu0 %v151_v16 }
  0x4d   :  { %345 = vmatprep.subr.mxu0 %v150_v17 }
  0x4e   :  { %346 = vmatpush1.msra.mxu0 %v149_v18 }
  0x4f   :  { %347 = vmatprep.subr.mxu0 %v148_v19 }
  0x50   :  { %348 = vmatpush1.msra.mxu0 %v147_v20 }
  0x51   :  { %349 = vmatprep.subr.mxu0 %v146_v21 }
  0x52   :  { %350 = vmatpush1.msra.mxu0 %v145_v22 }
  0x53   :  { %401 = vmatmul.mubr.msk.f32.vlgmr.msra.gmra.mxu0 %vm174_vm0, %v16_v23 }
  0xc2   :  { %v165_v25 = vpop.permute.xlu0 %164 }
 0x102   :  { %v243_v24 = vpop.f32.mrf.mxu0 }
 0x103   :  { %v244_v28 = vadd.f32 %v243_v24, %v165_v25 }
 0x104   :  { %v245_v26 = vpop.f32.mrf.mxu0 }
 0x105   :  { %v314_v27 = vpop.f32.mrf.mxu1  ;;  %v246_v29 = vadd.f32 %v245_v26, %v165_v25 }
 0x106   :  { %v315_v31 = vadd.f32 %v314_v27, %v244_v28 }
 0x107   :  { %v316_v30 = vpop.f32.mrf.mxu1 }
 0x108   :  { %v317_v33 = vadd.f32 %v316_v30, %v246_v29 }
 0x113   :  { %v385_v32 = vpop.f32.mrf.mxu0 }
 0x114   :  { %v386_v34 = vadd.f32 %v385_v32, %v315_v31 }
 0x115   :  { %v387_v35 = vpop.f32.mrf.mxu0 }
 0x116   :  { %v388_v36 = vadd.f32 %v387_v35, %v317_v33  ;;  %407 = vtanh.f32 %v386_v34 }
 0x118   :  { %409 = vtanh.f32 %v388_v36 }
 0x123   :  { %v408_v37 = vpop.eup %407 }
 0x125   :  { %v410_v38 = vpop.eup %409 }
 0x126   :  { %v394_v39 = vcombine.low %v408_v37, %v410_v38 }
 0x128   :  { %396 = vst [vmem:[%s883_s3] sm:$0xff] %v394_v39 }

</bundles_post_ra>
